<compile_context>
chip_gen: v7x
topology: tpu7x:2x2x1
jax: 0.10.0
libtpu: 0.0.40
codegen_flags: <defaults>
</compile_context>

<pallas_src>
import functools

import jax
import jax.numpy as jnp
from jax.experimental import pallas as pl
from jax.experimental.pallas import tpu as pltpu

F32 = jnp.float32
MXU_DT = jnp.bfloat16      # MXU operand dtype (f32 accumulation everywhere)
LN_EPS = 1e-5


# ----------------------------------------------------------------------------
# In-kernel helpers (traced inside the fused kernel body)
# ----------------------------------------------------------------------------
def _mm(a, w):
    """Matmul with bf16 MXU operands and f32 accumulation."""
    return jnp.dot(a.astype(MXU_DT), w.astype(MXU_DT),
                   preferred_element_type=F32)


def _layernorm(x, g, b):
    mean = jnp.mean(x, axis=-1, keepdims=True)
    var = jnp.mean((x - mean) ** 2, axis=-1, keepdims=True)
    return (x - mean) * jax.lax.rsqrt(var + LN_EPS) * g + b


def _log_softmax(z):
    m = jnp.max(z, axis=-1, keepdims=True)
    s = z - m
    return s - jnp.log(jnp.sum(jnp.exp(s), axis=-1, keepdims=True))


# ----------------------------------------------------------------------------
# The single fused forward kernel
# ----------------------------------------------------------------------------
def _fused_forward_kernel(x_ref, emb_w_ref, emb_b_ref,
                          in_w_ref, in_b_ref, out_w_ref, out_b_ref,
                          ln1_g_ref, ln1_b_ref,
                          ff1_w_ref, ff1_b_ref, ff2_w_ref, ff2_b_ref,
                          ln2_g_ref, ln2_b_ref,
                          norm_g_ref, norm_b_ref,
                          lin_w_ref, lin_b_ref,
                          lin1_w_ref, lin1_b_ref,
                          lin2_w_ref, lin2_b_ref,
                          o_ref, *, n_head, t0, t1, n_layers):
    M = t0 * t1                       # flattened (seq * batch) rows
    E = emb_w_ref.shape[1]
    Dh = E // n_head
    scale = 1.0 / float(Dh) ** 0.5

    # --- embedding Linear + ReLU -------------------------------------------
    h = jnp.maximum(_mm(x_ref[...], emb_w_ref[...]) + emb_b_ref[...], 0.0)

    # Block-diagonal "same batch" attention mask over flattened rows:
    # row r = seq_idx * t1 + batch_idx; attention allowed iff batch matches.
    r = jax.lax.broadcasted_iota(jnp.int32, (M, M), 0)
    c = jax.lax.broadcasted_iota(jnp.int32, (M, M), 1)
    same_batch = (r % t1) == (c % t1)

    # --- encoder layers (post-norm, relu FFN, dropout == identity) ----------
    for layer in range(n_layers):
        in_w = in_w_ref[layer]          # (E, 3E)
        in_b = in_b_ref[layer]          # (1, 3E)
        out_w = out_w_ref[layer]        # (E, E)
        out_b = out_b_ref[layer]        # (1, E)

        qkv = _mm(h, in_w) + in_b       # (M, 3E)
        q = qkv[:, 0:E]
        k = qkv[:, E:2 * E]
        v = qkv[:, 2 * E:3 * E]

        attn = None
        for hd in range(n_head):
            lo, hi = hd * Dh, (hd + 1) * Dh
            qh = q[:, lo:hi].astype(MXU_DT)
            kh = k[:, lo:hi].astype(MXU_DT)
            vh = v[:, lo:hi].astype(MXU_DT)
            # scores over flattened rows, masked to same-batch columns
            s = jax.lax.dot_general(qh, kh, (((1,), (1,)), ((), ())),
                                    preferred_element_type=F32) * scale
            s = jnp.where(same_batch, s, -1e30)
            m = jnp.max(s, axis=-1, keepdims=True)
            p = jnp.exp(s - m)
            p = p / jnp.sum(p, axis=-1, keepdims=True)
            oh = jnp.dot(p.astype(MXU_DT), vh,
                         preferred_element_type=F32)          # (M, Dh)
            # Fold the head directly into the output projection (no concat).
            contrib = _mm(oh, out_w[lo:hi, :])                 # (M, E)
            attn = contrib if attn is None else attn + contrib
        attn = attn + out_b

        # residual + LayerNorm, FFN (relu), residual + LayerNorm
        h = _layernorm(h + attn, ln1_g_ref[layer], ln1_b_ref[layer])
        ffn = jnp.maximum(_mm(h, ff1_w_ref[layer]) + ff1_b_ref[layer], 0.0)
        ffn = _mm(ffn, ff2_w_ref[layer]) + ff2_b_ref[layer]
        h = _layernorm(h + ffn, ln2_g_ref[layer], ln2_b_ref[layer])

    # --- final encoder norm + outer Sequential ReLU --------------------------
    h = jnp.maximum(_layernorm(h, norm_g_ref[...], norm_b_ref[...]), 0.0)

    # --- pick encoder_out[:, j, :]  (rows j, j+t1, j+2*t1, ...) via a 0/1
    #     selection matmul (robust, no reshapes / strided gathers needed) ----
    cc = jax.lax.broadcasted_iota(jnp.int32, (t0, M), 1)
    rr = jax.lax.broadcasted_iota(jnp.int32, (t0, M), 0)

    def select(j):
        sel = (cc == rr * t1 + j).astype(F32)    # (t0, M) one-hot rows
        return _mm(sel, h)                       # (t0, E)

    e0 = select(0)
    e1 = select(1)
    e2 = select(2)

    logits_l1 = _mm(e0, lin1_w_ref[...]) + lin1_b_ref[...]
    logits_l2 = _mm(e1, lin2_w_ref[...]) + lin2_b_ref[...]
    logits = _mm(e2, lin_w_ref[...]) + lin_b_ref[...]

    # --- pack all three log-prob heads into one lane-dense output slab -------
    nc = lin_w_ref.shape[1]
    nc1 = lin1_w_ref.shape[1]
    nc2 = lin2_w_ref.shape[1]
    o_ref[...] = jnp.zeros(o_ref.shape, o_ref.dtype)
    o_ref[:, 0:nc] = _log_softmax(logits)
    o_ref[:, nc:nc + nc1] = _log_softmax(logits_l1)
    o_ref[:, nc + nc1:nc + nc1 + nc2] = _log_softmax(logits_l2)


# ----------------------------------------------------------------------------
# Wrapper: one pallas_call, everything VMEM-resident, no grid.
# ----------------------------------------------------------------------------
@functools.partial(jax.jit, static_argnames=("n_head",))
def transformer_model2_forward(x, params, n_head):
    T0, T1, Din = x.shape
    E = params["embed_w"].shape[1]
    n_layers = params["in_w"].shape[0]
    nc = params["lin_w"].shape[1]
    nc1 = params["lin1_w"].shape[1]
    nc2 = params["lin2_w"].shape[1]
    total = nc + nc1 + nc2
    out_pad = ((total + 127) // 128) * 128       # lane-dense output slab width

    x2d = x.reshape(T0 * T1, Din)
    operands = (
        x2d,
        params["embed_w"], params["embed_b"],
        params["in_w"], params["in_b"], params["out_w"], params["out_b"],
        params["ln1_g"], params["ln1_b"],
        params["ff1_w"], params["ff1_b"], params["ff2_w"], params["ff2_b"],
        params["ln2_g"], params["ln2_b"],
        params["norm_g"], params["norm_b"],
        params["lin_w"], params["lin_b"],
        params["lin1_w"], params["lin1_b"],
        params["lin2_w"], params["lin2_b"],
    )

    vmem_spec = pl.BlockSpec(memory_space=pltpu.MemorySpace.VMEM)
    kernel = functools.partial(_fused_forward_kernel,
                               n_head=n_head, t0=T0, t1=T1, n_layers=n_layers)

    packed = pl.pallas_call(
        kernel,
        out_shape=jax.ShapeDtypeStruct((T0, out_pad), F32),
        in_specs=[vmem_spec] * len(operands),
        out_specs=vmem_spec,
    )(*operands)

    logp = packed[:, 0:nc]
    logp_l1 = packed[:, nc:nc + nc1]
    logp_l2 = packed[:, nc + nc1:nc + nc1 + nc2]
    return logp, logp_l1, logp_l2


# ----------------------------------------------------------------------------
# Deterministic synthetic parameters, stored directly in kernel-friendly
# (K, N) layout (no per-call transposes).  Shapes follow the module __init__.
# ----------------------------------------------------------------------------
def init_params(key, input_dim, d_model, n_head, n_layers, d_inner, nc, nc1, nc2):
    def lin(k, in_dim, out_dim):
        k1, k2 = jax.random.split(k)
        bound = 1.0 / float(in_dim) ** 0.5
        w = jax.random.uniform(k1, (in_dim, out_dim), F32, -bound, bound)
        b = jax.random.uniform(k2, (1, out_dim), F32, -bound, bound)
        return w, b

    keys = jax.random.split(key, 4 + n_layers)
    p = {}
    p["embed_w"], p["embed_b"] = lin(keys[0], input_dim, d_model)

    acc = {name: [] for name in
           ("in_w", "in_b", "out_w", "out_b", "ff1_w", "ff1_b", "ff2_w", "ff2_b",
            "ln1_g", "ln1_b", "ln2_g", "ln2_b")}
    for li in range(n_layers):
        lk = jax.random.split(keys[1 + li], 4)
        w, b = lin(lk[0], d_model, 3 * d_model); acc["in_w"].append(w); acc["in_b"].append(b)
        w, b = lin(lk[1], d_model, d_model);     acc["out_w"].append(w); acc["out_b"].append(b)
        w, b = lin(lk[2], d_model, d_inner);     acc["ff1_w"].append(w); acc["ff1_b"].append(b)
        w, b = lin(lk[3], d_inner, d_model);     acc["ff2_w"].append(w); acc["ff2_b"].append(b)
        acc["ln1_g"].append(jnp.ones((1, d_model), F32))
        acc["ln1_b"].append(jnp.zeros((1, d_model), F32))
        acc["ln2_g"].append(jnp.ones((1, d_model), F32))
        acc["ln2_b"].append(jnp.zeros((1, d_model), F32))
    for name, lst in acc.items():
        p[name] = jnp.stack(lst, axis=0)

    p["norm_g"] = jnp.ones((1, d_model), F32)
    p["norm_b"] = jnp.zeros((1, d_model), F32)
    p["lin1_w"], p["lin1_b"] = lin(keys[1 + n_layers], d_model, nc1)
    p["lin2_w"], p["lin2_b"] = lin(keys[2 + n_layers], d_model, nc2)
    p["lin_w"], p["lin_b"] = lin(keys[3 + n_layers], d_model, nc)
    return p


if __name__ == "__main__":
    key = jax.random.PRNGKey(0)
    kx, kp = jax.random.split(key)

    # Small valid config (original default n_head=3 / d_model=64 is invalid in
    # PyTorch).  Attention runs over T0; the heads index along T1 (>= 3).
    input_dim, d_model, n_head, n_layers, d_inner = 4, 32, 4, 2, 64
    num_classes, num_classes_l1, num_classes_l2 = 52, 6, 20
    T0, T1 = 8, 4

    x = jax.random.normal(kx, (T0, T1, input_dim), F32)
    params = init_params(kp, input_dim, d_model, n_head, n_layers, d_inner,
                         num_classes, num_classes_l1, num_classes_l2)

    logp, logp_l1, logp_l2 = transformer_model2_forward(x, params, n_head)
    jax.block_until_ready((logp, logp_l1, logp_l2))

    assert logp.shape == (T0, num_classes)
    assert logp_l1.shape == (T0, num_classes_l1)
    assert logp_l2.shape == (T0, num_classes_l2)
    # log-softmax rows must normalize (exact in f32 regardless of MXU dtype)
    for lp in (logp, logp_l1, logp_l2):
        assert jnp.allclose(jnp.exp(lp).sum(-1), 1.0, atol=1e-2)
    print("KERNEL_OK")
</pallas_src>

<mosaic_0001>
module attributes {stable_mosaic.version = 11 : i64} {
  func.func @_fused_forward_kernel(%arg0: memref<32x4xf32, #tpu.memory_space<vmem>>, %arg1: memref<4x32xf32, #tpu.memory_space<vmem>>, %arg2: memref<1x32xf32, #tpu.memory_space<vmem>>, %arg3: memref<2x32x96xf32, #tpu.memory_space<vmem>>, %arg4: memref<2x1x96xf32, #tpu.memory_space<vmem>>, %arg5: memref<2x32x32xf32, #tpu.memory_space<vmem>>, %arg6: memref<2x1x32xf32, #tpu.memory_space<vmem>>, %arg7: memref<2x1x32xf32, #tpu.memory_space<vmem>>, %arg8: memref<2x1x32xf32, #tpu.memory_space<vmem>>, %arg9: memref<2x32x64xf32, #tpu.memory_space<vmem>>, %arg10: memref<2x1x64xf32, #tpu.memory_space<vmem>>, %arg11: memref<2x64x32xf32, #tpu.memory_space<vmem>>, %arg12: memref<2x1x32xf32, #tpu.memory_space<vmem>>, %arg13: memref<2x1x32xf32, #tpu.memory_space<vmem>>, %arg14: memref<2x1x32xf32, #tpu.memory_space<vmem>>, %arg15: memref<1x32xf32, #tpu.memory_space<vmem>>, %arg16: memref<1x32xf32, #tpu.memory_space<vmem>>, %arg17: memref<32x52xf32, #tpu.memory_space<vmem>>, %arg18: memref<1x52xf32, #tpu.memory_space<vmem>>, %arg19: memref<32x6xf32, #tpu.memory_space<vmem>>, %arg20: memref<1x6xf32, #tpu.memory_space<vmem>>, %arg21: memref<32x20xf32, #tpu.memory_space<vmem>>, %arg22: memref<1x20xf32, #tpu.memory_space<vmem>>, %arg23: memref<8x128xf32, #tpu.memory_space<vmem>>) attributes {dimension_semantics = [], scalar_prefetch = 0 : i64, scratch_operands = 0 : i64, tpu.core_type = #tpu.core_type<tc>} {
    %c0 = arith.constant 0 : index
    %c0_0 = arith.constant 0 : index
    %0 = vector.load %arg0[%c0, %c0_0] : memref<32x4xf32, #tpu.memory_space<vmem>>, vector<32x4xf32>
    %c0_1 = arith.constant 0 : index
    %c0_2 = arith.constant 0 : index
    %1 = vector.load %arg1[%c0_1, %c0_2] : memref<4x32xf32, #tpu.memory_space<vmem>>, vector<4x32xf32>
    %2 = arith.truncf %0 : vector<32x4xf32> to vector<32x4xbf16>
    %3 = arith.truncf %1 : vector<4x32xf32> to vector<4x32xbf16>
    %cst = arith.constant dense<0.000000e+00> : vector<32x32xf32>
    %4 = tpu.matmul %2, %3, %cst {dimension_numbers = #tpu.dot_dimension_numbers<[1], [0], [0], [1], [0, 0, 1, 1], [], []>} : vector<32x4xbf16>, vector<4x32xbf16>, vector<32x32xf32> -> vector<32x32xf32>
    %c0_3 = arith.constant 0 : index
    %c0_4 = arith.constant 0 : index
    %5 = vector.load %arg2[%c0_3, %c0_4] : memref<1x32xf32, #tpu.memory_space<vmem>>, vector<1x32xf32>
    %6 = vector.broadcast %5 : vector<1x32xf32> to vector<32x32xf32>
    %7 = arith.addf %4, %6 : vector<32x32xf32>
    %cst_5 = arith.constant 0.000000e+00 : f32
    %8 = vector.broadcast %cst_5 : f32 to vector<32x32xf32>
    %9 = arith.maximumf %7, %8 : vector<32x32xf32>
    %10 = tpu.iota {dimensions = array<i32: 0>} : vector<32x32xi32>
    %11 = tpu.iota {dimensions = array<i32: 1>} : vector<32x32xi32>
    %c4_i32 = arith.constant 4 : i32
    %c0_i32 = arith.constant 0 : i32
    %12 = arith.cmpi eq, %c4_i32, %c0_i32 : i32
    %c1_i32 = arith.constant 1 : i32
    %13 = arith.select %12, %c1_i32, %c4_i32 : i32
    %14 = vector.broadcast %13 : i32 to vector<32x32xi32>
    %15 = arith.remsi %10, %14 : vector<32x32xi32>
    %c0_i32_6 = arith.constant 0 : i32
    %16 = vector.broadcast %c0_i32_6 : i32 to vector<32x32xi32>
    %17 = arith.cmpi ne, %15, %16 : vector<32x32xi32>
    %c0_i32_7 = arith.constant 0 : i32
    %18 = vector.broadcast %c0_i32_7 : i32 to vector<32x32xi32>
    %19 = arith.cmpi slt, %15, %18 : vector<32x32xi32>
    %c0_i32_8 = arith.constant 0 : i32
    %20 = arith.cmpi slt, %13, %c0_i32_8 : i32
    %21 = vector.broadcast %20 : i1 to vector<32x32xi1>
    %22 = vector.broadcast %21 : vector<32x32xi1> to vector<32x32xi1>
    %23 = arith.xori %19, %22 : vector<32x32xi1>
    %24 = arith.andi %23, %17 : vector<32x32xi1>
    %25 = vector.broadcast %13 : i32 to vector<32x32xi32>
    %26 = arith.addi %15, %25 : vector<32x32xi32>
    %27 = arith.select %24, %26, %15 : vector<32x32xi1>, vector<32x32xi32>
    %c4_i32_9 = arith.constant 4 : i32
    %c0_i32_10 = arith.constant 0 : i32
    %28 = arith.cmpi eq, %c4_i32_9, %c0_i32_10 : i32
    %c1_i32_11 = arith.constant 1 : i32
    %29 = arith.select %28, %c1_i32_11, %c4_i32_9 : i32
    %30 = vector.broadcast %29 : i32 to vector<32x32xi32>
    %31 = arith.remsi %11, %30 : vector<32x32xi32>
    %c0_i32_12 = arith.constant 0 : i32
    %32 = vector.broadcast %c0_i32_12 : i32 to vector<32x32xi32>
    %33 = arith.cmpi ne, %31, %32 : vector<32x32xi32>
    %c0_i32_13 = arith.constant 0 : i32
    %34 = vector.broadcast %c0_i32_13 : i32 to vector<32x32xi32>
    %35 = arith.cmpi slt, %31, %34 : vector<32x32xi32>
    %c0_i32_14 = arith.constant 0 : i32
    %36 = arith.cmpi slt, %29, %c0_i32_14 : i32
    %37 = vector.broadcast %36 : i1 to vector<32x32xi1>
    %38 = vector.broadcast %37 : vector<32x32xi1> to vector<32x32xi1>
    %39 = arith.xori %35, %38 : vector<32x32xi1>
    %40 = arith.andi %39, %33 : vector<32x32xi1>
    %41 = vector.broadcast %29 : i32 to vector<32x32xi32>
    %42 = arith.addi %31, %41 : vector<32x32xi32>
    %43 = arith.select %40, %42, %31 : vector<32x32xi1>, vector<32x32xi32>
    %44 = arith.cmpi eq, %27, %43 : vector<32x32xi32>
    %c0_15 = arith.constant 0 : index
    %c0_16 = arith.constant 0 : index
    %c0_17 = arith.constant 0 : index
    %45 = vector.load %arg3[%c0_15, %c0_16, %c0_17] : memref<2x32x96xf32, #tpu.memory_space<vmem>>, vector<1x32x96xf32>
    %46 = vector.shape_cast %45 : vector<1x32x96xf32> to vector<32x96xf32>
    %c0_18 = arith.constant 0 : index
    %c0_19 = arith.constant 0 : index
    %c0_20 = arith.constant 0 : index
    %47 = vector.load %arg4[%c0_18, %c0_19, %c0_20] : memref<2x1x96xf32, #tpu.memory_space<vmem>>, vector<1x1x96xf32>
    %48 = vector.shape_cast %47 : vector<1x1x96xf32> to vector<1x96xf32>
    %c0_21 = arith.constant 0 : index
    %c0_22 = arith.constant 0 : index
    %c0_23 = arith.constant 0 : index
    %49 = vector.load %arg5[%c0_21, %c0_22, %c0_23] : memref<2x32x32xf32, #tpu.memory_space<vmem>>, vector<1x32x32xf32>
    %50 = vector.shape_cast %49 : vector<1x32x32xf32> to vector<32x32xf32>
    %c0_24 = arith.constant 0 : index
    %c0_25 = arith.constant 0 : index
    %c0_26 = arith.constant 0 : index
    %51 = vector.load %arg6[%c0_24, %c0_25, %c0_26] : memref<2x1x32xf32, #tpu.memory_space<vmem>>, vector<1x1x32xf32>
    %52 = vector.shape_cast %51 : vector<1x1x32xf32> to vector<1x32xf32>
    %53 = arith.truncf %9 : vector<32x32xf32> to vector<32x32xbf16>
    %54 = arith.truncf %46 : vector<32x96xf32> to vector<32x96xbf16>
    %cst_27 = arith.constant dense<0.000000e+00> : vector<32x96xf32>
    %55 = tpu.matmul %53, %54, %cst_27 {dimension_numbers = #tpu.dot_dimension_numbers<[1], [0], [0], [1], [0, 0, 1, 1], [], []>} : vector<32x32xbf16>, vector<32x96xbf16>, vector<32x96xf32> -> vector<32x96xf32>
    %56 = vector.broadcast %48 : vector<1x96xf32> to vector<32x96xf32>
    %57 = arith.addf %55, %56 : vector<32x96xf32>
    %58 = vector.extract_strided_slice %57 {offsets = [0, 0], sizes = [32, 32], strides = [1, 1]} : vector<32x96xf32> to vector<32x32xf32>
    %59 = vector.extract_strided_slice %57 {offsets = [0, 32], sizes = [32, 32], strides = [1, 1]} : vector<32x96xf32> to vector<32x32xf32>
    %60 = vector.extract_strided_slice %57 {offsets = [0, 64], sizes = [32, 32], strides = [1, 1]} : vector<32x96xf32> to vector<32x32xf32>
    %61 = vector.extract_strided_slice %58 {offsets = [0, 0], sizes = [32, 8], strides = [1, 1]} : vector<32x32xf32> to vector<32x8xf32>
    %62 = arith.truncf %61 : vector<32x8xf32> to vector<32x8xbf16>
    %63 = vector.extract_strided_slice %59 {offsets = [0, 0], sizes = [32, 8], strides = [1, 1]} : vector<32x32xf32> to vector<32x8xf32>
    %64 = arith.truncf %63 : vector<32x8xf32> to vector<32x8xbf16>
    %65 = vector.extract_strided_slice %60 {offsets = [0, 0], sizes = [32, 8], strides = [1, 1]} : vector<32x32xf32> to vector<32x8xf32>
    %66 = arith.truncf %65 : vector<32x8xf32> to vector<32x8xbf16>
    %cst_28 = arith.constant dense<0.000000e+00> : vector<32x32xf32>
    %67 = tpu.matmul %62, %64, %cst_28 {dimension_numbers = #tpu.dot_dimension_numbers<[1], [1], [0], [0], [0, 0, 1, 0], [], []>} : vector<32x8xbf16>, vector<32x8xbf16>, vector<32x32xf32> -> vector<32x32xf32>
    %cst_29 = arith.constant 0.353553385 : f32
    %68 = vector.broadcast %cst_29 : f32 to vector<32x32xf32>
    %69 = arith.mulf %67, %68 : vector<32x32xf32>
    %cst_30 = arith.constant -1.000000e+30 : f32
    %70 = vector.broadcast %cst_30 : f32 to vector<32x32xf32>
    %71 = arith.select %44, %69, %70 : vector<32x32xi1>, vector<32x32xf32>
    %cst_31 = arith.constant dense<0xFF800000> : vector<32xf32>
    %72 = vector.multi_reduction <maximumf>, %71, %cst_31 [1] : vector<32x32xf32> to vector<32xf32>
    %73 = vector.shape_cast %72 : vector<32xf32> to vector<32x1xf32>
    %74 = vector.broadcast %73 : vector<32x1xf32> to vector<32x32xf32>
    %75 = arith.subf %71, %74 : vector<32x32xf32>
    %76 = math.exp %75 : vector<32x32xf32>
    %cst_32 = arith.constant dense<0.000000e+00> : vector<32xf32>
    %77 = vector.multi_reduction <add>, %76, %cst_32 [1] : vector<32x32xf32> to vector<32xf32>
    %78 = vector.shape_cast %77 : vector<32xf32> to vector<32x1xf32>
    %79 = vector.broadcast %78 : vector<32x1xf32> to vector<32x32xf32>
    %80 = arith.divf %76, %79 : vector<32x32xf32>
    %81 = arith.truncf %80 : vector<32x32xf32> to vector<32x32xbf16>
    %cst_33 = arith.constant dense<0.000000e+00> : vector<32x8xf32>
    %82 = tpu.matmul %81, %66, %cst_33 {dimension_numbers = #tpu.dot_dimension_numbers<[1], [0], [0], [1], [0, 0, 1, 1], [], []>} : vector<32x32xbf16>, vector<32x8xbf16>, vector<32x8xf32> -> vector<32x8xf32>
    %83 = vector.extract_strided_slice %50 {offsets = [0, 0], sizes = [8, 32], strides = [1, 1]} : vector<32x32xf32> to vector<8x32xf32>
    %84 = arith.truncf %82 : vector<32x8xf32> to vector<32x8xbf16>
    %85 = arith.truncf %83 : vector<8x32xf32> to vector<8x32xbf16>
    %cst_34 = arith.constant dense<0.000000e+00> : vector<32x32xf32>
    %86 = tpu.matmul %84, %85, %cst_34 {dimension_numbers = #tpu.dot_dimension_numbers<[1], [0], [0], [1], [0, 0, 1, 1], [], []>} : vector<32x8xbf16>, vector<8x32xbf16>, vector<32x32xf32> -> vector<32x32xf32>
    %87 = vector.extract_strided_slice %58 {offsets = [0, 8], sizes = [32, 8], strides = [1, 1]} : vector<32x32xf32> to vector<32x8xf32>
    %88 = arith.truncf %87 : vector<32x8xf32> to vector<32x8xbf16>
    %89 = vector.extract_strided_slice %59 {offsets = [0, 8], sizes = [32, 8], strides = [1, 1]} : vector<32x32xf32> to vector<32x8xf32>
    %90 = arith.truncf %89 : vector<32x8xf32> to vector<32x8xbf16>
    %91 = vector.extract_strided_slice %60 {offsets = [0, 8], sizes = [32, 8], strides = [1, 1]} : vector<32x32xf32> to vector<32x8xf32>
    %92 = arith.truncf %91 : vector<32x8xf32> to vector<32x8xbf16>
    %cst_35 = arith.constant dense<0.000000e+00> : vector<32x32xf32>
    %93 = tpu.matmul %88, %90, %cst_35 {dimension_numbers = #tpu.dot_dimension_numbers<[1], [1], [0], [0], [0, 0, 1, 0], [], []>} : vector<32x8xbf16>, vector<32x8xbf16>, vector<32x32xf32> -> vector<32x32xf32>
    %cst_36 = arith.constant 0.353553385 : f32
    %94 = vector.broadcast %cst_36 : f32 to vector<32x32xf32>
    %95 = arith.mulf %93, %94 : vector<32x32xf32>
    %cst_37 = arith.constant -1.000000e+30 : f32
    %96 = vector.broadcast %cst_37 : f32 to vector<32x32xf32>
    %97 = arith.select %44, %95, %96 : vector<32x32xi1>, vector<32x32xf32>
    %cst_38 = arith.constant dense<0xFF800000> : vector<32xf32>
    %98 = vector.multi_reduction <maximumf>, %97, %cst_38 [1] : vector<32x32xf32> to vector<32xf32>
    %99 = vector.shape_cast %98 : vector<32xf32> to vector<32x1xf32>
    %100 = vector.broadcast %99 : vector<32x1xf32> to vector<32x32xf32>
    %101 = arith.subf %97, %100 : vector<32x32xf32>
    %102 = math.exp %101 : vector<32x32xf32>
    %cst_39 = arith.constant dense<0.000000e+00> : vector<32xf32>
    %103 = vector.multi_reduction <add>, %102, %cst_39 [1] : vector<32x32xf32> to vector<32xf32>
    %104 = vector.shape_cast %103 : vector<32xf32> to vector<32x1xf32>
    %105 = vector.broadcast %104 : vector<32x1xf32> to vector<32x32xf32>
    %106 = arith.divf %102, %105 : vector<32x32xf32>
    %107 = arith.truncf %106 : vector<32x32xf32> to vector<32x32xbf16>
    %cst_40 = arith.constant dense<0.000000e+00> : vector<32x8xf32>
    %108 = tpu.matmul %107, %92, %cst_40 {dimension_numbers = #tpu.dot_dimension_numbers<[1], [0], [0], [1], [0, 0, 1, 1], [], []>} : vector<32x32xbf16>, vector<32x8xbf16>, vector<32x8xf32> -> vector<32x8xf32>
    %109 = vector.extract_strided_slice %50 {offsets = [8, 0], sizes = [8, 32], strides = [1, 1]} : vector<32x32xf32> to vector<8x32xf32>
    %110 = arith.truncf %108 : vector<32x8xf32> to vector<32x8xbf16>
    %111 = arith.truncf %109 : vector<8x32xf32> to vector<8x32xbf16>
    %cst_41 = arith.constant dense<0.000000e+00> : vector<32x32xf32>
    %112 = tpu.matmul %110, %111, %cst_41 {dimension_numbers = #tpu.dot_dimension_numbers<[1], [0], [0], [1], [0, 0, 1, 1], [], []>} : vector<32x8xbf16>, vector<8x32xbf16>, vector<32x32xf32> -> vector<32x32xf32>
    %113 = arith.addf %86, %112 : vector<32x32xf32>
    %114 = vector.extract_strided_slice %58 {offsets = [0, 16], sizes = [32, 8], strides = [1, 1]} : vector<32x32xf32> to vector<32x8xf32>
    %115 = arith.truncf %114 : vector<32x8xf32> to vector<32x8xbf16>
    %116 = vector.extract_strided_slice %59 {offsets = [0, 16], sizes = [32, 8], strides = [1, 1]} : vector<32x32xf32> to vector<32x8xf32>
    %117 = arith.truncf %116 : vector<32x8xf32> to vector<32x8xbf16>
    %118 = vector.extract_strided_slice %60 {offsets = [0, 16], sizes = [32, 8], strides = [1, 1]} : vector<32x32xf32> to vector<32x8xf32>
    %119 = arith.truncf %118 : vector<32x8xf32> to vector<32x8xbf16>
    %cst_42 = arith.constant dense<0.000000e+00> : vector<32x32xf32>
    %120 = tpu.matmul %115, %117, %cst_42 {dimension_numbers = #tpu.dot_dimension_numbers<[1], [1], [0], [0], [0, 0, 1, 0], [], []>} : vector<32x8xbf16>, vector<32x8xbf16>, vector<32x32xf32> -> vector<32x32xf32>
    %cst_43 = arith.constant 0.353553385 : f32
    %121 = vector.broadcast %cst_43 : f32 to vector<32x32xf32>
    %122 = arith.mulf %120, %121 : vector<32x32xf32>
    %cst_44 = arith.constant -1.000000e+30 : f32
    %123 = vector.broadcast %cst_44 : f32 to vector<32x32xf32>
    %124 = arith.select %44, %122, %123 : vector<32x32xi1>, vector<32x32xf32>
    %cst_45 = arith.constant dense<0xFF800000> : vector<32xf32>
    %125 = vector.multi_reduction <maximumf>, %124, %cst_45 [1] : vector<32x32xf32> to vector<32xf32>
    %126 = vector.shape_cast %125 : vector<32xf32> to vector<32x1xf32>
    %127 = vector.broadcast %126 : vector<32x1xf32> to vector<32x32xf32>
    %128 = arith.subf %124, %127 : vector<32x32xf32>
    %129 = math.exp %128 : vector<32x32xf32>
    %cst_46 = arith.constant dense<0.000000e+00> : vector<32xf32>
    %130 = vector.multi_reduction <add>, %129, %cst_46 [1] : vector<32x32xf32> to vector<32xf32>
    %131 = vector.shape_cast %130 : vector<32xf32> to vector<32x1xf32>
    %132 = vector.broadcast %131 : vector<32x1xf32> to vector<32x32xf32>
    %133 = arith.divf %129, %132 : vector<32x32xf32>
    %134 = arith.truncf %133 : vector<32x32xf32> to vector<32x32xbf16>
    %cst_47 = arith.constant dense<0.000000e+00> : vector<32x8xf32>
    %135 = tpu.matmul %134, %119, %cst_47 {dimension_numbers = #tpu.dot_dimension_numbers<[1], [0], [0], [1], [0, 0, 1, 1], [], []>} : vector<32x32xbf16>, vector<32x8xbf16>, vector<32x8xf32> -> vector<32x8xf32>
    %136 = vector.extract_strided_slice %50 {offsets = [16, 0], sizes = [8, 32], strides = [1, 1]} : vector<32x32xf32> to vector<8x32xf32>
    %137 = arith.truncf %135 : vector<32x8xf32> to vector<32x8xbf16>
    %138 = arith.truncf %136 : vector<8x32xf32> to vector<8x32xbf16>
    %cst_48 = arith.constant dense<0.000000e+00> : vector<32x32xf32>
    %139 = tpu.matmul %137, %138, %cst_48 {dimension_numbers = #tpu.dot_dimension_numbers<[1], [0], [0], [1], [0, 0, 1, 1], [], []>} : vector<32x8xbf16>, vector<8x32xbf16>, vector<32x32xf32> -> vector<32x32xf32>
    %140 = arith.addf %113, %139 : vector<32x32xf32>
    %141 = vector.extract_strided_slice %58 {offsets = [0, 24], sizes = [32, 8], strides = [1, 1]} : vector<32x32xf32> to vector<32x8xf32>
    %142 = arith.truncf %141 : vector<32x8xf32> to vector<32x8xbf16>
    %143 = vector.extract_strided_slice %59 {offsets = [0, 24], sizes = [32, 8], strides = [1, 1]} : vector<32x32xf32> to vector<32x8xf32>
    %144 = arith.truncf %143 : vector<32x8xf32> to vector<32x8xbf16>
    %145 = vector.extract_strided_slice %60 {offsets = [0, 24], sizes = [32, 8], strides = [1, 1]} : vector<32x32xf32> to vector<32x8xf32>
    %146 = arith.truncf %145 : vector<32x8xf32> to vector<32x8xbf16>
    %cst_49 = arith.constant dense<0.000000e+00> : vector<32x32xf32>
    %147 = tpu.matmul %142, %144, %cst_49 {dimension_numbers = #tpu.dot_dimension_numbers<[1], [1], [0], [0], [0, 0, 1, 0], [], []>} : vector<32x8xbf16>, vector<32x8xbf16>, vector<32x32xf32> -> vector<32x32xf32>
    %cst_50 = arith.constant 0.353553385 : f32
    %148 = vector.broadcast %cst_50 : f32 to vector<32x32xf32>
    %149 = arith.mulf %147, %148 : vector<32x32xf32>
    %cst_51 = arith.constant -1.000000e+30 : f32
    %150 = vector.broadcast %cst_51 : f32 to vector<32x32xf32>
    %151 = arith.select %44, %149, %150 : vector<32x32xi1>, vector<32x32xf32>
    %cst_52 = arith.constant dense<0xFF800000> : vector<32xf32>
    %152 = vector.multi_reduction <maximumf>, %151, %cst_52 [1] : vector<32x32xf32> to vector<32xf32>
    %153 = vector.shape_cast %152 : vector<32xf32> to vector<32x1xf32>
    %154 = vector.broadcast %153 : vector<32x1xf32> to vector<32x32xf32>
    %155 = arith.subf %151, %154 : vector<32x32xf32>
    %156 = math.exp %155 : vector<32x32xf32>
    %cst_53 = arith.constant dense<0.000000e+00> : vector<32xf32>
    %157 = vector.multi_reduction <add>, %156, %cst_53 [1] : vector<32x32xf32> to vector<32xf32>
    %158 = vector.shape_cast %157 : vector<32xf32> to vector<32x1xf32>
    %159 = vector.broadcast %158 : vector<32x1xf32> to vector<32x32xf32>
    %160 = arith.divf %156, %159 : vector<32x32xf32>
    %161 = arith.truncf %160 : vector<32x32xf32> to vector<32x32xbf16>
    %cst_54 = arith.constant dense<0.000000e+00> : vector<32x8xf32>
    %162 = tpu.matmul %161, %146, %cst_54 {dimension_numbers = #tpu.dot_dimension_numbers<[1], [0], [0], [1], [0, 0, 1, 1], [], []>} : vector<32x32xbf16>, vector<32x8xbf16>, vector<32x8xf32> -> vector<32x8xf32>
    %163 = vector.extract_strided_slice %50 {offsets = [24, 0], sizes = [8, 32], strides = [1, 1]} : vector<32x32xf32> to vector<8x32xf32>
    %164 = arith.truncf %162 : vector<32x8xf32> to vector<32x8xbf16>
    %165 = arith.truncf %163 : vector<8x32xf32> to vector<8x32xbf16>
    %cst_55 = arith.constant dense<0.000000e+00> : vector<32x32xf32>
    %166 = tpu.matmul %164, %165, %cst_55 {dimension_numbers = #tpu.dot_dimension_numbers<[1], [0], [0], [1], [0, 0, 1, 1], [], []>} : vector<32x8xbf16>, vector<8x32xbf16>, vector<32x32xf32> -> vector<32x32xf32>
    %167 = arith.addf %140, %166 : vector<32x32xf32>
    %168 = vector.broadcast %52 : vector<1x32xf32> to vector<32x32xf32>
    %169 = arith.addf %167, %168 : vector<32x32xf32>
    %170 = arith.addf %9, %169 : vector<32x32xf32>
    %c0_56 = arith.constant 0 : index
    %c0_57 = arith.constant 0 : index
    %c0_58 = arith.constant 0 : index
    %171 = vector.load %arg7[%c0_56, %c0_57, %c0_58] : memref<2x1x32xf32, #tpu.memory_space<vmem>>, vector<1x1x32xf32>
    %172 = vector.shape_cast %171 : vector<1x1x32xf32> to vector<1x32xf32>
    %c0_59 = arith.constant 0 : index
    %c0_60 = arith.constant 0 : index
    %c0_61 = arith.constant 0 : index
    %173 = vector.load %arg8[%c0_59, %c0_60, %c0_61] : memref<2x1x32xf32, #tpu.memory_space<vmem>>, vector<1x1x32xf32>
    %174 = vector.shape_cast %173 : vector<1x1x32xf32> to vector<1x32xf32>
    %cst_62 = arith.constant dense<0.000000e+00> : vector<32xf32>
    %175 = vector.multi_reduction <add>, %170, %cst_62 [1] : vector<32x32xf32> to vector<32xf32>
    %176 = vector.shape_cast %175 : vector<32xf32> to vector<32x1xf32>
    %cst_63 = arith.constant 3.200000e+01 : f32
    %177 = vector.broadcast %cst_63 : f32 to vector<32x1xf32>
    %178 = arith.divf %176, %177 : vector<32x1xf32>
    %179 = vector.broadcast %178 : vector<32x1xf32> to vector<32x32xf32>
    %180 = arith.subf %170, %179 : vector<32x32xf32>
    %181 = arith.mulf %180, %180 : vector<32x32xf32>
    %cst_64 = arith.constant dense<0.000000e+00> : vector<32xf32>
    %182 = vector.multi_reduction <add>, %181, %cst_64 [1] : vector<32x32xf32> to vector<32xf32>
    %183 = vector.shape_cast %182 : vector<32xf32> to vector<32x1xf32>
    %cst_65 = arith.constant 3.200000e+01 : f32
    %184 = vector.broadcast %cst_65 : f32 to vector<32x1xf32>
    %185 = arith.divf %183, %184 : vector<32x1xf32>
    %186 = vector.broadcast %178 : vector<32x1xf32> to vector<32x32xf32>
    %187 = arith.subf %170, %186 : vector<32x32xf32>
    %cst_66 = arith.constant 9.99999974E-6 : f32
    %188 = vector.broadcast %cst_66 : f32 to vector<32x1xf32>
    %189 = arith.addf %185, %188 : vector<32x1xf32>
    %190 = math.rsqrt %189 : vector<32x1xf32>
    %191 = vector.broadcast %190 : vector<32x1xf32> to vector<32x32xf32>
    %192 = arith.mulf %187, %191 : vector<32x32xf32>
    %193 = vector.broadcast %172 : vector<1x32xf32> to vector<32x32xf32>
    %194 = arith.mulf %192, %193 : vector<32x32xf32>
    %195 = vector.broadcast %174 : vector<1x32xf32> to vector<32x32xf32>
    %196 = arith.addf %194, %195 : vector<32x32xf32>
    %c0_67 = arith.constant 0 : index
    %c0_68 = arith.constant 0 : index
    %c0_69 = arith.constant 0 : index
    %197 = vector.load %arg9[%c0_67, %c0_68, %c0_69] : memref<2x32x64xf32, #tpu.memory_space<vmem>>, vector<1x32x64xf32>
    %198 = vector.shape_cast %197 : vector<1x32x64xf32> to vector<32x64xf32>
    %199 = arith.truncf %196 : vector<32x32xf32> to vector<32x32xbf16>
    %200 = arith.truncf %198 : vector<32x64xf32> to vector<32x64xbf16>
    %cst_70 = arith.constant dense<0.000000e+00> : vector<32x64xf32>
    %201 = tpu.matmul %199, %200, %cst_70 {dimension_numbers = #tpu.dot_dimension_numbers<[1], [0], [0], [1], [0, 0, 1, 1], [], []>} : vector<32x32xbf16>, vector<32x64xbf16>, vector<32x64xf32> -> vector<32x64xf32>
    %c0_71 = arith.constant 0 : index
    %c0_72 = arith.constant 0 : index
    %c0_73 = arith.constant 0 : index
    %202 = vector.load %arg10[%c0_71, %c0_72, %c0_73] : memref<2x1x64xf32, #tpu.memory_space<vmem>>, vector<1x1x64xf32>
    %203 = vector.shape_cast %202 : vector<1x1x64xf32> to vector<1x64xf32>
    %204 = vector.broadcast %203 : vector<1x64xf32> to vector<32x64xf32>
    %205 = arith.addf %201, %204 : vector<32x64xf32>
    %cst_74 = arith.constant 0.000000e+00 : f32
    %206 = vector.broadcast %cst_74 : f32 to vector<32x64xf32>
    %207 = arith.maximumf %205, %206 : vector<32x64xf32>
    %c0_75 = arith.constant 0 : index
    %c0_76 = arith.constant 0 : index
    %c0_77 = arith.constant 0 : index
    %208 = vector.load %arg11[%c0_75, %c0_76, %c0_77] : memref<2x64x32xf32, #tpu.memory_space<vmem>>, vector<1x64x32xf32>
    %209 = vector.shape_cast %208 : vector<1x64x32xf32> to vector<64x32xf32>
    %210 = arith.truncf %207 : vector<32x64xf32> to vector<32x64xbf16>
    %211 = arith.truncf %209 : vector<64x32xf32> to vector<64x32xbf16>
    %cst_78 = arith.constant dense<0.000000e+00> : vector<32x32xf32>
    %212 = tpu.matmul %210, %211, %cst_78 {dimension_numbers = #tpu.dot_dimension_numbers<[1], [0], [0], [1], [0, 0, 1, 1], [], []>} : vector<32x64xbf16>, vector<64x32xbf16>, vector<32x32xf32> -> vector<32x32xf32>
    %c0_79 = arith.constant 0 : index
    %c0_80 = arith.constant 0 : index
    %c0_81 = arith.constant 0 : index
    %213 = vector.load %arg12[%c0_79, %c0_80, %c0_81] : memref<2x1x32xf32, #tpu.memory_space<vmem>>, vector<1x1x32xf32>
    %214 = vector.shape_cast %213 : vector<1x1x32xf32> to vector<1x32xf32>
    %215 = vector.broadcast %214 : vector<1x32xf32> to vector<32x32xf32>
    %216 = arith.addf %212, %215 : vector<32x32xf32>
    %217 = arith.addf %196, %216 : vector<32x32xf32>
    %c0_82 = arith.constant 0 : index
    %c0_83 = arith.constant 0 : index
    %c0_84 = arith.constant 0 : index
    %218 = vector.load %arg13[%c0_82, %c0_83, %c0_84] : memref<2x1x32xf32, #tpu.memory_space<vmem>>, vector<1x1x32xf32>
    %219 = vector.shape_cast %218 : vector<1x1x32xf32> to vector<1x32xf32>
    %c0_85 = arith.constant 0 : index
    %c0_86 = arith.constant 0 : index
    %c0_87 = arith.constant 0 : index
    %220 = vector.load %arg14[%c0_85, %c0_86, %c0_87] : memref<2x1x32xf32, #tpu.memory_space<vmem>>, vector<1x1x32xf32>
    %221 = vector.shape_cast %220 : vector<1x1x32xf32> to vector<1x32xf32>
    %cst_88 = arith.constant dense<0.000000e+00> : vector<32xf32>
    %222 = vector.multi_reduction <add>, %217, %cst_88 [1] : vector<32x32xf32> to vector<32xf32>
    %223 = vector.shape_cast %222 : vector<32xf32> to vector<32x1xf32>
    %cst_89 = arith.constant 3.200000e+01 : f32
    %224 = vector.broadcast %cst_89 : f32 to vector<32x1xf32>
    %225 = arith.divf %223, %224 : vector<32x1xf32>
    %226 = vector.broadcast %225 : vector<32x1xf32> to vector<32x32xf32>
    %227 = arith.subf %217, %226 : vector<32x32xf32>
    %228 = arith.mulf %227, %227 : vector<32x32xf32>
    %cst_90 = arith.constant dense<0.000000e+00> : vector<32xf32>
    %229 = vector.multi_reduction <add>, %228, %cst_90 [1] : vector<32x32xf32> to vector<32xf32>
    %230 = vector.shape_cast %229 : vector<32xf32> to vector<32x1xf32>
    %cst_91 = arith.constant 3.200000e+01 : f32
    %231 = vector.broadcast %cst_91 : f32 to vector<32x1xf32>
    %232 = arith.divf %230, %231 : vector<32x1xf32>
    %233 = vector.broadcast %225 : vector<32x1xf32> to vector<32x32xf32>
    %234 = arith.subf %217, %233 : vector<32x32xf32>
    %cst_92 = arith.constant 9.99999974E-6 : f32
    %235 = vector.broadcast %cst_92 : f32 to vector<32x1xf32>
    %236 = arith.addf %232, %235 : vector<32x1xf32>
    %237 = math.rsqrt %236 : vector<32x1xf32>
    %238 = vector.broadcast %237 : vector<32x1xf32> to vector<32x32xf32>
    %239 = arith.mulf %234, %238 : vector<32x32xf32>
    %240 = vector.broadcast %219 : vector<1x32xf32> to vector<32x32xf32>
    %241 = arith.mulf %239, %240 : vector<32x32xf32>
    %242 = vector.broadcast %221 : vector<1x32xf32> to vector<32x32xf32>
    %243 = arith.addf %241, %242 : vector<32x32xf32>
    %c1 = arith.constant 1 : index
    %c0_93 = arith.constant 0 : index
    %c0_94 = arith.constant 0 : index
    %244 = vector.load %arg3[%c1, %c0_93, %c0_94] : memref<2x32x96xf32, #tpu.memory_space<vmem>>, vector<1x32x96xf32>
    %245 = vector.shape_cast %244 : vector<1x32x96xf32> to vector<32x96xf32>
    %c1_95 = arith.constant 1 : index
    %c0_96 = arith.constant 0 : index
    %c0_97 = arith.constant 0 : index
    %246 = vector.load %arg4[%c1_95, %c0_96, %c0_97] : memref<2x1x96xf32, #tpu.memory_space<vmem>>, vector<1x1x96xf32>
    %247 = vector.shape_cast %246 : vector<1x1x96xf32> to vector<1x96xf32>
    %c1_98 = arith.constant 1 : index
    %c0_99 = arith.constant 0 : index
    %c0_100 = arith.constant 0 : index
    %248 = vector.load %arg5[%c1_98, %c0_99, %c0_100] : memref<2x32x32xf32, #tpu.memory_space<vmem>>, vector<1x32x32xf32>
    %249 = vector.shape_cast %248 : vector<1x32x32xf32> to vector<32x32xf32>
    %c1_101 = arith.constant 1 : index
    %c0_102 = arith.constant 0 : index
    %c0_103 = arith.constant 0 : index
    %250 = vector.load %arg6[%c1_101, %c0_102, %c0_103] : memref<2x1x32xf32, #tpu.memory_space<vmem>>, vector<1x1x32xf32>
    %251 = vector.shape_cast %250 : vector<1x1x32xf32> to vector<1x32xf32>
    %252 = arith.truncf %243 : vector<32x32xf32> to vector<32x32xbf16>
    %253 = arith.truncf %245 : vector<32x96xf32> to vector<32x96xbf16>
    %cst_104 = arith.constant dense<0.000000e+00> : vector<32x96xf32>
    %254 = tpu.matmul %252, %253, %cst_104 {dimension_numbers = #tpu.dot_dimension_numbers<[1], [0], [0], [1], [0, 0, 1, 1], [], []>} : vector<32x32xbf16>, vector<32x96xbf16>, vector<32x96xf32> -> vector<32x96xf32>
    %255 = vector.broadcast %247 : vector<1x96xf32> to vector<32x96xf32>
    %256 = arith.addf %254, %255 : vector<32x96xf32>
    %257 = vector.extract_strided_slice %256 {offsets = [0, 0], sizes = [32, 32], strides = [1, 1]} : vector<32x96xf32> to vector<32x32xf32>
    %258 = vector.extract_strided_slice %256 {offsets = [0, 32], sizes = [32, 32], strides = [1, 1]} : vector<32x96xf32> to vector<32x32xf32>
    %259 = vector.extract_strided_slice %256 {offsets = [0, 64], sizes = [32, 32], strides = [1, 1]} : vector<32x96xf32> to vector<32x32xf32>
    %260 = vector.extract_strided_slice %257 {offsets = [0, 0], sizes = [32, 8], strides = [1, 1]} : vector<32x32xf32> to vector<32x8xf32>
    %261 = arith.truncf %260 : vector<32x8xf32> to vector<32x8xbf16>
    %262 = vector.extract_strided_slice %258 {offsets = [0, 0], sizes = [32, 8], strides = [1, 1]} : vector<32x32xf32> to vector<32x8xf32>
    %263 = arith.truncf %262 : vector<32x8xf32> to vector<32x8xbf16>
    %264 = vector.extract_strided_slice %259 {offsets = [0, 0], sizes = [32, 8], strides = [1, 1]} : vector<32x32xf32> to vector<32x8xf32>
    %265 = arith.truncf %264 : vector<32x8xf32> to vector<32x8xbf16>
    %cst_105 = arith.constant dense<0.000000e+00> : vector<32x32xf32>
    %266 = tpu.matmul %261, %263, %cst_105 {dimension_numbers = #tpu.dot_dimension_numbers<[1], [1], [0], [0], [0, 0, 1, 0], [], []>} : vector<32x8xbf16>, vector<32x8xbf16>, vector<32x32xf32> -> vector<32x32xf32>
    %cst_106 = arith.constant 0.353553385 : f32
    %267 = vector.broadcast %cst_106 : f32 to vector<32x32xf32>
    %268 = arith.mulf %266, %267 : vector<32x32xf32>
    %cst_107 = arith.constant -1.000000e+30 : f32
    %269 = vector.broadcast %cst_107 : f32 to vector<32x32xf32>
    %270 = arith.select %44, %268, %269 : vector<32x32xi1>, vector<32x32xf32>
    %cst_108 = arith.constant dense<0xFF800000> : vector<32xf32>
    %271 = vector.multi_reduction <maximumf>, %270, %cst_108 [1] : vector<32x32xf32> to vector<32xf32>
    %272 = vector.shape_cast %271 : vector<32xf32> to vector<32x1xf32>
    %273 = vector.broadcast %272 : vector<32x1xf32> to vector<32x32xf32>
    %274 = arith.subf %270, %273 : vector<32x32xf32>
    %275 = math.exp %274 : vector<32x32xf32>
    %cst_109 = arith.constant dense<0.000000e+00> : vector<32xf32>
    %276 = vector.multi_reduction <add>, %275, %cst_109 [1] : vector<32x32xf32> to vector<32xf32>
    %277 = vector.shape_cast %276 : vector<32xf32> to vector<32x1xf32>
    %278 = vector.broadcast %277 : vector<32x1xf32> to vector<32x32xf32>
    %279 = arith.divf %275, %278 : vector<32x32xf32>
    %280 = arith.truncf %279 : vector<32x32xf32> to vector<32x32xbf16>
    %cst_110 = arith.constant dense<0.000000e+00> : vector<32x8xf32>
    %281 = tpu.matmul %280, %265, %cst_110 {dimension_numbers = #tpu.dot_dimension_numbers<[1], [0], [0], [1], [0, 0, 1, 1], [], []>} : vector<32x32xbf16>, vector<32x8xbf16>, vector<32x8xf32> -> vector<32x8xf32>
    %282 = vector.extract_strided_slice %249 {offsets = [0, 0], sizes = [8, 32], strides = [1, 1]} : vector<32x32xf32> to vector<8x32xf32>
    %283 = arith.truncf %281 : vector<32x8xf32> to vector<32x8xbf16>
    %284 = arith.truncf %282 : vector<8x32xf32> to vector<8x32xbf16>
    %cst_111 = arith.constant dense<0.000000e+00> : vector<32x32xf32>
    %285 = tpu.matmul %283, %284, %cst_111 {dimension_numbers = #tpu.dot_dimension_numbers<[1], [0], [0], [1], [0, 0, 1, 1], [], []>} : vector<32x8xbf16>, vector<8x32xbf16>, vector<32x32xf32> -> vector<32x32xf32>
    %286 = vector.extract_strided_slice %257 {offsets = [0, 8], sizes = [32, 8], strides = [1, 1]} : vector<32x32xf32> to vector<32x8xf32>
    %287 = arith.truncf %286 : vector<32x8xf32> to vector<32x8xbf16>
    %288 = vector.extract_strided_slice %258 {offsets = [0, 8], sizes = [32, 8], strides = [1, 1]} : vector<32x32xf32> to vector<32x8xf32>
    %289 = arith.truncf %288 : vector<32x8xf32> to vector<32x8xbf16>
    %290 = vector.extract_strided_slice %259 {offsets = [0, 8], sizes = [32, 8], strides = [1, 1]} : vector<32x32xf32> to vector<32x8xf32>
    %291 = arith.truncf %290 : vector<32x8xf32> to vector<32x8xbf16>
    %cst_112 = arith.constant dense<0.000000e+00> : vector<32x32xf32>
    %292 = tpu.matmul %287, %289, %cst_112 {dimension_numbers = #tpu.dot_dimension_numbers<[1], [1], [0], [0], [0, 0, 1, 0], [], []>} : vector<32x8xbf16>, vector<32x8xbf16>, vector<32x32xf32> -> vector<32x32xf32>
    %cst_113 = arith.constant 0.353553385 : f32
    %293 = vector.broadcast %cst_113 : f32 to vector<32x32xf32>
    %294 = arith.mulf %292, %293 : vector<32x32xf32>
    %cst_114 = arith.constant -1.000000e+30 : f32
    %295 = vector.broadcast %cst_114 : f32 to vector<32x32xf32>
    %296 = arith.select %44, %294, %295 : vector<32x32xi1>, vector<32x32xf32>
    %cst_115 = arith.constant dense<0xFF800000> : vector<32xf32>
    %297 = vector.multi_reduction <maximumf>, %296, %cst_115 [1] : vector<32x32xf32> to vector<32xf32>
    %298 = vector.shape_cast %297 : vector<32xf32> to vector<32x1xf32>
    %299 = vector.broadcast %298 : vector<32x1xf32> to vector<32x32xf32>
    %300 = arith.subf %296, %299 : vector<32x32xf32>
    %301 = math.exp %300 : vector<32x32xf32>
    %cst_116 = arith.constant dense<0.000000e+00> : vector<32xf32>
    %302 = vector.multi_reduction <add>, %301, %cst_116 [1] : vector<32x32xf32> to vector<32xf32>
    %303 = vector.shape_cast %302 : vector<32xf32> to vector<32x1xf32>
    %304 = vector.broadcast %303 : vector<32x1xf32> to vector<32x32xf32>
    %305 = arith.divf %301, %304 : vector<32x32xf32>
    %306 = arith.truncf %305 : vector<32x32xf32> to vector<32x32xbf16>
    %cst_117 = arith.constant dense<0.000000e+00> : vector<32x8xf32>
    %307 = tpu.matmul %306, %291, %cst_117 {dimension_numbers = #tpu.dot_dimension_numbers<[1], [0], [0], [1], [0, 0, 1, 1], [], []>} : vector<32x32xbf16>, vector<32x8xbf16>, vector<32x8xf32> -> vector<32x8xf32>
    %308 = vector.extract_strided_slice %249 {offsets = [8, 0], sizes = [8, 32], strides = [1, 1]} : vector<32x32xf32> to vector<8x32xf32>
    %309 = arith.truncf %307 : vector<32x8xf32> to vector<32x8xbf16>
    %310 = arith.truncf %308 : vector<8x32xf32> to vector<8x32xbf16>
    %cst_118 = arith.constant dense<0.000000e+00> : vector<32x32xf32>
    %311 = tpu.matmul %309, %310, %cst_118 {dimension_numbers = #tpu.dot_dimension_numbers<[1], [0], [0], [1], [0, 0, 1, 1], [], []>} : vector<32x8xbf16>, vector<8x32xbf16>, vector<32x32xf32> -> vector<32x32xf32>
    %312 = arith.addf %285, %311 : vector<32x32xf32>
    %313 = vector.extract_strided_slice %257 {offsets = [0, 16], sizes = [32, 8], strides = [1, 1]} : vector<32x32xf32> to vector<32x8xf32>
    %314 = arith.truncf %313 : vector<32x8xf32> to vector<32x8xbf16>
    %315 = vector.extract_strided_slice %258 {offsets = [0, 16], sizes = [32, 8], strides = [1, 1]} : vector<32x32xf32> to vector<32x8xf32>
    %316 = arith.truncf %315 : vector<32x8xf32> to vector<32x8xbf16>
    %317 = vector.extract_strided_slice %259 {offsets = [0, 16], sizes = [32, 8], strides = [1, 1]} : vector<32x32xf32> to vector<32x8xf32>
    %318 = arith.truncf %317 : vector<32x8xf32> to vector<32x8xbf16>
    %cst_119 = arith.constant dense<0.000000e+00> : vector<32x32xf32>
    %319 = tpu.matmul %314, %316, %cst_119 {dimension_numbers = #tpu.dot_dimension_numbers<[1], [1], [0], [0], [0, 0, 1, 0], [], []>} : vector<32x8xbf16>, vector<32x8xbf16>, vector<32x32xf32> -> vector<32x32xf32>
    %cst_120 = arith.constant 0.353553385 : f32
    %320 = vector.broadcast %cst_120 : f32 to vector<32x32xf32>
    %321 = arith.mulf %319, %320 : vector<32x32xf32>
    %cst_121 = arith.constant -1.000000e+30 : f32
    %322 = vector.broadcast %cst_121 : f32 to vector<32x32xf32>
    %323 = arith.select %44, %321, %322 : vector<32x32xi1>, vector<32x32xf32>
    %cst_122 = arith.constant dense<0xFF800000> : vector<32xf32>
    %324 = vector.multi_reduction <maximumf>, %323, %cst_122 [1] : vector<32x32xf32> to vector<32xf32>
    %325 = vector.shape_cast %324 : vector<32xf32> to vector<32x1xf32>
    %326 = vector.broadcast %325 : vector<32x1xf32> to vector<32x32xf32>
    %327 = arith.subf %323, %326 : vector<32x32xf32>
    %328 = math.exp %327 : vector<32x32xf32>
    %cst_123 = arith.constant dense<0.000000e+00> : vector<32xf32>
    %329 = vector.multi_reduction <add>, %328, %cst_123 [1] : vector<32x32xf32> to vector<32xf32>
    %330 = vector.shape_cast %329 : vector<32xf32> to vector<32x1xf32>
    %331 = vector.broadcast %330 : vector<32x1xf32> to vector<32x32xf32>
    %332 = arith.divf %328, %331 : vector<32x32xf32>
    %333 = arith.truncf %332 : vector<32x32xf32> to vector<32x32xbf16>
    %cst_124 = arith.constant dense<0.000000e+00> : vector<32x8xf32>
    %334 = tpu.matmul %333, %318, %cst_124 {dimension_numbers = #tpu.dot_dimension_numbers<[1], [0], [0], [1], [0, 0, 1, 1], [], []>} : vector<32x32xbf16>, vector<32x8xbf16>, vector<32x8xf32> -> vector<32x8xf32>
    %335 = vector.extract_strided_slice %249 {offsets = [16, 0], sizes = [8, 32], strides = [1, 1]} : vector<32x32xf32> to vector<8x32xf32>
    %336 = arith.truncf %334 : vector<32x8xf32> to vector<32x8xbf16>
    %337 = arith.truncf %335 : vector<8x32xf32> to vector<8x32xbf16>
    %cst_125 = arith.constant dense<0.000000e+00> : vector<32x32xf32>
    %338 = tpu.matmul %336, %337, %cst_125 {dimension_numbers = #tpu.dot_dimension_numbers<[1], [0], [0], [1], [0, 0, 1, 1], [], []>} : vector<32x8xbf16>, vector<8x32xbf16>, vector<32x32xf32> -> vector<32x32xf32>
    %339 = arith.addf %312, %338 : vector<32x32xf32>
    %340 = vector.extract_strided_slice %257 {offsets = [0, 24], sizes = [32, 8], strides = [1, 1]} : vector<32x32xf32> to vector<32x8xf32>
    %341 = arith.truncf %340 : vector<32x8xf32> to vector<32x8xbf16>
    %342 = vector.extract_strided_slice %258 {offsets = [0, 24], sizes = [32, 8], strides = [1, 1]} : vector<32x32xf32> to vector<32x8xf32>
    %343 = arith.truncf %342 : vector<32x8xf32> to vector<32x8xbf16>
    %344 = vector.extract_strided_slice %259 {offsets = [0, 24], sizes = [32, 8], strides = [1, 1]} : vector<32x32xf32> to vector<32x8xf32>
    %345 = arith.truncf %344 : vector<32x8xf32> to vector<32x8xbf16>
    %cst_126 = arith.constant dense<0.000000e+00> : vector<32x32xf32>
    %346 = tpu.matmul %341, %343, %cst_126 {dimension_numbers = #tpu.dot_dimension_numbers<[1], [1], [0], [0], [0, 0, 1, 0], [], []>} : vector<32x8xbf16>, vector<32x8xbf16>, vector<32x32xf32> -> vector<32x32xf32>
    %cst_127 = arith.constant 0.353553385 : f32
    %347 = vector.broadcast %cst_127 : f32 to vector<32x32xf32>
    %348 = arith.mulf %346, %347 : vector<32x32xf32>
    %cst_128 = arith.constant -1.000000e+30 : f32
    %349 = vector.broadcast %cst_128 : f32 to vector<32x32xf32>
    %350 = arith.select %44, %348, %349 : vector<32x32xi1>, vector<32x32xf32>
    %cst_129 = arith.constant dense<0xFF800000> : vector<32xf32>
    %351 = vector.multi_reduction <maximumf>, %350, %cst_129 [1] : vector<32x32xf32> to vector<32xf32>
    %352 = vector.shape_cast %351 : vector<32xf32> to vector<32x1xf32>
    %353 = vector.broadcast %352 : vector<32x1xf32> to vector<32x32xf32>
    %354 = arith.subf %350, %353 : vector<32x32xf32>
    %355 = math.exp %354 : vector<32x32xf32>
    %cst_130 = arith.constant dense<0.000000e+00> : vector<32xf32>
    %356 = vector.multi_reduction <add>, %355, %cst_130 [1] : vector<32x32xf32> to vector<32xf32>
    %357 = vector.shape_cast %356 : vector<32xf32> to vector<32x1xf32>
    %358 = vector.broadcast %357 : vector<32x1xf32> to vector<32x32xf32>
    %359 = arith.divf %355, %358 : vector<32x32xf32>
    %360 = arith.truncf %359 : vector<32x32xf32> to vector<32x32xbf16>
    %cst_131 = arith.constant dense<0.000000e+00> : vector<32x8xf32>
    %361 = tpu.matmul %360, %345, %cst_131 {dimension_numbers = #tpu.dot_dimension_numbers<[1], [0], [0], [1], [0, 0, 1, 1], [], []>} : vector<32x32xbf16>, vector<32x8xbf16>, vector<32x8xf32> -> vector<32x8xf32>
    %362 = vector.extract_strided_slice %249 {offsets = [24, 0], sizes = [8, 32], strides = [1, 1]} : vector<32x32xf32> to vector<8x32xf32>
    %363 = arith.truncf %361 : vector<32x8xf32> to vector<32x8xbf16>
    %364 = arith.truncf %362 : vector<8x32xf32> to vector<8x32xbf16>
    %cst_132 = arith.constant dense<0.000000e+00> : vector<32x32xf32>
    %365 = tpu.matmul %363, %364, %cst_132 {dimension_numbers = #tpu.dot_dimension_numbers<[1], [0], [0], [1], [0, 0, 1, 1], [], []>} : vector<32x8xbf16>, vector<8x32xbf16>, vector<32x32xf32> -> vector<32x32xf32>
    %366 = arith.addf %339, %365 : vector<32x32xf32>
    %367 = vector.broadcast %251 : vector<1x32xf32> to vector<32x32xf32>
    %368 = arith.addf %366, %367 : vector<32x32xf32>
    %369 = arith.addf %243, %368 : vector<32x32xf32>
    %c1_133 = arith.constant 1 : index
    %c0_134 = arith.constant 0 : index
    %c0_135 = arith.constant 0 : index
    %370 = vector.load %arg7[%c1_133, %c0_134, %c0_135] : memref<2x1x32xf32, #tpu.memory_space<vmem>>, vector<1x1x32xf32>
    %371 = vector.shape_cast %370 : vector<1x1x32xf32> to vector<1x32xf32>
    %c1_136 = arith.constant 1 : index
    %c0_137 = arith.constant 0 : index
    %c0_138 = arith.constant 0 : index
    %372 = vector.load %arg8[%c1_136, %c0_137, %c0_138] : memref<2x1x32xf32, #tpu.memory_space<vmem>>, vector<1x1x32xf32>
    %373 = vector.shape_cast %372 : vector<1x1x32xf32> to vector<1x32xf32>
    %cst_139 = arith.constant dense<0.000000e+00> : vector<32xf32>
    %374 = vector.multi_reduction <add>, %369, %cst_139 [1] : vector<32x32xf32> to vector<32xf32>
    %375 = vector.shape_cast %374 : vector<32xf32> to vector<32x1xf32>
    %cst_140 = arith.constant 3.200000e+01 : f32
    %376 = vector.broadcast %cst_140 : f32 to vector<32x1xf32>
    %377 = arith.divf %375, %376 : vector<32x1xf32>
    %378 = vector.broadcast %377 : vector<32x1xf32> to vector<32x32xf32>
    %379 = arith.subf %369, %378 : vector<32x32xf32>
    %380 = arith.mulf %379, %379 : vector<32x32xf32>
    %cst_141 = arith.constant dense<0.000000e+00> : vector<32xf32>
    %381 = vector.multi_reduction <add>, %380, %cst_141 [1] : vector<32x32xf32> to vector<32xf32>
    %382 = vector.shape_cast %381 : vector<32xf32> to vector<32x1xf32>
    %cst_142 = arith.constant 3.200000e+01 : f32
    %383 = vector.broadcast %cst_142 : f32 to vector<32x1xf32>
    %384 = arith.divf %382, %383 : vector<32x1xf32>
    %385 = vector.broadcast %377 : vector<32x1xf32> to vector<32x32xf32>
    %386 = arith.subf %369, %385 : vector<32x32xf32>
    %cst_143 = arith.constant 9.99999974E-6 : f32
    %387 = vector.broadcast %cst_143 : f32 to vector<32x1xf32>
    %388 = arith.addf %384, %387 : vector<32x1xf32>
    %389 = math.rsqrt %388 : vector<32x1xf32>
    %390 = vector.broadcast %389 : vector<32x1xf32> to vector<32x32xf32>
    %391 = arith.mulf %386, %390 : vector<32x32xf32>
    %392 = vector.broadcast %371 : vector<1x32xf32> to vector<32x32xf32>
    %393 = arith.mulf %391, %392 : vector<32x32xf32>
    %394 = vector.broadcast %373 : vector<1x32xf32> to vector<32x32xf32>
    %395 = arith.addf %393, %394 : vector<32x32xf32>
    %c1_144 = arith.constant 1 : index
    %c0_145 = arith.constant 0 : index
    %c0_146 = arith.constant 0 : index
    %396 = vector.load %arg9[%c1_144, %c0_145, %c0_146] : memref<2x32x64xf32, #tpu.memory_space<vmem>>, vector<1x32x64xf32>
    %397 = vector.shape_cast %396 : vector<1x32x64xf32> to vector<32x64xf32>
    %398 = arith.truncf %395 : vector<32x32xf32> to vector<32x32xbf16>
    %399 = arith.truncf %397 : vector<32x64xf32> to vector<32x64xbf16>
    %cst_147 = arith.constant dense<0.000000e+00> : vector<32x64xf32>
    %400 = tpu.matmul %398, %399, %cst_147 {dimension_numbers = #tpu.dot_dimension_numbers<[1], [0], [0], [1], [0, 0, 1, 1], [], []>} : vector<32x32xbf16>, vector<32x64xbf16>, vector<32x64xf32> -> vector<32x64xf32>
    %c1_148 = arith.constant 1 : index
    %c0_149 = arith.constant 0 : index
    %c0_150 = arith.constant 0 : index
    %401 = vector.load %arg10[%c1_148, %c0_149, %c0_150] : memref<2x1x64xf32, #tpu.memory_space<vmem>>, vector<1x1x64xf32>
    %402 = vector.shape_cast %401 : vector<1x1x64xf32> to vector<1x64xf32>
    %403 = vector.broadcast %402 : vector<1x64xf32> to vector<32x64xf32>
    %404 = arith.addf %400, %403 : vector<32x64xf32>
    %cst_151 = arith.constant 0.000000e+00 : f32
    %405 = vector.broadcast %cst_151 : f32 to vector<32x64xf32>
    %406 = arith.maximumf %404, %405 : vector<32x64xf32>
    %c1_152 = arith.constant 1 : index
    %c0_153 = arith.constant 0 : index
    %c0_154 = arith.constant 0 : index
    %407 = vector.load %arg11[%c1_152, %c0_153, %c0_154] : memref<2x64x32xf32, #tpu.memory_space<vmem>>, vector<1x64x32xf32>
    %408 = vector.shape_cast %407 : vector<1x64x32xf32> to vector<64x32xf32>
    %409 = arith.truncf %406 : vector<32x64xf32> to vector<32x64xbf16>
    %410 = arith.truncf %408 : vector<64x32xf32> to vector<64x32xbf16>
    %cst_155 = arith.constant dense<0.000000e+00> : vector<32x32xf32>
    %411 = tpu.matmul %409, %410, %cst_155 {dimension_numbers = #tpu.dot_dimension_numbers<[1], [0], [0], [1], [0, 0, 1, 1], [], []>} : vector<32x64xbf16>, vector<64x32xbf16>, vector<32x32xf32> -> vector<32x32xf32>
    %c1_156 = arith.constant 1 : index
    %c0_157 = arith.constant 0 : index
    %c0_158 = arith.constant 0 : index
    %412 = vector.load %arg12[%c1_156, %c0_157, %c0_158] : memref<2x1x32xf32, #tpu.memory_space<vmem>>, vector<1x1x32xf32>
    %413 = vector.shape_cast %412 : vector<1x1x32xf32> to vector<1x32xf32>
    %414 = vector.broadcast %413 : vector<1x32xf32> to vector<32x32xf32>
    %415 = arith.addf %411, %414 : vector<32x32xf32>
    %416 = arith.addf %395, %415 : vector<32x32xf32>
    %c1_159 = arith.constant 1 : index
    %c0_160 = arith.constant 0 : index
    %c0_161 = arith.constant 0 : index
    %417 = vector.load %arg13[%c1_159, %c0_160, %c0_161] : memref<2x1x32xf32, #tpu.memory_space<vmem>>, vector<1x1x32xf32>
    %418 = vector.shape_cast %417 : vector<1x1x32xf32> to vector<1x32xf32>
    %c1_162 = arith.constant 1 : index
    %c0_163 = arith.constant 0 : index
    %c0_164 = arith.constant 0 : index
    %419 = vector.load %arg14[%c1_162, %c0_163, %c0_164] : memref<2x1x32xf32, #tpu.memory_space<vmem>>, vector<1x1x32xf32>
    %420 = vector.shape_cast %419 : vector<1x1x32xf32> to vector<1x32xf32>
    %cst_165 = arith.constant dense<0.000000e+00> : vector<32xf32>
    %421 = vector.multi_reduction <add>, %416, %cst_165 [1] : vector<32x32xf32> to vector<32xf32>
    %422 = vector.shape_cast %421 : vector<32xf32> to vector<32x1xf32>
    %cst_166 = arith.constant 3.200000e+01 : f32
    %423 = vector.broadcast %cst_166 : f32 to vector<32x1xf32>
    %424 = arith.divf %422, %423 : vector<32x1xf32>
    %425 = vector.broadcast %424 : vector<32x1xf32> to vector<32x32xf32>
    %426 = arith.subf %416, %425 : vector<32x32xf32>
    %427 = arith.mulf %426, %426 : vector<32x32xf32>
    %cst_167 = arith.constant dense<0.000000e+00> : vector<32xf32>
    %428 = vector.multi_reduction <add>, %427, %cst_167 [1] : vector<32x32xf32> to vector<32xf32>
    %429 = vector.shape_cast %428 : vector<32xf32> to vector<32x1xf32>
    %cst_168 = arith.constant 3.200000e+01 : f32
    %430 = vector.broadcast %cst_168 : f32 to vector<32x1xf32>
    %431 = arith.divf %429, %430 : vector<32x1xf32>
    %432 = vector.broadcast %424 : vector<32x1xf32> to vector<32x32xf32>
    %433 = arith.subf %416, %432 : vector<32x32xf32>
    %cst_169 = arith.constant 9.99999974E-6 : f32
    %434 = vector.broadcast %cst_169 : f32 to vector<32x1xf32>
    %435 = arith.addf %431, %434 : vector<32x1xf32>
    %436 = math.rsqrt %435 : vector<32x1xf32>
    %437 = vector.broadcast %436 : vector<32x1xf32> to vector<32x32xf32>
    %438 = arith.mulf %433, %437 : vector<32x32xf32>
    %439 = vector.broadcast %418 : vector<1x32xf32> to vector<32x32xf32>
    %440 = arith.mulf %438, %439 : vector<32x32xf32>
    %441 = vector.broadcast %420 : vector<1x32xf32> to vector<32x32xf32>
    %442 = arith.addf %440, %441 : vector<32x32xf32>
    %c0_170 = arith.constant 0 : index
    %c0_171 = arith.constant 0 : index
    %443 = vector.load %arg15[%c0_170, %c0_171] : memref<1x32xf32, #tpu.memory_space<vmem>>, vector<1x32xf32>
    %c0_172 = arith.constant 0 : index
    %c0_173 = arith.constant 0 : index
    %444 = vector.load %arg16[%c0_172, %c0_173] : memref<1x32xf32, #tpu.memory_space<vmem>>, vector<1x32xf32>
    %cst_174 = arith.constant dense<0.000000e+00> : vector<32xf32>
    %445 = vector.multi_reduction <add>, %442, %cst_174 [1] : vector<32x32xf32> to vector<32xf32>
    %446 = vector.shape_cast %445 : vector<32xf32> to vector<32x1xf32>
    %cst_175 = arith.constant 3.200000e+01 : f32
    %447 = vector.broadcast %cst_175 : f32 to vector<32x1xf32>
    %448 = arith.divf %446, %447 : vector<32x1xf32>
    %449 = vector.broadcast %448 : vector<32x1xf32> to vector<32x32xf32>
    %450 = arith.subf %442, %449 : vector<32x32xf32>
    %451 = arith.mulf %450, %450 : vector<32x32xf32>
    %cst_176 = arith.constant dense<0.000000e+00> : vector<32xf32>
    %452 = vector.multi_reduction <add>, %451, %cst_176 [1] : vector<32x32xf32> to vector<32xf32>
    %453 = vector.shape_cast %452 : vector<32xf32> to vector<32x1xf32>
    %cst_177 = arith.constant 3.200000e+01 : f32
    %454 = vector.broadcast %cst_177 : f32 to vector<32x1xf32>
    %455 = arith.divf %453, %454 : vector<32x1xf32>
    %456 = vector.broadcast %448 : vector<32x1xf32> to vector<32x32xf32>
    %457 = arith.subf %442, %456 : vector<32x32xf32>
    %cst_178 = arith.constant 9.99999974E-6 : f32
    %458 = vector.broadcast %cst_178 : f32 to vector<32x1xf32>
    %459 = arith.addf %455, %458 : vector<32x1xf32>
    %460 = math.rsqrt %459 : vector<32x1xf32>
    %461 = vector.broadcast %460 : vector<32x1xf32> to vector<32x32xf32>
    %462 = arith.mulf %457, %461 : vector<32x32xf32>
    %463 = vector.broadcast %443 : vector<1x32xf32> to vector<32x32xf32>
    %464 = arith.mulf %462, %463 : vector<32x32xf32>
    %465 = vector.broadcast %444 : vector<1x32xf32> to vector<32x32xf32>
    %466 = arith.addf %464, %465 : vector<32x32xf32>
    %cst_179 = arith.constant 0.000000e+00 : f32
    %467 = vector.broadcast %cst_179 : f32 to vector<32x32xf32>
    %468 = arith.maximumf %466, %467 : vector<32x32xf32>
    %469 = tpu.iota {dimensions = array<i32: 1>} : vector<8x32xi32>
    %470 = tpu.iota {dimensions = array<i32: 0>} : vector<8x32xi32>
    %c4_i32_180 = arith.constant 4 : i32
    %471 = vector.broadcast %c4_i32_180 : i32 to vector<8x32xi32>
    %472 = arith.muli %470, %471 : vector<8x32xi32>
    %c0_i32_181 = arith.constant 0 : i32
    %473 = vector.broadcast %c0_i32_181 : i32 to vector<8x32xi32>
    %474 = arith.addi %472, %473 : vector<8x32xi32>
    %475 = arith.cmpi eq, %469, %474 : vector<8x32xi32>
    %476 = arith.extui %475 : vector<8x32xi1> to vector<8x32xi32>
    %477 = arith.sitofp %476 : vector<8x32xi32> to vector<8x32xf32>
    %478 = arith.truncf %477 : vector<8x32xf32> to vector<8x32xbf16>
    %479 = arith.truncf %468 : vector<32x32xf32> to vector<32x32xbf16>
    %cst_182 = arith.constant dense<0.000000e+00> : vector<8x32xf32>
    %480 = tpu.matmul %478, %479, %cst_182 {dimension_numbers = #tpu.dot_dimension_numbers<[1], [0], [0], [1], [0, 0, 1, 1], [], []>} : vector<8x32xbf16>, vector<32x32xbf16>, vector<8x32xf32> -> vector<8x32xf32>
    %c4_i32_183 = arith.constant 4 : i32
    %481 = vector.broadcast %c4_i32_183 : i32 to vector<8x32xi32>
    %482 = arith.muli %470, %481 : vector<8x32xi32>
    %c1_i32_184 = arith.constant 1 : i32
    %483 = vector.broadcast %c1_i32_184 : i32 to vector<8x32xi32>
    %484 = arith.addi %482, %483 : vector<8x32xi32>
    %485 = arith.cmpi eq, %469, %484 : vector<8x32xi32>
    %486 = arith.extui %485 : vector<8x32xi1> to vector<8x32xi32>
    %487 = arith.sitofp %486 : vector<8x32xi32> to vector<8x32xf32>
    %488 = arith.truncf %487 : vector<8x32xf32> to vector<8x32xbf16>
    %489 = arith.truncf %468 : vector<32x32xf32> to vector<32x32xbf16>
    %cst_185 = arith.constant dense<0.000000e+00> : vector<8x32xf32>
    %490 = tpu.matmul %488, %489, %cst_185 {dimension_numbers = #tpu.dot_dimension_numbers<[1], [0], [0], [1], [0, 0, 1, 1], [], []>} : vector<8x32xbf16>, vector<32x32xbf16>, vector<8x32xf32> -> vector<8x32xf32>
    %c4_i32_186 = arith.constant 4 : i32
    %491 = vector.broadcast %c4_i32_186 : i32 to vector<8x32xi32>
    %492 = arith.muli %470, %491 : vector<8x32xi32>
    %c2_i32 = arith.constant 2 : i32
    %493 = vector.broadcast %c2_i32 : i32 to vector<8x32xi32>
    %494 = arith.addi %492, %493 : vector<8x32xi32>
    %495 = arith.cmpi eq, %469, %494 : vector<8x32xi32>
    %496 = arith.extui %495 : vector<8x32xi1> to vector<8x32xi32>
    %497 = arith.sitofp %496 : vector<8x32xi32> to vector<8x32xf32>
    %498 = arith.truncf %497 : vector<8x32xf32> to vector<8x32xbf16>
    %499 = arith.truncf %468 : vector<32x32xf32> to vector<32x32xbf16>
    %cst_187 = arith.constant dense<0.000000e+00> : vector<8x32xf32>
    %500 = tpu.matmul %498, %499, %cst_187 {dimension_numbers = #tpu.dot_dimension_numbers<[1], [0], [0], [1], [0, 0, 1, 1], [], []>} : vector<8x32xbf16>, vector<32x32xbf16>, vector<8x32xf32> -> vector<8x32xf32>
    %c0_188 = arith.constant 0 : index
    %c0_189 = arith.constant 0 : index
    %501 = vector.load %arg19[%c0_188, %c0_189] : memref<32x6xf32, #tpu.memory_space<vmem>>, vector<32x6xf32>
    %502 = arith.truncf %480 : vector<8x32xf32> to vector<8x32xbf16>
    %503 = arith.truncf %501 : vector<32x6xf32> to vector<32x6xbf16>
    %cst_190 = arith.constant dense<0.000000e+00> : vector<8x6xf32>
    %504 = tpu.matmul %502, %503, %cst_190 {dimension_numbers = #tpu.dot_dimension_numbers<[1], [0], [0], [1], [0, 0, 1, 1], [], []>} : vector<8x32xbf16>, vector<32x6xbf16>, vector<8x6xf32> -> vector<8x6xf32>
    %c0_191 = arith.constant 0 : index
    %c0_192 = arith.constant 0 : index
    %505 = vector.load %arg20[%c0_191, %c0_192] : memref<1x6xf32, #tpu.memory_space<vmem>>, vector<1x6xf32>
    %506 = vector.broadcast %505 : vector<1x6xf32> to vector<8x6xf32>
    %507 = arith.addf %504, %506 : vector<8x6xf32>
    %c0_193 = arith.constant 0 : index
    %c0_194 = arith.constant 0 : index
    %508 = vector.load %arg21[%c0_193, %c0_194] : memref<32x20xf32, #tpu.memory_space<vmem>>, vector<32x20xf32>
    %509 = arith.truncf %490 : vector<8x32xf32> to vector<8x32xbf16>
    %510 = arith.truncf %508 : vector<32x20xf32> to vector<32x20xbf16>
    %cst_195 = arith.constant dense<0.000000e+00> : vector<8x20xf32>
    %511 = tpu.matmul %509, %510, %cst_195 {dimension_numbers = #tpu.dot_dimension_numbers<[1], [0], [0], [1], [0, 0, 1, 1], [], []>} : vector<8x32xbf16>, vector<32x20xbf16>, vector<8x20xf32> -> vector<8x20xf32>
    %c0_196 = arith.constant 0 : index
    %c0_197 = arith.constant 0 : index
    %512 = vector.load %arg22[%c0_196, %c0_197] : memref<1x20xf32, #tpu.memory_space<vmem>>, vector<1x20xf32>
    %513 = vector.broadcast %512 : vector<1x20xf32> to vector<8x20xf32>
    %514 = arith.addf %511, %513 : vector<8x20xf32>
    %c0_198 = arith.constant 0 : index
    %c0_199 = arith.constant 0 : index
    %515 = vector.load %arg17[%c0_198, %c0_199] : memref<32x52xf32, #tpu.memory_space<vmem>>, vector<32x52xf32>
    %516 = arith.truncf %500 : vector<8x32xf32> to vector<8x32xbf16>
    %517 = arith.truncf %515 : vector<32x52xf32> to vector<32x52xbf16>
    %cst_200 = arith.constant dense<0.000000e+00> : vector<8x52xf32>
    %518 = tpu.matmul %516, %517, %cst_200 {dimension_numbers = #tpu.dot_dimension_numbers<[1], [0], [0], [1], [0, 0, 1, 1], [], []>} : vector<8x32xbf16>, vector<32x52xbf16>, vector<8x52xf32> -> vector<8x52xf32>
    %c0_201 = arith.constant 0 : index
    %c0_202 = arith.constant 0 : index
    %519 = vector.load %arg18[%c0_201, %c0_202] : memref<1x52xf32, #tpu.memory_space<vmem>>, vector<1x52xf32>
    %520 = vector.broadcast %519 : vector<1x52xf32> to vector<8x52xf32>
    %521 = arith.addf %518, %520 : vector<8x52xf32>
    %cst_203 = arith.constant 0.000000e+00 : f32
    %522 = vector.broadcast %cst_203 : f32 to vector<8x128xf32>
    %c0_204 = arith.constant 0 : index
    %c0_205 = arith.constant 0 : index
    %523 = vector.load %arg23[%c0_204, %c0_205] : memref<8x128xf32, #tpu.memory_space<vmem>>, vector<8x128xf32>
    tpu.vector_store %arg23[%c0_204, %c0_205], %522 {strides = array<i32>} : memref<8x128xf32, #tpu.memory_space<vmem>>, vector<8x128xf32>,
    %cst_206 = arith.constant dense<0xFF800000> : vector<8xf32>
    %524 = vector.multi_reduction <maximumf>, %521, %cst_206 [1] : vector<8x52xf32> to vector<8xf32>
    %525 = vector.shape_cast %524 : vector<8xf32> to vector<8x1xf32>
    %526 = vector.broadcast %525 : vector<8x1xf32> to vector<8x52xf32>
    %527 = arith.subf %521, %526 : vector<8x52xf32>
    %528 = math.exp %527 : vector<8x52xf32>
    %cst_207 = arith.constant dense<0.000000e+00> : vector<8xf32>
    %529 = vector.multi_reduction <add>, %528, %cst_207 [1] : vector<8x52xf32> to vector<8xf32>
    %530 = vector.shape_cast %529 : vector<8xf32> to vector<8x1xf32>
    %531 = math.log %530 : vector<8x1xf32>
    %532 = vector.broadcast %531 : vector<8x1xf32> to vector<8x52xf32>
    %533 = arith.subf %527, %532 : vector<8x52xf32>
    %c0_208 = arith.constant 0 : index
    %c0_209 = arith.constant 0 : index
    %534 = vector.load %arg23[%c0_208, %c0_209] : memref<8x128xf32, #tpu.memory_space<vmem>>, vector<8x52xf32>
    tpu.vector_store %arg23[%c0_208, %c0_209], %533 {strides = array<i32>} : memref<8x128xf32, #tpu.memory_space<vmem>>, vector<8x52xf32>,
    %cst_210 = arith.constant dense<0xFF800000> : vector<8xf32>
    %535 = vector.multi_reduction <maximumf>, %507, %cst_210 [1] : vector<8x6xf32> to vector<8xf32>
    %536 = vector.shape_cast %535 : vector<8xf32> to vector<8x1xf32>
    %537 = vector.broadcast %536 : vector<8x1xf32> to vector<8x6xf32>
    %538 = arith.subf %507, %537 : vector<8x6xf32>
    %539 = math.exp %538 : vector<8x6xf32>
    %cst_211 = arith.constant dense<0.000000e+00> : vector<8xf32>
    %540 = vector.multi_reduction <add>, %539, %cst_211 [1] : vector<8x6xf32> to vector<8xf32>
    %541 = vector.shape_cast %540 : vector<8xf32> to vector<8x1xf32>
    %542 = math.log %541 : vector<8x1xf32>
    %543 = vector.broadcast %542 : vector<8x1xf32> to vector<8x6xf32>
    %544 = arith.subf %538, %543 : vector<8x6xf32>
    %c0_212 = arith.constant 0 : index
    %c52 = arith.constant 52 : index
    %545 = vector.load %arg23[%c0_212, %c52] : memref<8x128xf32, #tpu.memory_space<vmem>>, vector<8x6xf32>
    tpu.vector_store %arg23[%c0_212, %c52], %544 {strides = array<i32>} : memref<8x128xf32, #tpu.memory_space<vmem>>, vector<8x6xf32>,
    %cst_213 = arith.constant dense<0xFF800000> : vector<8xf32>
    %546 = vector.multi_reduction <maximumf>, %514, %cst_213 [1] : vector<8x20xf32> to vector<8xf32>
    %547 = vector.shape_cast %546 : vector<8xf32> to vector<8x1xf32>
    %548 = vector.broadcast %547 : vector<8x1xf32> to vector<8x20xf32>
    %549 = arith.subf %514, %548 : vector<8x20xf32>
    %550 = math.exp %549 : vector<8x20xf32>
    %cst_214 = arith.constant dense<0.000000e+00> : vector<8xf32>
    %551 = vector.multi_reduction <add>, %550, %cst_214 [1] : vector<8x20xf32> to vector<8xf32>
    %552 = vector.shape_cast %551 : vector<8xf32> to vector<8x1xf32>
    %553 = math.log %552 : vector<8x1xf32>
    %554 = vector.broadcast %553 : vector<8x1xf32> to vector<8x20xf32>
    %555 = arith.subf %549, %554 : vector<8x20xf32>
    %c0_215 = arith.constant 0 : index
    %c58 = arith.constant 58 : index
    %556 = vector.load %arg23[%c0_215, %c58] : memref<8x128xf32, #tpu.memory_space<vmem>>, vector<8x20xf32>
    tpu.vector_store %arg23[%c0_215, %c58], %555 {strides = array<i32>} : memref<8x128xf32, #tpu.memory_space<vmem>>, vector<8x20xf32>,
    return
  }
}

</mosaic_0001>

<bundles_post_ra>
// kernel: transformer_model2_forward.1
= control target key start
LH: loop header
LB: loop body
LE: loop exit
PB: predicated region body
PF: predicated region fallthrough
CT: control target
= control target key end

     0   :  { %vm97_vm0 = vcmask 1041408   ;;  %vm90_vm1 = vcmask 31744   ;;  %vm245_vm2 = vcmask 261120   ;;  %vm309_vm3 = vcmask 64512   ;;  %s4240_s29 = smov 96   ;;  %s5222_s30 = smov 112   ;;  %s5182_s1 = inlined_call_operand.vmem [shape: f32[4,32], index: 1, kind: input, shape index: {}]   ;;  %s5183_s0 = inlined_call_operand.vmem [shape: f32[32,4], index: 0, kind: input, shape index: {}]   ;;  %s5184_s3 = inlined_call_operand.vmem [shape: f32[2,32,96], index: 3, kind: input, shape index: {}]   ;;  %s5185_s2 = inlined_call_operand.vmem [shape: f32[1,32], index: 2, kind: input, shape index: {}]   ;;  %s5186_s4 = inlined_call_operand.vmem [shape: f32[2,1,96], index: 4, kind: input, shape index: {}]   ;;  %s5187_s5 = inlined_call_operand.vmem [shape: f32[2,32,32], index: 5, kind: input, shape index: {}]   ;;  %s5188_s6 = inlined_call_operand.vmem [shape: f32[2,1,32], index: 6, kind: input, shape index: {}]   ;;  %s5189_s9 = inlined_call_operand.vmem [shape: f32[2,32,64], index: 9, kind: input, shape index: {}]   ;;  %s5190_s11 = inlined_call_operand.vmem [shape: f32[2,64,32], index: 11, kind: input, shape index: {}]   ;;  %s5191_s7 = inlined_call_operand.vmem [shape: f32[2,1,32], index: 7, kind: input, shape index: {}]   ;;  %s5192_s8 = inlined_call_operand.vmem [shape: f32[2,1,32], index: 8, kind: input, shape index: {}]   ;;  %s5193_s10 = inlined_call_operand.vmem [shape: f32[2,1,64], index: 10, kind: input, shape index: {}]   ;;  %s5194_s12 = inlined_call_operand.vmem [shape: f32[2,1,32], index: 12, kind: input, shape index: {}]   ;;  %s5195_s13 = inlined_call_operand.vmem [shape: f32[2,1,32], index: 13, kind: input, shape index: {}]   ;;  %s5196_s14 = inlined_call_operand.vmem [shape: f32[2,1,32], index: 14, kind: input, shape index: {}]   ;;  %s5197_s15 = inlined_call_operand.vmem [shape: f32[1,32], index: 15, kind: input, shape index: {}]   ;;  %s5198_s16 = inlined_call_operand.vmem [shape: f32[1,32], index: 16, kind: input, shape index: {}]   ;;  %s5199_s19 = inlined_call_operand.vmem [shape: f32[32,6], index: 19, kind: input, shape index: {}]   ;;  %s5200_s21 = inlined_call_operand.vmem [shape: f32[32,20], index: 21, kind: input, shape index: {}]   ;;  %s5201_s17 = inlined_call_operand.vmem [shape: f32[32,52], index: 17, kind: input, shape index: {}]   ;;  %s5202_s20 = inlined_call_operand.vmem [shape: f32[1,6], index: 20, kind: input, shape index: {}]   ;;  %s5203_s22 = inlined_call_operand.vmem [shape: f32[1,20], index: 22, kind: input, shape index: {}]   ;;  %s5204_s18 = inlined_call_operand.vmem [shape: f32[1,52], index: 18, kind: input, shape index: {}]   ;;  %s5205_s23 = inlined_call_operand.vmem [shape: f32[8,128], index: 23, kind: output, shape index: {}]  }
   0x1   :  { %5230 = sst [smem:[#allocation2_spill]] %s5182_s1  ;;  %v154_v45 = vlaneseq  ;;  %s5226_s25 = smov 120   ;;  %vm682_vm8 = vcmask 1043456   ;;  %vm1475_vm9 = vcmask 523264   ;;  %vm4252_vm10 = vmmov 0  }
   0x2   :  { %5231 = sst [smem:[#allocation3_spill]] %s5183_s0  ;;  %s5238_s24 = sld [smem:[#allocation2_spill]]  ;;  %vm3410_vm14 = vcmask 48128   ;;  %vm3429_vm15 = vcmask 162816  }
   0x3   :  { %5232 = sst [smem:[#allocation4_spill]] %s5184_s3  ;;  %s5239_s0 = sld [smem:[#allocation3_spill]]  ;;  %v4446_v46 = vshrl.u32 %v154_v45, 7  ;;  %v4449_v48 = vand.u32 127, %v154_v45 }
   0x4   :  { %5233 = sst [smem:[#allocation5_spill]] %s5185_s2  ;;  %s5240_s1 = sld [smem:[#allocation4_spill]] }
   0x5   :  { %5234 = sst [smem:[#allocation6_spill]] %s5186_s4  ;;  %v157_v47 = vadd.s32 16, %v4446_v46  ;;  %v156_v49 = vadd.s32 8, %v4446_v46  ;;  %v213_v51 = vand.u32 3, %v4449_v48  ;;  %v165_v52 = vand.u32 3, %v4446_v46  ;;  %s4241_s2 = smov 64  }
   0x6   :  { %5235 = sst [smem:[#allocation7_spill]] %s5187_s5  ;;  %s5242_s28 = sld [smem:[#allocation6_spill]]  ;;  %v158_v54 = vadd.s32 24, %v4446_v46 }
   0x7   :  { %5236 = sst [smem:[#allocation8_spill]] %s5188_s6  ;;  %s5241_s6 = sld [smem:[#allocation5_spill]]  ;;  %v179_v50 = vand.u32 3, %v157_v47  ;;  %v172_v53 = vand.u32 3, %v156_v49  ;;  %vm4459_vm5 = vcmp.eq.s32.totalorder %v165_v52, %v213_v51 }
   0x8   :  { %5237 = sst [smem:[#allocation9_spill]] %s5189_s9  ;;  %v79_v0 = vld [vmem:[%s5238_s24] sm:$0xf]  ;;  %s5224_s4 = smov 80  }
   0x9   :  { %v75_v1 = vld [vmem:[%s5239_s0] sm:$0xff]  ;;  %v76_v2 = vld [vmem:[%s5239_s0 + $0x8] sm:$0xff]  ;;  %v82_v3 = vpack.c.bf16 %v79_v0, %v79_v0  ;;  %v77_v5 = vld [vmem:[%s5239_s0 + $0x10] sm:$0xff]  ;;  %vm4455_vm4 = vcmp.eq.s32.totalorder %v179_v50, %v213_v51  ;;  %vm4465_vm6 = vcmp.eq.s32.totalorder %v172_v53, %v213_v51  ;;  %s5228_s24 = smov 88   ;;  %s5220_s5 = smov 56  }
   0xa   :  { %v80_v4 = vpack.c.bf16 %v76_v2, %v75_v1  ;;  %v78_v6 = vld [vmem:[%s5239_s0 + $0x18] sm:$0xff]  ;;  %v225_v9 = vld [vmem:[%s5240_s1] sm:$0xff]  ;;  %v226_v10 = vld [vmem:[%s5240_s1 + $0x8] sm:$0xff]  ;;  %v186_v1 = vand.u32 3, %v158_v54  ;;  %s5214_s0 = smov 72   ;;  %s5212_s26 = smov 104  }
   0xb   :  { %4020 = vmatprep.subr.msk.bf16.mxu0 %vm97_vm0, %v82_v3  ;;  %v99_v7 = vsel %vm97_vm0, %v82_v3, 0  ;;  %v81_v8 = vpack.c.bf16 %v78_v6, %v77_v5  ;;  %v237_v11 = vpack.c.bf16 %v226_v10, %v225_v9  ;;  %v227_v12 = vld [vmem:[%s5240_s1 + $0x10] sm:$0xff]  ;;  %v228_v13 = vld [vmem:[%s5240_s1 + $0x18] sm:$0xff]  ;;  %s5218_s3 = smov 48   ;;  %s5251_s9 = sld [smem:[#allocation7_spill]]  ;;  %vm3396_vm0 = vcmask 424960  }
   0xc   :  { %3712 = vmatprep.mubr.msk.bf16.mxu0 %vm90_vm1, %v80_v4  ;;  %3711 = vmatpush3.bf16.msra.mxu0 %v99_v7  ;;  %v238_v14 = vpack.c.bf16 %v228_v13, %v227_v12  ;;  %v3455_v31 = vld [vmem:[%s5242_s28] ss:$0 sm:$0xff]  ;;  %vm4475_vm7 = vcmp.eq.s32.totalorder %v186_v1, %v213_v51  ;;  %s4254_s27 = smov 58  }
   0xd   :  { %3716 = vmatprep.subr.bf16.mxu1 %v237_v11  ;;  %v3452_v15 = vld [vmem:[%s5241_s6] ss:$0 sm:$0xff]  ;;  %s5216_s6 = smov 40  }
   0xe   :  { %3717 = vmatpush3.bf16.msra.mxu1 %v237_v11 }
   0xf   :  { %3713 = vmatmul.mubr.msk.bf16.vlgmr.msra.gmra.mrb[0].mxu0 %vm90_vm1, %v81_v8  ;;  %3718 = vmatprep.subr.bf16.mxu1 %v238_v14  ;;  %vm3427_vm1 = vcmask 474528  }
  0x12   :  { %3719 = vmatpush3.bf16.msra.mxu1 %v238_v14 }
  0xe2   :  { %v3714_v16 = vpop.f32.mrb[0].mxu0 }
  0xe3   :  { %v135_v17 = vpop.f32.mrb[1].mxu0  ;;  %v4407_v20 = vadd.f32 %v3714_v16, %v3452_v15 }
  0xe4   :  { %v4405_v18 = vadd.f32 %v3452_v15, %v135_v17  ;;  %v3715_v19 = vpop.f32.mrb[2].mxu0 }
  0xe5   :  { %v4409_v21 = vadd.f32 %v3715_v19, %v3452_v15  ;;  %v138_v22 = vpop.f32.mrb[3].mxu0  ;;  %v152_v27 = vmax.f32 %v4407_v20, 0.0 }
  0xe6   :  { %v4411_v23 = vadd.f32 %v3452_v15, %v138_v22  ;;  %v150_v25 = vmax.f32 %v4405_v18, 0.0 }
  0xe7   :  { %v153_v24 = vmax.f32 %v4409_v21, 0.0 }
  0xe8   :  { %v151_v26 = vmax.f32 %v4411_v23, 0.0 }
  0xe9   :  { %v236_v29 = vpack.c.bf16 %v153_v24, %v152_v27 }
  0xea   :  { %v235_v28 = vpack.c.bf16 %v151_v26, %v150_v25 }
  0xec   :  { %3720 = vmatprep.mubr.msk.bf16.mxu1 %vm245_vm2, %v235_v28 }
  0xed   :  { %3721 = vmatmul.mubr.msk.bf16.vlgmr.msra.gmra.mrb[0].mxu1 %vm245_vm2, %v236_v29 }
 0x1c0   :  { %v3722_v30 = vpop.f32.mrb[0].mxu1 }
 0x1c1   :  { %v286_v32 = vpop.f32.mrb[1].mxu1  ;;  %v295_v34 = vadd.f32 %v3722_v30, %v3455_v31 }
 0x1c2   :  { %v3723_v33 = vpop.f32.mrb[2].mxu1  ;;  %v287_v37 = vadd.f32 %v3455_v31, %v286_v32 }
 0x1c3   :  { %v298_v35 = vadd.f32 %v3723_v33, %v3455_v31  ;;  %v289_v36 = vpop.f32.mrb[3].mxu1 }
 0x1c4   :  { %v290_v38 = vadd.f32 %v3455_v31, %v289_v36 }
 0x1c5   :  { %v4430_v39 = vpack.c.bf16 %v298_v35, %v295_v34 }
 0x1c6   :  { %v4432_v40 = vpack.c.bf16 %v290_v38, %v287_v37 }
 0x1c8   :  { %305 = vrot.lane.b32.xlu0 %v4432_v40, %s4240_s29  ;;  %3728 = vmatprep.mubr.msk.bf16.mxu0 %vm309_vm3, %v4432_v40 }
 0x1cc   :  { %307 = vrot.lane.b32.xlu0 %v4430_v39, %s4240_s29 }
 0x23a   :  { %v306_v41 = vpop.permute.xlu0 %305 }
 0x23b   :  { %4021 = vmatprep.subr.msk.bf16.mxu0 %vm309_vm3, %v306_v41  ;;  %v317_v42 = vsel %vm309_vm3, %v306_v41, 0 }
 0x23c   :  { %3725 = vmatpush3.bf16.xpose.msra.mxu0 %v317_v42 }
 0x23e   :  { %v308_v43 = vpop.permute.xlu0 %307 }
 0x23f   :  { %4022 = vmatprep.subr.msk.bf16.mxu0 %vm309_vm3, %v308_v43  ;;  %v320_v44 = vsel %vm309_vm3, %v308_v43, 0 }
 0x244   :  { %3727 = vmatpush3.bf16.xpose.msra.mxu0 %v320_v44 }
 0x24b   :  { %3729 = vmatmul.mubr.msk.bf16.vlgmr.msra.gmra.mrb[4].mxu0 %vm309_vm3, %v4430_v39 }
 0x31e   :  { %v3730_v55 = vpop.f32.mrb[4].mxu0 }
 0x31f   :  { %v373_v57 = vmul.f32 0.35355338, %v3730_v55  ;;  %v356_v58 = vpop.f32.mrb[5].mxu0 }
 0x320   :  { %v371_v60 = vmul.f32 0.35355338, %v356_v58  ;;  %v3731_v61 = vpop.f32.mrb[6].mxu0 }
 0x321   :  { %v359_v62 = vpop.f32.mrb[7].mxu0  ;;  %v377_v63 = vsel %vm4455_vm4, %v373_v57, -1e+30  ;;  %v374_v6 = vmul.f32 0.35355338, %v3731_v61 }
 0x322   :  { %v372_v2 = vmul.f32 0.35355338, %v359_v62  ;;  %v385_v3 = vsel %vm245_vm2, %v377_v63, -inf  ;;  %v375_v4 = vsel %vm4459_vm5, %v371_v60, -1e+30 }
 0x323   :  { %386 = vmax.xlane.f32.xlu0 %v385_v3  ;;  %v379_v5 = vsel %vm245_vm2, %v375_v4, -inf  ;;  %v378_v10 = vsel %vm4475_vm7, %v374_v6, -1e+30 }
 0x324   :  { %380 = vmax.xlane.f32.xlu1 %v379_v5  ;;  %v376_v7 = vsel %vm4465_vm6, %v372_v2, -1e+30  ;;  %v388_v11 = vsel %vm245_vm2, %v378_v10, -inf }
 0x325   :  { %v382_v9 = vsel %vm245_vm2, %v376_v7, -inf }
 0x328   :  { %383 = vmax.xlane.f32.xlu1 %v382_v9 }
 0x32c   :  { %389 = vmax.xlane.f32.xlu1 %v388_v11 }
 0x339   :  { %427 = vrot.lane.b32.xlu0 %v4430_v39, %s4241_s2 }
 0x33d   :  { %797 = vrot.lane.b32.xlu0 %v4432_v40, %s5224_s4  ;;  %425 = vrot.lane.b32.xlu1 %v4432_v40, %s4241_s2 }
 0x341   :  { %793 = vrot.lane.b32.xlu0 %v4432_v40, %s5222_s30 }
 0x3b0   :  { %v387_v12 = vpop.xlane.xlu0 %386 }
 0x3b1   :  { %v393_v13 = vsub.f32 %v377_v63, %v387_v12  ;;  %v381_v14 = vpop.xlane.xlu1 %380 }
 0x3b2   :  { %v391_v15 = vsub.f32 %v375_v4, %v381_v14 }
 0x3b3   :  { %v399_v16 = vmul.f32 1.442695, %v393_v13 }
 0x3b4   :  { %v395_v17 = vmul.f32 1.442695, %v391_v15  ;;  %v428_v34 = vpop.permute.xlu0 %427 }
 0x3b5   :  { %4060 = vpow2.f32 %v399_v16  ;;  %v384_v19 = vpop.xlane.xlu1 %383 }
 0x3b6   :  { %4062 = vpow2.f32 %v395_v17  ;;  %v392_v22 = vsub.f32 %v376_v7, %v384_v19 }
 0x3b8   :  { %v397_v30 = vmul.f32 1.442695, %v392_v22  ;;  %v798_v4 = vpop.permute.xlu0 %797 }
 0x3b9   :  { %v390_v28 = vpop.xlane.xlu1 %389  ;;  %v808_v7 = vsel %vm309_vm3, %v798_v4, 0 }
 0x3ba   :  { %v394_v29 = vsub.f32 %v378_v10, %v390_v28 }
 0x3bc   :  { %v401_v31 = vmul.f32 1.442695, %v394_v29  ;;  %v794_v6 = vpop.permute.xlu0 %793 }
 0x3bd   :  { %v426_v32 = vpop.permute.xlu1 %425 }
 0x3be   :  { %4064 = vpow2.f32 %v401_v31  ;;  %3732 = vmatprep.subr.bf16.mxu1 %v426_v32 }
 0x3bf   :  { %v4061_v33 = vpop.eup %4060  ;;  %3733 = vmatpush3.bf16.msra.mxu1 %v426_v32  ;;  %4066 = vpow2.f32 %v397_v30 }
 0x3c0   :  { %3734 = vmatprep.subr.bf16.mxu1 %v428_v34  ;;  %v409_v35 = vsel %vm245_vm2, %v4061_v33, 0.0  ;;  %v4063_v36 = vpop.eup %4062 }
 0x3c1   :  { %410 = vadd.xlane.f32.xlu1 %v409_v35  ;;  %v403_v37 = vsel %vm245_vm2, %v4063_v36, 0.0 }
 0x3c3   :  { %3735 = vmatpush3.bf16.msra.mxu1 %v428_v34 }
 0x3c5   :  { %404 = vadd.xlane.f32.xlu1 %v403_v37 }
 0x3c8   :  { %v4065_v38 = vpop.eup %4064 }
 0x3c9   :  { %v412_v41 = vsel %vm245_vm2, %v4065_v38, 0.0  ;;  %v4067_v42 = vpop.eup %4066 }
 0x3ca   :  { %413 = vadd.xlane.f32.xlu1 %v412_v41  ;;  %v406_v43 = vsel %vm245_vm2, %v4067_v42, 0.0 }
 0x3ce   :  { %407 = vadd.xlane.f32.xlu1 %v406_v43 }
 0x3df   :  { %493 = vrot.lane.b32.xlu1 %v4432_v40, %s5228_s24 }
 0x3e3   :  { %495 = vrot.lane.b32.xlu1 %v4430_v39, %s5228_s24  ;;  %s5257_s24 = smov 112  }
 0x3e7   :  { %489 = vrot.lane.b32.xlu1 %v4432_v40, %s5226_s25 }
 0x3eb   :  { %491 = vrot.lane.b32.xlu1 %v4430_v39, %s5226_s25  ;;  %s5259_s25 = smov 72  }
 0x3ef   :  { %799 = vrot.lane.b32.xlu1 %v4430_v39, %s5224_s4 }
 0x3f3   :  { %795 = vrot.lane.b32.xlu1 %v4430_v39, %s5222_s30  ;;  %s5256_s30 = smov 80  }
 0x44e   :  { %v411_v44 = vpop.xlane.xlu1 %410 }
 0x452   :  { %v405_v45 = vpop.xlane.xlu1 %404 }
 0x457   :  { %v414_v47 = vpop.xlane.xlu1 %413 }
 0x458   :  { %4068 = vrcp.f32 %v414_v47 }
 0x459   :  { %4070 = vrcp.f32 %v405_v45 }
 0x45a   :  { %4072 = vrcp.f32 %v411_v44 }
 0x45b   :  { %v408_v49 = vpop.xlane.xlu1 %407 }
 0x45c   :  { %4074 = vrcp.f32 %v408_v49 }
 0x45f   :  { %v494_v50 = vpop.permute.xlu1 %493 }
 0x460   :  { %4023 = vmatprep.subr.msk.bf16.mxu1 %vm309_vm3, %v494_v50  ;;  %v504_v2 = vsel %vm309_vm3, %v494_v50, 0 }
 0x462   :  { %v4069_v51 = vpop.eup %4068 }
 0x463   :  { %v4071_v52 = vpop.eup %4070  ;;  %v422_v55 = vmul.f32 %v4069_v51, %v4065_v38  ;;  %v496_v57 = vpop.permute.xlu1 %495 }
 0x464   :  { %v4073_v53 = vpop.eup %4072  ;;  %v416_v58 = vmul.f32 %v4071_v52, %v4063_v36  ;;  %v507_v3 = vsel %vm309_vm3, %v496_v57, 0 }
 0x465   :  { %v420_v61 = vmul.f32 %v4073_v53, %v4061_v33 }
 0x466   :  { %v4075_v54 = vpop.eup %4074 }
 0x467   :  { %v418_v60 = vmul.f32 %v4075_v54, %v4067_v42  ;;  %v424_v63 = vpack.c.bf16 %v422_v55, %v420_v61  ;;  %v490_v1 = vpop.permute.xlu1 %489 }
 0x469   :  { %v423_v62 = vpack.c.bf16 %v418_v60, %v416_v58 }
 0x46b   :  { %3736 = vmatprep.mubr.msk.bf16.mxu1 %vm245_vm2, %v423_v62  ;;  %v492_v5 = vpop.permute.xlu1 %491 }
 0x46c   :  { %3737 = vmatmul.mubr.msk.bf16.vlgmr.msra.gmra.mrb[4].mxu1 %vm245_vm2, %v424_v63 }
 0x46d   :  { %3741 = vmatpush3.bf16.xpose.msra.mxu1 %v504_v2  ;;  %3744 = vmatprep.mubr.msk.bf16.mxu1 %vm309_vm3, %v490_v1 }
 0x46e   :  { %4024 = vmatprep.subr.msk.bf16.mxu1 %vm309_vm3, %v496_v57 }
 0x46f   :  { %v800_v9 = vpop.permute.xlu1 %799 }
 0x470   :  { %v811_v10 = vsel %vm309_vm3, %v800_v9, 0 }
 0x473   :  { %v796_v11 = vpop.permute.xlu1 %795 }
 0x475   :  { %3743 = vmatpush3.bf16.xpose.msra.mxu1 %v507_v3 }
 0x476   :  { %4027 = vmatprep.subr.msk.bf16.mxu1 %vm309_vm3, %v798_v4 }
 0x47c   :  { %3745 = vmatmul.mubr.msk.bf16.vlgmr.msra.gmra.mrb[8].mxu1 %vm309_vm3, %v492_v5 }
 0x47d   :  { %3769 = vmatpush3.bf16.xpose.msra.mxu1 %v808_v7  ;;  %3772 = vmatprep.mubr.msk.bf16.mxu1 %vm309_vm3, %v794_v6 }
 0x47e   :  { %4028 = vmatprep.subr.msk.bf16.mxu1 %vm309_vm3, %v800_v9 }
 0x485   :  { %3771 = vmatpush3.bf16.xpose.msra.mxu1 %v811_v10 }
 0x48c   :  { %3773 = vmatmul.mubr.msk.bf16.vlgmr.msra.gmra.mrb[12].mxu1 %vm309_vm3, %v796_v11 }
 0x53f   :  { %v4521_v12 = vpop.f32.mrb[4].mxu1 }
 0x540   :  { %v4523_v13 = vpop.f32.mrb[5].mxu1 }
 0x541   :  { %v4525_v14 = vpop.f32.mrb[6].mxu1 }
 0x542   :  { %v487_v15 = vpack.c.bf16 %v4525_v14, %v4521_v12  ;;  %v4529_v16 = vpop.f32.mrb[7].mxu1  ;;  %v232_v12 = vld [vmem:[%s5251_s9 + $0x10] sm:$0xff] }
 0x543   :  { %v486_v17 = vpack.c.bf16 %v4529_v16, %v4523_v13  ;;  %v979_v14 = vpack.c.bf16 %v232_v12, %v232_v12 }
 0x54f   :  { %v3746_v19 = vpop.f32.mrb[8].mxu1 }
 0x550   :  { %v543_v22 = vpop.f32.mrb[9].mxu1  ;;  %v560_v28 = vmul.f32 0.35355338, %v3746_v19 }
 0x551   :  { %v558_v29 = vmul.f32 0.35355338, %v543_v22  ;;  %v3747_v30 = vpop.f32.mrb[10].mxu1 }
 0x552   :  { %v546_v31 = vpop.f32.mrb[11].mxu1  ;;  %v561_v35 = vmul.f32 0.35355338, %v3747_v30  ;;  %v564_v37 = vsel %vm4455_vm4, %v560_v28, -1e+30 }
 0x553   :  { %v559_v32 = vmul.f32 0.35355338, %v546_v31  ;;  %v562_v33 = vsel %vm4459_vm5, %v558_v29, -1e+30  ;;  %v572_v41 = vsel %vm245_vm2, %v564_v37, -inf }
 0x554   :  { %v566_v34 = vsel %vm245_vm2, %v562_v33, -inf  ;;  %v565_v42 = vsel %vm4475_vm7, %v561_v35, -1e+30 }
 0x555   :  { %567 = vmax.xlane.f32.xlu0 %v566_v34  ;;  %v563_v36 = vsel %vm4465_vm6, %v559_v32, -1e+30  ;;  %v575_v43 = vsel %vm245_vm2, %v565_v42, -inf }
 0x556   :  { %v569_v38 = vsel %vm245_vm2, %v563_v36, -inf }
 0x557   :  { %570 = vmax.xlane.f32.xlu1 %v569_v38 }
 0x559   :  { %573 = vmax.xlane.f32.xlu0 %v572_v41 }
 0x55d   :  { %576 = vmax.xlane.f32.xlu0 %v575_v43 }
 0x55f   :  { %v3774_v44 = vpop.f32.mrb[12].mxu1 }
 0x560   :  { %v847_v45 = vpop.f32.mrb[13].mxu1  ;;  %v864_v11 = vmul.f32 0.35355338, %v3774_v44 }
 0x561   :  { %v3775_v47 = vpop.f32.mrb[14].mxu1  ;;  %v862_v10 = vmul.f32 0.35355338, %v847_v45 }
 0x562   :  { %v850_v49 = vpop.f32.mrb[15].mxu1  ;;  %v865_v29 = vmul.f32 0.35355338, %v3775_v47  ;;  %v868_v31 = vsel %vm4455_vm4, %v864_v11, -1e+30 }
 0x563   :  { %v863_v19 = vmul.f32 0.35355338, %v850_v49  ;;  %v866_v22 = vsel %vm4459_vm5, %v862_v10, -1e+30 }
 0x564   :  { %v870_v28 = vsel %vm245_vm2, %v866_v22, -inf  ;;  %v869_v34 = vsel %vm4475_vm7, %v865_v29, -1e+30 }
 0x565   :  { %v867_v30 = vsel %vm4465_vm6, %v863_v19, -1e+30  ;;  %v879_v35 = vsel %vm245_vm2, %v869_v34, -inf }
 0x566   :  { %v873_v32 = vsel %vm245_vm2, %v867_v30, -inf }
 0x5e2   :  { %v568_v50 = vpop.xlane.xlu0 %567 }
 0x5e3   :  { %v578_v51 = vsub.f32 %v562_v33, %v568_v50  ;;  %v876_v33 = vsel %vm245_vm2, %v868_v31, -inf }
 0x5e4   :  { %v571_v52 = vpop.xlane.xlu1 %570 }
 0x5e5   :  { %v582_v55 = vmul.f32 1.442695, %v578_v51  ;;  %v579_v57 = vsub.f32 %v563_v36, %v571_v52 }
 0x5e6   :  { %v574_v53 = vpop.xlane.xlu0 %573 }
 0x5e7   :  { %v580_v54 = vsub.f32 %v564_v37, %v574_v53  ;;  %v584_v62 = vmul.f32 1.442695, %v579_v57 }
 0x5e9   :  { %v586_v58 = vmul.f32 1.442695, %v580_v54 }
 0x5ea   :  { %v577_v60 = vpop.xlane.xlu0 %576 }
 0x5eb   :  { %4076 = vpow2.f32 %v586_v58  ;;  %v581_v61 = vsub.f32 %v565_v42, %v577_v60 }
 0x5ec   :  { %4078 = vpow2.f32 %v582_v55 }
 0x5ed   :  { %v588_v63 = vmul.f32 1.442695, %v581_v61 }
 0x5ef   :  { %4080 = vpow2.f32 %v588_v63 }
 0x5f0   :  { %4082 = vpow2.f32 %v584_v62 }
 0x5f5   :  { %v4545_v1 = vpop.eup %4076 }
 0x5f6   :  { %v596_v2 = vsel %vm245_vm2, %v4545_v1, 0.0  ;;  %v4079_v3 = vpop.eup %4078 }
 0x5f7   :  { %597 = vadd.xlane.f32.xlu1 %v596_v2  ;;  %v590_v6 = vsel %vm245_vm2, %v4079_v3, 0.0 }
 0x5f9   :  { %v4081_v4 = vpop.eup %4080 }
 0x5fa   :  { %v599_v5 = vsel %vm245_vm2, %v4081_v4, 0.0  ;;  %v4083_v7 = vpop.eup %4082 }
 0x5fb   :  { %600 = vadd.xlane.f32.xlu0 %v599_v5  ;;  %591 = vadd.xlane.f32.xlu1 %v590_v6  ;;  %v593_v9 = vsel %vm245_vm2, %v4083_v7, 0.0 }
 0x5ff   :  { %594 = vadd.xlane.f32.xlu0 %v593_v9 }
 0x60c   :  { %612 = vrot.lane.b32.xlu1 %v4432_v40, %s5220_s5 }
 0x610   :  { %1046 = vrot.lane.b32.xlu1 %v4432_v40, %s5214_s0 }
 0x614   :  { %1048 = vrot.lane.b32.xlu1 %v4430_v39, %s5214_s0  ;;  %s5252_s0 = sld [smem:[#allocation8_spill]] }
 0x615   :  { %614 = vrot.lane.b32.xlu0 %v4430_v39, %s5220_s5 }
 0x618   :  { %1044 = vrot.lane.b32.xlu1 %v4430_v39, %s5212_s26 }
 0x619   :  { %1042 = vrot.lane.b32.xlu0 %v4432_v40, %s5212_s26  ;;  %s5261_s26 = smov 48  }
 0x638   :  { %871 = vmax.xlane.f32.xlu0 %v870_v28 }
 0x63c   :  { %874 = vmax.xlane.f32.xlu1 %v873_v32  ;;  %877 = vmax.xlane.f32.xlu0 %v876_v33 }
 0x640   :  { %880 = vmax.xlane.f32.xlu0 %v879_v35 }
 0x684   :  { %v598_v36 = vpop.xlane.xlu1 %597 }
 0x688   :  { %v601_v37 = vpop.xlane.xlu0 %600  ;;  %v592_v38 = vpop.xlane.xlu1 %591 }
 0x689   :  { %4084 = vrcp.f32 %v601_v37 }
 0x68a   :  { %4086 = vrcp.f32 %v592_v38 }
 0x68b   :  { %4088 = vrcp.f32 %v598_v36  ;;  %v231_v36 = vld [vmem:[%s5251_s9 + $0x8] sm:$0xff] }
 0x68c   :  { %v595_v41 = vpop.xlane.xlu0 %594  ;;  %v613_v42 = vpop.permute.xlu1 %612  ;;  %v675_v37 = vpack.c.bf16 %v231_v36, %v231_v36 }
 0x68d   :  { %4090 = vrcp.f32 %v595_v41  ;;  %3748 = vmatprep.subr.bf16.mxu0 %v613_v42  ;;  %v230_v41 = vld [vmem:[%s5251_s9] sm:$0xff] }
 0x68e   :  { %3749 = vmatpush3.bf16.msra.mxu0 %v613_v42  ;;  %v684_v38 = vsel %vm682_vm8, %v675_v37, 0  ;;  %v488_v42 = vpack.c.bf16 %v230_v41, %v230_v41 }
 0x690   :  { %v615_v43 = vpop.permute.xlu0 %614  ;;  %v1047_v44 = vpop.permute.xlu1 %1046 }
 0x691   :  { %3750 = vmatprep.subr.bf16.mxu0 %v615_v43  ;;  %4030 = vmatprep.subr.msk.bf16.mxu1 %vm309_vm3, %v1047_v44  ;;  %v1057_v45 = vsel %vm309_vm3, %v1047_v44, 0 }
 0x692   :  { %3751 = vmatpush3.bf16.msra.mxu0 %v615_v43  ;;  %3791 = vmatpush3.bf16.xpose.msra.mxu1 %v1057_v45 }
 0x693   :  { %v4085_v47 = vpop.eup %4084  ;;  %4025 = vmatprep.subr.msk.bf16.mxu0 %vm682_vm8, %v675_v37 }
 0x694   :  { %v1043_v49 = vpop.permute.xlu0 %1042  ;;  %v1049_v50 = vpop.permute.xlu1 %1048  ;;  %v609_v54 = vmul.f32 %v4085_v47, %v4081_v4 }
 0x695   :  { %v4087_v51 = vpop.eup %4086  ;;  %4031 = vmatprep.subr.msk.bf16.mxu1 %vm309_vm3, %v1049_v50  ;;  %3794 = vmatprep.mubr.msk.bf16.mxu1 %vm309_vm3, %v1043_v49  ;;  %v1060_v60 = vsel %vm309_vm3, %v1049_v50, 0 }
 0x696   :  { %v4089_v52 = vpop.eup %4088  ;;  %v603_v55 = vmul.f32 %v4087_v51, %v4079_v3 }
 0x697   :  { %v4091_v53 = vpop.eup %4090  ;;  %v607_v58 = vmul.f32 %v4089_v52, %v4545_v1 }
 0x698   :  { %v605_v57 = vmul.f32 %v4091_v53, %v4083_v7  ;;  %v1045_v63 = vpop.permute.xlu1 %1044 }
 0x699   :  { %v611_v62 = vpack.c.bf16 %v609_v54, %v607_v58  ;;  %v742_v58 = vsel %vm682_vm8, %v488_v42, 0 }
 0x69a   :  { %3793 = vmatpush3.bf16.xpose.msra.mxu1 %v1060_v60  ;;  %v610_v61 = vpack.c.bf16 %v605_v57, %v603_v55 }
 0x69c   :  { %3752 = vmatprep.mubr.msk.bf16.mxu0 %vm245_vm2, %v610_v61 }
 0x69d   :  { %3753 = vmatmul.mubr.msk.bf16.vlgmr.msra.gmra.mrb[8].mxu0 %vm245_vm2, %v611_v62 }
 0x69e   :  { %3757 = vmatpush3.bf16.msra.mxu0 %v684_v38 }
 0x69f   :  { %4026 = vmatprep.subr.msk.bf16.mxu0 %vm682_vm8, %v488_v42 }
 0x6a1   :  { %3795 = vmatmul.mubr.msk.bf16.vlgmr.msra.gmra.mrb[16].mxu1 %vm309_vm3, %v1045_v63 }
 0x6c5   :  { %v872_v2 = vpop.xlane.xlu0 %871 }
 0x6c6   :  { %v882_v5 = vsub.f32 %v866_v22, %v872_v2 }
 0x6c8   :  { %v886_v7 = vmul.f32 1.442695, %v882_v5 }
 0x6c9   :  { %v878_v6 = vpop.xlane.xlu0 %877  ;;  %v875_v4 = vpop.xlane.xlu1 %874 }
 0x6ca   :  { %v884_v3 = vsub.f32 %v868_v31, %v878_v6  ;;  %v883_v1 = vsub.f32 %v867_v30, %v875_v4 }
 0x6cc   :  { %v890_v9 = vmul.f32 1.442695, %v884_v3  ;;  %v888_v19 = vmul.f32 1.442695, %v883_v1 }
 0x6cd   :  { %v881_v10 = vpop.xlane.xlu0 %880 }
 0x6ce   :  { %4092 = vpow2.f32 %v890_v9  ;;  %v885_v11 = vsub.f32 %v869_v34, %v881_v10 }
 0x6cf   :  { %4094 = vpow2.f32 %v886_v7 }
 0x6d0   :  { %v892_v28 = vmul.f32 1.442695, %v885_v11 }
 0x6d2   :  { %4096 = vpow2.f32 %v892_v28 }
 0x6d3   :  { %4098 = vpow2.f32 %v888_v19 }
 0x6d8   :  { %v4585_v29 = vpop.eup %4092 }
 0x6d9   :  { %v900_v32 = vsel %vm245_vm2, %v4585_v29, 0.0  ;;  %v4589_v22 = vpop.eup %4094 }
 0x6da   :  { %901 = vadd.xlane.f32.xlu1 %v900_v32  ;;  %v894_v30 = vsel %vm245_vm2, %v4589_v22, 0.0 }
 0x6dc   :  { %v4591_v31 = vpop.eup %4096 }
 0x6dd   :  { %v903_v33 = vsel %vm245_vm2, %v4591_v31, 0.0  ;;  %v4099_v34 = vpop.eup %4098 }
 0x6de   :  { %895 = vadd.xlane.f32.xlu1 %v894_v30  ;;  %904 = vadd.xlane.f32.xlu0 %v903_v33  ;;  %v897_v35 = vsel %vm245_vm2, %v4099_v34, 0.0 }
 0x6e2   :  { %898 = vadd.xlane.f32.xlu0 %v897_v35 }
 0x6ef   :  { %916 = vrot.lane.b32.xlu1 %v4432_v40, %s5218_s3 }
 0x6f8   :  { %918 = vrot.lane.b32.xlu0 %v4430_v39, %s5218_s3 }
 0x767   :  { %v902_v43 = vpop.xlane.xlu1 %901 }
 0x76b   :  { %v905_v44 = vpop.xlane.xlu0 %904  ;;  %v896_v47 = vpop.xlane.xlu1 %895 }
 0x76f   :  { %v899_v45 = vpop.xlane.xlu0 %898  ;;  %v917_v2 = vpop.permute.xlu1 %916 }
 0x770   :  { %v3754_v49 = vpop.f32.mrb[8].mxu0  ;;  %4100 = vrcp.f32 %v899_v45 }
 0x771   :  { %v658_v50 = vpop.f32.mrb[9].mxu0  ;;  %4102 = vrcp.f32 %v896_v47 }
 0x772   :  { %v3755_v51 = vpop.f32.mrb[10].mxu0  ;;  %4104 = vrcp.f32 %v905_v44 }
 0x773   :  { %v674_v52 = vpack.c.bf16 %v3755_v51, %v3754_v49  ;;  %v661_v53 = vpop.f32.mrb[11].mxu0  ;;  %4106 = vrcp.f32 %v902_v43  ;;  %v919_v35 = vpop.permute.xlu0 %918 }
 0x774   :  { %v673_v54 = vpack.c.bf16 %v661_v53, %v658_v50  ;;  %v3796_v55 = vpop.f32.mrb[16].mxu1 }
 0x775   :  { %v1096_v57 = vpop.f32.mrb[17].mxu1  ;;  %v1113_v60 = vmul.f32 0.35355338, %v3796_v55 }
 0x776   :  { %v1111_v61 = vmul.f32 0.35355338, %v1096_v57  ;;  %3758 = vmatprep.mubr.msk.bf16.mxu0 %vm309_vm3, %v673_v54  ;;  %v3797_v62 = vpop.f32.mrb[18].mxu1 }
 0x777   :  { %3759 = vmatmul.mubr.msk.bf16.vlgmr.msra.gmra.mrb[12].mxu0 %vm309_vm3, %v674_v52  ;;  %v1099_v63 = vpop.f32.mrb[19].mxu1  ;;  %v1114_v5 = vmul.f32 0.35355338, %v3797_v62  ;;  %v1117_v9 = vsel %vm4455_vm4, %v1113_v60, -1e+30 }
 0x778   :  { %3763 = vmatpush3.bf16.msra.mxu0 %v742_v58  ;;  %v1112_v6 = vmul.f32 0.35355338, %v1099_v63  ;;  %3764 = vmatprep.mubr.msk.bf16.mxu0 %vm309_vm3, %v486_v17  ;;  %v1115_v4 = vsel %vm4459_vm5, %v1111_v61, -1e+30  ;;  %v1125_v17 = vsel %vm245_vm2, %v1117_v9, -inf }
 0x779   :  { %3776 = vmatprep.subr.bf16.mxu0 %v917_v2  ;;  %v1119_v3 = vsel %vm245_vm2, %v1115_v4, -inf  ;;  %v1118_v13 = vsel %vm4475_vm7, %v1114_v5, -1e+30 }
 0x77a   :  { %1120 = vmax.xlane.f32.xlu1 %v1119_v3  ;;  %v1116_v7 = vsel %vm4465_vm6, %v1112_v6, -1e+30  ;;  %v4101_v1 = vpop.eup %4100  ;;  %v1128_v19 = vsel %vm245_vm2, %v1118_v13, -inf }
 0x77b   :  { %v1122_v10 = vsel %vm245_vm2, %v1116_v7, -inf  ;;  %v4103_v16 = vpop.eup %4102  ;;  %v909_v11 = vmul.f32 %v4101_v1, %v4099_v34 }
 0x77c   :  { %1123 = vmax.xlane.f32.xlu0 %v1122_v10  ;;  %v907_v28 = vmul.f32 %v4103_v16, %v4589_v22  ;;  %v4105_v32 = vpop.eup %4104 }
 0x77d   :  { %v4107_v33 = vpop.eup %4106  ;;  %v913_v36 = vmul.f32 %v4105_v32, %v4591_v31 }
 0x77e   :  { %1126 = vmax.xlane.f32.xlu1 %v1125_v17  ;;  %v914_v30 = vpack.c.bf16 %v909_v11, %v907_v28  ;;  %v911_v34 = vmul.f32 %v4107_v33, %v4585_v29 }
 0x780   :  { %1129 = vmax.xlane.f32.xlu0 %v1128_v19  ;;  %v915_v37 = vpack.c.bf16 %v913_v36, %v911_v34 }
 0x783   :  { %3765 = vmatmul.mubr.msk.bf16.vlgmr.msra.gmra.mrb[12].mxu0 %vm309_vm3, %v487_v15  ;;  %v987_v15 = vsel %vm682_vm8, %v979_v14, 0 }
 0x784   :  { %3777 = vmatpush3.bf16.msra.mxu0 %v917_v2  ;;  %3780 = vmatprep.mubr.msk.bf16.mxu0 %vm245_vm2, %v914_v30 }
 0x785   :  { %3778 = vmatprep.subr.bf16.mxu0 %v919_v35 }
 0x788   :  { %3779 = vmatpush3.bf16.msra.mxu0 %v919_v35 }
 0x789   :  { %4029 = vmatprep.subr.msk.bf16.mxu0 %vm682_vm8, %v979_v14 }
 0x78b   :  { %3781 = vmatmul.mubr.msk.bf16.vlgmr.msra.gmra.mrb[16].mxu0 %vm245_vm2, %v915_v37 }
 0x78c   :  { %3785 = vmatpush3.bf16.msra.mxu0 %v987_v15 }
 0x807   :  { %v1121_v22 = vpop.xlane.xlu1 %1120 }
 0x808   :  { %v1131_v38 = vsub.f32 %v1115_v4, %v1121_v22 }
 0x809   :  { %v1124_v31 = vpop.xlane.xlu0 %1123 }
 0x80a   :  { %v1132_v42 = vsub.f32 %v1116_v7, %v1124_v31  ;;  %v1135_v43 = vmul.f32 1.442695, %v1131_v38  ;;  %v3482_v38 = vld [vmem:[%s5252_s0] ss:$0 sm:$0xff] }
 0x80b   :  { %v1127_v41 = vpop.xlane.xlu1 %1126 }
 0x80c   :  { %v1133_v29 = vsub.f32 %v1117_v9, %v1127_v41  ;;  %v1137_v49 = vmul.f32 1.442695, %v1132_v42 }
 0x80d   :  { %v1130_v44 = vpop.xlane.xlu0 %1129 }
 0x80e   :  { %v1139_v45 = vmul.f32 1.442695, %v1133_v29  ;;  %v1134_v47 = vsub.f32 %v1118_v13, %v1130_v44 }
 0x810   :  { %4108 = vpow2.f32 %v1139_v45  ;;  %v1141_v50 = vmul.f32 1.442695, %v1134_v47 }
 0x811   :  { %4110 = vpow2.f32 %v1135_v43 }
 0x812   :  { %4112 = vpow2.f32 %v1141_v50 }
 0x813   :  { %4114 = vpow2.f32 %v1137_v49 }
 0x81a   :  { %v4109_v51 = vpop.eup %4108 }
 0x81b   :  { %v4111_v52 = vpop.eup %4110  ;;  %v1149_v53 = vsel %vm245_vm2, %v4109_v51, 0.0 }
 0x81c   :  { %v4113_v54 = vpop.eup %4112  ;;  %1150 = vadd.xlane.f32.xlu1 %v1149_v53  ;;  %v1143_v58 = vsel %vm245_vm2, %v4111_v52, 0.0 }
 0x81d   :  { %v1152_v55 = vsel %vm245_vm2, %v4113_v54, 0.0  ;;  %v4115_v57 = vpop.eup %4114 }
 0x81e   :  { %1153 = vadd.xlane.f32.xlu0 %v1152_v55  ;;  %v1146_v60 = vsel %vm245_vm2, %v4115_v57, 0.0 }
 0x820   :  { %1144 = vadd.xlane.f32.xlu1 %v1143_v58 }
 0x822   :  { %1147 = vadd.xlane.f32.xlu0 %v1146_v60 }
 0x831   :  { %1165 = vrot.lane.b32.xlu1 %v4432_v40, %s5216_s6 }
 0x838   :  { %1167 = vrot.lane.b32.xlu0 %v4430_v39, %s5216_s6  ;;  %v233_v39 = vld [vmem:[%s5251_s9 + $0x18] sm:$0xff]  ;;  %s5253_s6 = sld [smem:[#allocation9_spill]] }
 0x839   :  { %v1228_v10 = vpack.c.bf16 %v233_v39, %v233_v39 }
 0x83b   :  { %v1236_v36 = vsel %vm682_vm8, %v1228_v10, 0 }
 0x83e   :  { %v1381_v39 = vld [vmem:[%s5253_s6 + $0x8] sm:$0xff] }
 0x85e   :  { %v3782_v61 = vpop.f32.mrb[16].mxu0 }
 0x85f   :  { %v962_v62 = vpop.f32.mrb[17].mxu0 }
 0x860   :  { %v3783_v63 = vpop.f32.mrb[18].mxu0 }
 0x861   :  { %v978_v2 = vpack.c.bf16 %v3783_v63, %v3782_v61  ;;  %v965_v5 = vpop.f32.mrb[19].mxu0 }
 0x862   :  { %v977_v6 = vpack.c.bf16 %v965_v5, %v962_v62 }
 0x864   :  { %3786 = vmatprep.mubr.msk.bf16.mxu0 %vm309_vm3, %v977_v6 }
 0x865   :  { %3787 = vmatmul.mubr.msk.bf16.vlgmr.msra.gmra.mrb[12].mxu0 %vm309_vm3, %v978_v2 }
 0x8a9   :  { %v1151_v4 = vpop.xlane.xlu1 %1150 }
 0x8ab   :  { %v1154_v3 = vpop.xlane.xlu0 %1153 }
 0x8ac   :  { %4116 = vrcp.f32 %v1154_v3 }
 0x8ad   :  { %v1145_v7 = vpop.xlane.xlu1 %1144 }
 0x8ae   :  { %4118 = vrcp.f32 %v1145_v7 }
 0x8af   :  { %4120 = vrcp.f32 %v1151_v4  ;;  %v1148_v40 = vpop.xlane.xlu0 %1147 }
 0x8b0   :  { %4122 = vrcp.f32 %v1148_v40 }
 0x8b1   :  { %v1166_v9 = vpop.permute.xlu1 %1165 }
 0x8b2   :  { %3798 = vmatprep.subr.bf16.mxu0 %v1166_v9 }
 0x8b3   :  { %v1168_v1 = vpop.permute.xlu0 %1167  ;;  %3799 = vmatpush3.bf16.msra.mxu0 %v1166_v9  ;;  %v1380_v9 = vld [vmem:[%s5253_s6] sm:$0xff] }
 0x8b4   :  { %3800 = vmatprep.subr.bf16.mxu0 %v1168_v1 }
 0x8b6   :  { %v4117_v13 = vpop.eup %4116 }
 0x8b7   :  { %3801 = vmatpush3.bf16.msra.mxu0 %v1168_v1  ;;  %v1162_v19 = vmul.f32 %v4117_v13, %v4113_v54  ;;  %v1386_v1 = vpack.c.bf16 %v1381_v39, %v1380_v9  ;;  %v1383_v13 = vld [vmem:[%s5253_s6 + $0x18] sm:$0xff] }
 0x8b8   :  { %v4119_v16 = vpop.eup %4118  ;;  %4032 = vmatprep.subr.msk.bf16.mxu0 %vm682_vm8, %v1228_v10  ;;  %v1382_v10 = vld [vmem:[%s5253_s6 + $0x10] sm:$0xff] }
 0x8b9   :  { %v4121_v17 = vpop.eup %4120  ;;  %v1156_v28 = vmul.f32 %v4119_v16, %v4111_v52  ;;  %3812 = vmatprep.subr.bf16.mxu1 %v1386_v1  ;;  %v1387_v16 = vpack.c.bf16 %v1383_v13, %v1382_v10 }
 0x8ba   :  { %v4123_v11 = vpop.eup %4122  ;;  %v1160_v30 = vmul.f32 %v4121_v17, %v4109_v51  ;;  %3813 = vmatpush3.bf16.msra.mxu1 %v1386_v1  ;;  %v1454_v17 = vld [vmem:[%s5190_s11] sm:$0xff] }
 0x8bb   :  { %v1158_v32 = vmul.f32 %v4123_v11, %v4115_v57  ;;  %3814 = vmatprep.subr.bf16.mxu1 %v1387_v16  ;;  %v1455_v11 = vld [vmem:[%s5190_s11 + $0x8] sm:$0xff] }
 0x8bc   :  { %v1164_v35 = vpack.c.bf16 %v1162_v19, %v1160_v30  ;;  %v1464_v19 = vpack.c.bf16 %v1455_v11, %v1454_v17  ;;  %v3488_v11 = vld [vmem:[%s5194_s12] ss:$0 sm:$0xff] }
 0x8bd   :  { %v1163_v33 = vpack.c.bf16 %v1158_v32, %v1156_v28 }
 0x8be   :  { %3815 = vmatpush3.bf16.msra.mxu1 %v1387_v16 }
 0x8bf   :  { %3802 = vmatprep.mubr.msk.bf16.mxu0 %vm245_vm2, %v1163_v33  ;;  %3820 = vmatprep.subr.bf16.mxu1 %v1464_v19 }
 0x8c0   :  { %3803 = vmatmul.mubr.msk.bf16.vlgmr.msra.gmra.mrb[20].mxu0 %vm245_vm2, %v1164_v35 }
 0x8c1   :  { %3807 = vmatpush3.bf16.msra.mxu0 %v1236_v36 }
 0x993   :  { %v3804_v34 = vpop.f32.mrb[20].mxu0 }
 0x994   :  { %v1211_v37 = vpop.f32.mrb[21].mxu0 }
 0x995   :  { %v3805_v12 = vpop.f32.mrb[22].mxu0 }
 0x996   :  { %v1227_v14 = vpack.c.bf16 %v3805_v12, %v3804_v34  ;;  %v1214_v15 = vpop.f32.mrb[23].mxu0 }
 0x997   :  { %v1226_v22 = vpack.c.bf16 %v1214_v15, %v1211_v37 }
 0x999   :  { %3808 = vmatprep.mubr.msk.bf16.mxu0 %vm309_vm3, %v1226_v22 }
 0x99a   :  { %3809 = vmatmul.mubr.msk.bf16.vlgmr.msra.gmra.mrb[12].mxu0 %vm309_vm3, %v1227_v14 }
 0xa6d   :  { %v3810_v31 = vpop.f32.mrb[12].mxu0 }
 0xa6e   :  { %v1272_v41 = vpop.f32.mrb[13].mxu0  ;;  %v1299_v42 = vadd.f32 %v3810_v31, %v3482_v38  ;;  %v3483_v31 = vld [vmem:[%s5191_s7] ss:$0 sm:$0xff] }
 0xa6f   :  { %v1297_v29 = vadd.f32 %v3482_v38, %v1272_v41  ;;  %v3811_v43 = vpop.f32.mrb[14].mxu0 }
 0xa70   :  { %v1275_v44 = vpop.f32.mrb[15].mxu0  ;;  %v1300_v45 = vadd.f32 %v3811_v43, %v3482_v38  ;;  %v1303_v52 = vadd.f32 %v1299_v42, %v152_v27 }
 0xa71   :  { %v1298_v47 = vadd.f32 %v3482_v38, %v1275_v44  ;;  %v1301_v49 = vadd.f32 %v1297_v29, %v150_v25 }
 0xa72   :  { %v1304_v54 = vadd.f32 %v1300_v45, %v153_v24  ;;  %v1313_v55 = vsel %vm245_vm2, %v1303_v52, 0.0  ;;  %v3484_v45 = vld [vmem:[%s5192_s8] ss:$0 sm:$0xff] }
 0xa73   :  { %v1307_v50 = vsel %vm245_vm2, %v1301_v49, 0.0  ;;  %v1302_v51 = vadd.f32 %v1298_v47, %v151_v26 }
 0xa74   :  { %1308 = vadd.xlane.f32.xlu1 %v1307_v50  ;;  %v1316_v18 = vsel %vm245_vm2, %v1304_v54, 0.0 }
 0xa75   :  { %v1310_v53 = vsel %vm245_vm2, %v1302_v51, 0.0 }
 0xa76   :  { %1311 = vadd.xlane.f32.xlu0 %v1310_v53 }
 0xa78   :  { %1314 = vadd.xlane.f32.xlu1 %v1313_v55 }
 0xa7a   :  { %1317 = vadd.xlane.f32.xlu0 %v1316_v18 }
 0xb01   :  { %v1309_v25 = vpop.xlane.xlu1 %1308 }
 0xb02   :  { %v1320_v57 = vmul.f32 0.03125, %v1309_v25  ;;  %v1456_v25 = vld [vmem:[%s5190_s11 + $0x10] sm:$0xff] }
 0xb03   :  { %v1312_v23 = vpop.xlane.xlu0 %1311 }
 0xb04   :  { %v1324_v26 = vsub.f32 %v1301_v49, %v1320_v57  ;;  %v1321_v58 = vmul.f32 0.03125, %v1312_v23  ;;  %v1457_v57 = vld [vmem:[%s5190_s11 + $0x18] sm:$0xff] }
 0xb05   :  { %v1315_v20 = vpop.xlane.xlu1 %1314 }
 0xb06   :  { %v1325_v27 = vsub.f32 %v1302_v51, %v1321_v58  ;;  %v1322_v60 = vmul.f32 0.03125, %v1315_v20  ;;  %v1328_v61 = vmul.f32 %v1324_v26, %v1324_v26  ;;  %v1465_v20 = vpack.c.bf16 %v1457_v57, %v1456_v25 }
 0xb07   :  { %v1318_v62 = vpop.xlane.xlu0 %1317 }
 0xb08   :  { %v1326_v63 = vsub.f32 %v1303_v52, %v1322_v60  ;;  %v1323_v21 = vmul.f32 0.03125, %v1318_v62  ;;  %v1332_v24 = vsel %vm245_vm2, %v1328_v61, 0.0  ;;  %v1329_v2 = vmul.f32 %v1325_v27, %v1325_v27  ;;  %v1459_v60 = vld [vmem:[%s5190_s11 + $0x28] sm:$0xff]  ;;  %v1460_v62 = vld [vmem:[%s5190_s11 + $0x30] sm:$0xff] }
 0xb09   :  { %1333 = vadd.xlane.f32.xlu1 %v1332_v24  ;;  %v3485_v24 = vld [vmem:[%s5193_s10] ss:$0 sm:$0xff] }
 0xb0a   :  { %v1327_v5 = vsub.f32 %v1304_v54, %v1323_v21  ;;  %v1335_v6 = vsel %vm245_vm2, %v1329_v2, 0.0  ;;  %v1330_v4 = vmul.f32 %v1326_v63, %v1326_v63 }
 0xb0b   :  { %1336 = vadd.xlane.f32.xlu0 %v1335_v6 }
 0xb0c   :  { %v1338_v3 = vsel %vm245_vm2, %v1330_v4, 0.0  ;;  %v1331_v7 = vmul.f32 %v1327_v5, %v1327_v5 }
 0xb0d   :  { %1339 = vadd.xlane.f32.xlu1 %v1338_v3 }
 0xb0e   :  { %v1341_v40 = vsel %vm245_vm2, %v1331_v7, 0.0 }
 0xb0f   :  { %1342 = vadd.xlane.f32.xlu0 %v1341_v40 }
 0xb96   :  { %v1334_v28 = vpop.xlane.xlu1 %1333 }
 0xb97   :  { %v1344_v32 = vmul.f32 0.03125, %v1334_v28 }
 0xb98   :  { %v1337_v30 = vpop.xlane.xlu0 %1336 }
 0xb99   :  { %v1348_v33 = vadd.f32 1e-05, %v1344_v32  ;;  %v1345_v35 = vmul.f32 0.03125, %v1337_v30 }
 0xb9a   :  { %v1340_v36 = vpop.xlane.xlu1 %1339 }
 0xb9b   :  { %4124 = vrsqrt.f32 %v1348_v33  ;;  %v1349_v34 = vadd.f32 1e-05, %v1345_v35  ;;  %v1346_v37 = vmul.f32 0.03125, %v1340_v36 }
 0xb9c   :  { %v1343_v12 = vpop.xlane.xlu0 %1342 }
 0xb9d   :  { %4126 = vrsqrt.f32 %v1349_v34  ;;  %v1350_v14 = vadd.f32 1e-05, %v1346_v37  ;;  %v1347_v15 = vmul.f32 0.03125, %v1343_v12 }
 0xb9f   :  { %4128 = vrsqrt.f32 %v1350_v14  ;;  %v1351_v22 = vadd.f32 1e-05, %v1347_v15 }
 0xba1   :  { %4130 = vrsqrt.f32 %v1351_v22 }
 0xba5   :  { %v4125_v38 = vpop.eup %4124 }
 0xba6   :  { %v1356_v41 = vmul.f32 %v4125_v38, %v1324_v26 }
 0xba7   :  { %v4127_v42 = vpop.eup %4126 }
 0xba8   :  { %v1357_v29 = vmul.f32 %v4127_v42, %v1325_v27  ;;  %v1366_v43 = vmul.f32 %v3483_v31, %v1356_v41  ;;  %v1458_v27 = vld [vmem:[%s5190_s11 + $0x20] sm:$0xff] }
 0xba9   :  { %v4129_v44 = vpop.eup %4128  ;;  %v1466_v61 = vpack.c.bf16 %v1459_v60, %v1458_v27  ;;  %v3493_v27 = vld [vmem:[%s5240_s1 + $0x20] sm:$0xff]  ;;  %v3494_v60 = vld [vmem:[%s5240_s1 + $0x28] sm:$0xff] }
 0xbaa   :  { %v1358_v47 = vmul.f32 %v4129_v44, %v1326_v63  ;;  %v1367_v49 = vmul.f32 %v3483_v31, %v1357_v29  ;;  %v1376_v53 = vadd.f32 %v3484_v45, %v1366_v43  ;;  %v1461_v63 = vld [vmem:[%s5190_s11 + $0x38] sm:$0xff] }
 0xbab   :  { %v4131_v50 = vpop.eup %4130  ;;  %v1467_v21 = vpack.c.bf16 %v1461_v63, %v1460_v62  ;;  %v3495_v62 = vld [vmem:[%s5240_s1 + $0x30] sm:$0xff]  ;;  %v3496_v63 = vld [vmem:[%s5240_s1 + $0x38] sm:$0xff]  ;;  %s5260_s1 = smov 104  }
 0xbac   :  { %v1368_v51 = vmul.f32 %v3483_v31, %v1358_v47  ;;  %v1359_v52 = vmul.f32 %v4131_v50, %v1327_v5  ;;  %v1377_v54 = vadd.f32 %v3484_v45, %v1367_v49 }
 0xbae   :  { %v1369_v55 = vmul.f32 %v3483_v31, %v1359_v52  ;;  %v1384_v18 = vpack.c.bf16 %v1377_v54, %v1376_v53  ;;  %v1378_v23 = vadd.f32 %v3484_v45, %v1368_v51 }
 0xbb0   :  { %3816 = vmatprep.mubr.msk.bf16.mxu1 %vm245_vm2, %v1384_v18  ;;  %v1379_v26 = vadd.f32 %v3484_v45, %v1369_v55 }
 0xbb2   :  { %v1385_v58 = vpack.c.bf16 %v1379_v26, %v1378_v23 }
 0xbb4   :  { %3817 = vmatmul.mubr.msk.bf16.vlgmr.msra.gmra.mrb[20].mxu1 %vm245_vm2, %v1385_v58 }
 0xbb5   :  { %3821 = vmatpush3.bf16.msra.mxu1 %v1464_v19 }
 0xbb6   :  { %3822 = vmatprep.subr.bf16.mxu1 %v1465_v20 }
 0xbb9   :  { %3823 = vmatpush3.bf16.msra.mxu1 %v1465_v20 }
 0xbba   :  { %3824 = vmatprep.subr.bf16.mxu1 %v1466_v61 }
 0xbbd   :  { %3825 = vmatpush3.bf16.msra.mxu1 %v1466_v61  ;;  %v1625_v61 = vpack.c.bf16 %v3494_v60, %v3493_v27 }
 0xbbe   :  { %3826 = vmatprep.subr.bf16.mxu1 %v1467_v21 }
 0xbbf   :  { %3832 = vmatprep.subr.bf16.mxu0 %v1625_v61 }
 0xbc0   :  { %3833 = vmatpush3.bf16.msra.mxu0 %v1625_v61 }
 0xbc1   :  { %3827 = vmatpush3.bf16.msra.mxu1 %v1467_v21  ;;  %v1626_v21 = vpack.c.bf16 %v3496_v63, %v3495_v62 }
 0xbc3   :  { %3834 = vmatprep.subr.bf16.mxu0 %v1626_v21 }
 0xbc4   :  { %3835 = vmatpush3.bf16.msra.mxu0 %v1626_v21 }
 0xc87   :  { %v3818_v2 = vpop.f32.mrb[20].mxu1 }
 0xc88   :  { %v1444_v5 = vadd.f32 %v3818_v2, %v3485_v24  ;;  %v1435_v6 = vpop.f32.mrb[21].mxu1 }
 0xc89   :  { %v1436_v4 = vadd.f32 %v3485_v24, %v1435_v6  ;;  %v3819_v3 = vpop.f32.mrb[22].mxu1 }
 0xc8a   :  { %v1447_v7 = vadd.f32 %v3819_v3, %v3485_v24  ;;  %v1438_v40 = vpop.f32.mrb[23].mxu1  ;;  %v1452_v39 = vmax.f32 %v1444_v5, 0.0 }
 0xc8b   :  { %v1439_v9 = vadd.f32 %v3485_v24, %v1438_v40  ;;  %v1450_v10 = vmax.f32 %v1436_v4, 0.0 }
 0xc8c   :  { %v1453_v1 = vmax.f32 %v1447_v7, 0.0 }
 0xc8d   :  { %v1451_v13 = vmax.f32 %v1439_v9, 0.0 }
 0xc8e   :  { %v1463_v16 = vpack.c.bf16 %v1453_v1, %v1452_v39 }
 0xc8f   :  { %v1462_v17 = vpack.c.bf16 %v1451_v13, %v1450_v10 }
 0xc91   :  { %3828 = vmatprep.mubr.msk.bf16.mxu1 %vm1475_vm9, %v1462_v17 }
 0xc92   :  { %3829 = vmatmul.mubr.msk.bf16.vlgmr.msra.gmra.mrb[24].mxu1 %vm1475_vm9, %v1463_v16  ;;  %v3491_v16 = vld [vmem:[%s5195_s13] ss:$0 sm:$0xff] }
 0xd65   :  { %v3830_v19 = vpop.f32.mrb[24].mxu1 }
 0xd66   :  { %v1516_v28 = vpop.f32.mrb[25].mxu1  ;;  %v1525_v32 = vadd.f32 %v3830_v19, %v3488_v11 }
 0xd67   :  { %v1517_v30 = vadd.f32 %v3488_v11, %v1516_v28  ;;  %v3831_v33 = vpop.f32.mrb[26].mxu1 }
 0xd68   :  { %v1519_v35 = vpop.f32.mrb[27].mxu1  ;;  %v1528_v36 = vadd.f32 %v3831_v33, %v3488_v11  ;;  %v1533_v15 = vadd.f32 %v1525_v32, %v1378_v23 }
 0xd69   :  { %v1520_v34 = vadd.f32 %v3488_v11, %v1519_v35  ;;  %v1531_v37 = vadd.f32 %v1517_v30, %v1376_v53  ;;  %v3492_v30 = vld [vmem:[%s5196_s14] ss:$0 sm:$0xff] }
 0xd6a   :  { %v1534_v38 = vadd.f32 %v1528_v36, %v1379_v26  ;;  %v1543_v31 = vsel %vm245_vm2, %v1533_v15, 0.0 }
 0xd6b   :  { %v1537_v12 = vsel %vm245_vm2, %v1531_v37, 0.0  ;;  %v1532_v14 = vadd.f32 %v1520_v34, %v1377_v54 }
 0xd6c   :  { %1538 = vadd.xlane.f32.xlu1 %v1537_v12  ;;  %v1546_v41 = vsel %vm245_vm2, %v1534_v38, 0.0 }
 0xd6d   :  { %v1540_v22 = vsel %vm245_vm2, %v1532_v14, 0.0 }
 0xd6e   :  { %1541 = vadd.xlane.f32.xlu0 %v1540_v22 }
 0xd70   :  { %1544 = vadd.xlane.f32.xlu1 %v1543_v31 }
 0xd72   :  { %1547 = vadd.xlane.f32.xlu0 %v1546_v41 }
 0xdf9   :  { %v1539_v42 = vpop.xlane.xlu1 %1538 }
 0xdfa   :  { %v1549_v29 = vmul.f32 0.03125, %v1539_v42 }
 0xdfb   :  { %v1542_v43 = vpop.xlane.xlu0 %1541 }
 0xdfc   :  { %v1553_v44 = vsub.f32 %v1531_v37, %v1549_v29  ;;  %v1550_v45 = vmul.f32 0.03125, %v1542_v43  ;;  %v3503_v29 = vld [vmem:[%s5242_s28 + $0x1] ss:$0 sm:$0xff]  ;;  %s5254_s28 = smov 88  }
 0xdfd   :  { %v1545_v47 = vpop.xlane.xlu1 %1544 }
 0xdfe   :  { %v1554_v49 = vsub.f32 %v1532_v14, %v1550_v45  ;;  %v1551_v50 = vmul.f32 0.03125, %v1545_v47  ;;  %v1557_v51 = vmul.f32 %v1553_v44, %v1553_v44 }
 0xdff   :  { %v1548_v52 = vpop.xlane.xlu0 %1547 }
 0xe00   :  { %v1555_v53 = vsub.f32 %v1533_v15, %v1551_v50  ;;  %v1552_v54 = vmul.f32 0.03125, %v1548_v52  ;;  %v1561_v55 = vsel %vm245_vm2, %v1557_v51, 0.0  ;;  %v1558_v18 = vmul.f32 %v1554_v49, %v1554_v49 }
 0xe01   :  { %1562 = vadd.xlane.f32.xlu1 %v1561_v55 }
 0xe02   :  { %v1556_v25 = vsub.f32 %v1534_v38, %v1552_v54  ;;  %v1564_v57 = vsel %vm245_vm2, %v1558_v18, 0.0  ;;  %v1559_v23 = vmul.f32 %v1555_v53, %v1555_v53 }
 0xe03   :  { %1565 = vadd.xlane.f32.xlu0 %v1564_v57 }
 0xe04   :  { %v1567_v26 = vsel %vm245_vm2, %v1559_v23, 0.0  ;;  %v1560_v58 = vmul.f32 %v1556_v25, %v1556_v25 }
 0xe05   :  { %1568 = vadd.xlane.f32.xlu1 %v1567_v26 }
 0xe06   :  { %v1570_v20 = vsel %vm245_vm2, %v1560_v58, 0.0 }
 0xe07   :  { %1571 = vadd.xlane.f32.xlu0 %v1570_v20 }
 0xe8e   :  { %v1563_v24 = vpop.xlane.xlu1 %1562 }
 0xe8f   :  { %v1573_v2 = vmul.f32 0.03125, %v1563_v24 }
 0xe90   :  { %v1566_v5 = vpop.xlane.xlu0 %1565 }
 0xe91   :  { %v1577_v6 = vadd.f32 1e-05, %v1573_v2  ;;  %v1574_v4 = vmul.f32 0.03125, %v1566_v5 }
 0xe92   :  { %v1569_v3 = vpop.xlane.xlu1 %1568 }
 0xe93   :  { %4132 = vrsqrt.f32 %v1577_v6  ;;  %v1578_v7 = vadd.f32 1e-05, %v1574_v4  ;;  %v1575_v40 = vmul.f32 0.03125, %v1569_v3 }
 0xe94   :  { %v1572_v9 = vpop.xlane.xlu0 %1571 }
 0xe95   :  { %4134 = vrsqrt.f32 %v1578_v7  ;;  %v1579_v39 = vadd.f32 1e-05, %v1575_v40  ;;  %v1576_v1 = vmul.f32 0.03125, %v1572_v9 }
 0xe97   :  { %4136 = vrsqrt.f32 %v1579_v39  ;;  %v1580_v10 = vadd.f32 1e-05, %v1576_v1 }
 0xe99   :  { %4138 = vrsqrt.f32 %v1580_v10 }
 0xe9d   :  { %v4133_v13 = vpop.eup %4132 }
 0xe9e   :  { %v1585_v17 = vmul.f32 %v4133_v13, %v1553_v44 }
 0xe9f   :  { %v4135_v11 = vpop.eup %4134 }
 0xea0   :  { %v1586_v19 = vmul.f32 %v4135_v11, %v1554_v49  ;;  %v1595_v28 = vmul.f32 %v3491_v16, %v1585_v17 }
 0xea1   :  { %v4137_v32 = vpop.eup %4136 }
 0xea2   :  { %v1587_v33 = vmul.f32 %v4137_v32, %v1555_v53  ;;  %v1596_v35 = vmul.f32 %v3491_v16, %v1586_v19  ;;  %v4760_v12 = vadd.f32 %v3492_v30, %v1595_v28 }
 0xea3   :  { %v4139_v36 = vpop.eup %4138 }
 0xea4   :  { %v1597_v34 = vmul.f32 %v3491_v16, %v1587_v33  ;;  %v1588_v37 = vmul.f32 %v4139_v36, %v1556_v25  ;;  %v4762_v14 = vadd.f32 %v3492_v30, %v1596_v35 }
 0xea6   :  { %v1598_v15 = vmul.f32 %v3491_v16, %v1588_v37  ;;  %v1623_v22 = vpack.c.bf16 %v4762_v14, %v4760_v12  ;;  %v4767_v38 = vadd.f32 %v3492_v30, %v1597_v34 }
 0xea8   :  { %3836 = vmatprep.mubr.msk.bf16.mxu0 %vm245_vm2, %v1623_v22  ;;  %v4769_v31 = vadd.f32 %v3492_v30, %v1598_v15 }
 0xeaa   :  { %v1624_v41 = vpack.c.bf16 %v4769_v31, %v4767_v38 }
 0xeac   :  { %3837 = vmatmul.mubr.msk.bf16.vlgmr.msra.gmra.mrb[24].mxu0 %vm245_vm2, %v1624_v41 }
 0xf7f   :  { %v3838_v42 = vpop.f32.mrb[24].mxu0 }
 0xf80   :  { %v1673_v43 = vpop.f32.mrb[25].mxu0  ;;  %v1682_v45 = vadd.f32 %v3838_v42, %v3503_v29 }
 0xf81   :  { %v3839_v44 = vpop.f32.mrb[26].mxu0  ;;  %v1674_v50 = vadd.f32 %v3503_v29, %v1673_v43 }
 0xf82   :  { %v1685_v47 = vadd.f32 %v3839_v44, %v3503_v29  ;;  %v1676_v49 = vpop.f32.mrb[27].mxu0 }
 0xf83   :  { %v1677_v51 = vadd.f32 %v3503_v29, %v1676_v49 }
 0xf84   :  { %v4777_v52 = vpack.c.bf16 %v1685_v47, %v1682_v45 }
 0xf85   :  { %v4779_v53 = vpack.c.bf16 %v1677_v51, %v1674_v50 }
 0xf86   :  { %1694 = vrot.lane.b32.xlu0 %v4777_v52, %s4240_s29 }
 0xf87   :  { %1692 = vrot.lane.b32.xlu1 %v4779_v53, %s4240_s29  ;;  %3844 = vmatprep.mubr.msk.bf16.mxu0 %vm309_vm3, %v4779_v53  ;;  %s5255_s29 = smov 120  }
 0xff8   :  { %v1695_v18 = vpop.permute.xlu0 %1694 }
 0xff9   :  { %v1693_v54 = vpop.permute.xlu1 %1692  ;;  %v1706_v25 = vsel %vm309_vm3, %v1695_v18, 0 }
 0xffa   :  { %v1703_v55 = vsel %vm309_vm3, %v1693_v54, 0  ;;  %4033 = vmatprep.subr.msk.bf16.mxu0 %vm309_vm3, %v1693_v54 }
 0xffb   :  { %3841 = vmatpush3.bf16.xpose.msra.mxu0 %v1703_v55 }
 0xffc   :  { %4034 = vmatprep.subr.msk.bf16.mxu0 %vm309_vm3, %v1695_v18 }
0x1003   :  { %3843 = vmatpush3.bf16.xpose.msra.mxu0 %v1706_v25 }
0x100a   :  { %3845 = vmatmul.mubr.msk.bf16.vlgmr.msra.gmra.mrb[28].mxu0 %vm309_vm3, %v4777_v52 }
0x10dd   :  { %v3846_v57 = vpop.f32.mrb[28].mxu0 }
0x10de   :  { %v1742_v23 = vpop.f32.mrb[29].mxu0  ;;  %v1759_v26 = vmul.f32 0.35355338, %v3846_v57 }
0x10df   :  { %v1757_v58 = vmul.f32 0.35355338, %v1742_v23  ;;  %v3847_v20 = vpop.f32.mrb[30].mxu0 }
0x10e0   :  { %v1745_v27 = vpop.f32.mrb[31].mxu0  ;;  %v1760_v60 = vmul.f32 0.35355338, %v3847_v20  ;;  %v1763_v24 = vsel %vm4455_vm4, %v1759_v26, -1e+30 }
0x10e1   :  { %v1758_v61 = vmul.f32 0.35355338, %v1745_v27  ;;  %v1761_v62 = vsel %vm4459_vm5, %v1757_v58, -1e+30  ;;  %v1771_v6 = vsel %vm245_vm2, %v1763_v24, -inf }
0x10e2   :  { %v1765_v63 = vsel %vm245_vm2, %v1761_v62, -inf  ;;  %v1764_v5 = vsel %vm4475_vm7, %v1760_v60, -1e+30 }
0x10e3   :  { %1766 = vmax.xlane.f32.xlu1 %v1765_v63  ;;  %v1762_v21 = vsel %vm4465_vm6, %v1758_v61, -1e+30  ;;  %v1774_v4 = vsel %vm245_vm2, %v1764_v5, -inf }
0x10e4   :  { %v1768_v2 = vsel %vm245_vm2, %v1762_v21, -inf }
0x10e5   :  { %1769 = vmax.xlane.f32.xlu0 %v1768_v2 }
0x10e7   :  { %1772 = vmax.xlane.f32.xlu1 %v1771_v6 }
0x10e9   :  { %1775 = vmax.xlane.f32.xlu0 %v1774_v4 }
0x10f8   :  { %1811 = vrot.lane.b32.xlu1 %v4779_v53, %s4241_s2 }
0x1170   :  { %v1767_v3 = vpop.xlane.xlu1 %1766 }
0x1171   :  { %v1777_v7 = vsub.f32 %v1761_v62, %v1767_v3 }
0x1172   :  { %v1770_v40 = vpop.xlane.xlu0 %1769 }
0x1173   :  { %v1778_v39 = vsub.f32 %v1762_v21, %v1770_v40  ;;  %v1781_v10 = vmul.f32 1.442695, %v1777_v7 }
0x1174   :  { %v1773_v9 = vpop.xlane.xlu1 %1772 }
0x1175   :  { %v1779_v1 = vsub.f32 %v1763_v24, %v1773_v9  ;;  %v1783_v19 = vmul.f32 1.442695, %v1778_v39 }
0x1176   :  { %v1776_v13 = vpop.xlane.xlu0 %1775 }
0x1177   :  { %v1785_v16 = vmul.f32 1.442695, %v1779_v1  ;;  %v1780_v17 = vsub.f32 %v1764_v5, %v1776_v13 }
0x1178   :  { %v1812_v11 = vpop.permute.xlu1 %1811 }
0x1179   :  { %4140 = vpow2.f32 %v1785_v16  ;;  %v1787_v28 = vmul.f32 1.442695, %v1780_v17  ;;  %3848 = vmatprep.subr.bf16.mxu1 %v1812_v11 }
0x117a   :  { %4142 = vpow2.f32 %v1781_v10  ;;  %3849 = vmatpush3.bf16.msra.mxu1 %v1812_v11 }
0x117b   :  { %4144 = vpow2.f32 %v1787_v28 }
0x117c   :  { %4146 = vpow2.f32 %v1783_v19 }
0x1183   :  { %v4141_v32 = vpop.eup %4140 }
0x1184   :  { %v4143_v30 = vpop.eup %4142  ;;  %v1795_v33 = vsel %vm245_vm2, %v4141_v32, 0.0 }
0x1185   :  { %v4145_v35 = vpop.eup %4144  ;;  %1796 = vadd.xlane.f32.xlu1 %v1795_v33  ;;  %v1789_v37 = vsel %vm245_vm2, %v4143_v30, 0.0 }
0x1186   :  { %v1798_v36 = vsel %vm245_vm2, %v4145_v35, 0.0  ;;  %v4147_v34 = vpop.eup %4146 }
0x1187   :  { %1799 = vadd.xlane.f32.xlu0 %v1798_v36  ;;  %v1792_v15 = vsel %vm245_vm2, %v4147_v34, 0.0 }
0x1189   :  { %1790 = vadd.xlane.f32.xlu1 %v1789_v37 }
0x118b   :  { %1793 = vadd.xlane.f32.xlu0 %v1792_v15 }
0x119a   :  { %1879 = vrot.lane.b32.xlu1 %v4779_v53, %s5254_s28 }
0x119e   :  { %1881 = vrot.lane.b32.xlu1 %v4777_v52, %s5254_s28 }
0x11a1   :  { %1813 = vrot.lane.b32.xlu0 %v4777_v52, %s4241_s2  ;;  %s5258_s2 = smov 56  }
0x11a2   :  { %1877 = vrot.lane.b32.xlu1 %v4777_v52, %s5255_s29 }
0x11a5   :  { %1875 = vrot.lane.b32.xlu0 %v4779_v53, %s5255_s29 }
0x11a6   :  { %2184 = vrot.lane.b32.xlu1 %v4777_v52, %s5256_s30 }
0x11a9   :  { %2182 = vrot.lane.b32.xlu0 %v4779_v53, %s5256_s30  ;;  %s5262_s30 = smov 40  }
0x11aa   :  { %2180 = vrot.lane.b32.xlu1 %v4777_v52, %s5257_s24 }
0x11ad   :  { %2178 = vrot.lane.b32.xlu0 %v4779_v53, %s5257_s24 }
0x1212   :  { %v1797_v22 = vpop.xlane.xlu1 %1796 }
0x1214   :  { %v1800_v41 = vpop.xlane.xlu0 %1799 }
0x1215   :  { %4148 = vrcp.f32 %v1800_v41 }
0x1216   :  { %v1791_v42 = vpop.xlane.xlu1 %1790 }
0x1217   :  { %4150 = vrcp.f32 %v1791_v42 }
0x1218   :  { %4152 = vrcp.f32 %v1797_v22  ;;  %v1794_v29 = vpop.xlane.xlu0 %1793 }
0x1219   :  { %4154 = vrcp.f32 %v1794_v29 }
0x121a   :  { %v1880_v44 = vpop.permute.xlu1 %1879 }
0x121b   :  { %v1890_v23 = vsel %vm309_vm3, %v1880_v44, 0 }
0x121c   :  { %v1814_v43 = vpop.permute.xlu0 %1813 }
0x121d   :  { %3850 = vmatprep.subr.bf16.mxu1 %v1814_v43 }
0x121e   :  { %3851 = vmatpush3.bf16.msra.mxu1 %v1814_v43  ;;  %v1882_v58 = vpop.permute.xlu1 %1881 }
0x121f   :  { %4035 = vmatprep.subr.msk.bf16.mxu1 %vm309_vm3, %v1880_v44  ;;  %v4149_v45 = vpop.eup %4148  ;;  %v1893_v20 = vsel %vm309_vm3, %v1882_v58, 0 }
0x1220   :  { %v1808_v51 = vmul.f32 %v4149_v45, %v4145_v35  ;;  %v1876_v26 = vpop.permute.xlu0 %1875 }
0x1221   :  { %v4151_v47 = vpop.eup %4150 }
0x1222   :  { %v4153_v49 = vpop.eup %4152  ;;  %v1802_v54 = vmul.f32 %v4151_v47, %v4143_v30  ;;  %v1878_v60 = vpop.permute.xlu1 %1877 }
0x1223   :  { %v4155_v50 = vpop.eup %4154  ;;  %v1806_v18 = vmul.f32 %v4153_v49, %v4141_v32 }
0x1224   :  { %v1804_v55 = vmul.f32 %v4155_v50, %v4147_v34  ;;  %v2183_v27 = vpop.permute.xlu0 %2182 }
0x1225   :  { %v1810_v57 = vpack.c.bf16 %v1808_v51, %v1806_v18  ;;  %v2193_v61 = vsel %vm309_vm3, %v2183_v27, 0 }
0x1226   :  { %v1809_v25 = vpack.c.bf16 %v1804_v55, %v1802_v54  ;;  %v2185_v63 = vpop.permute.xlu1 %2184 }
0x1227   :  { %v2196_v21 = vsel %vm309_vm3, %v2185_v63, 0 }
0x1228   :  { %3852 = vmatprep.mubr.msk.bf16.mxu1 %vm245_vm2, %v1809_v25  ;;  %v2179_v62 = vpop.permute.xlu0 %2178 }
0x1229   :  { %3853 = vmatmul.mubr.msk.bf16.vlgmr.msra.gmra.mrb[28].mxu1 %vm245_vm2, %v1810_v57 }
0x122a   :  { %3857 = vmatpush3.bf16.xpose.msra.mxu1 %v1890_v23  ;;  %3860 = vmatprep.mubr.msk.bf16.mxu1 %vm309_vm3, %v1876_v26  ;;  %v2181_v24 = vpop.permute.xlu1 %2180 }
0x122b   :  { %4036 = vmatprep.subr.msk.bf16.mxu1 %vm309_vm3, %v1882_v58 }
0x1232   :  { %3859 = vmatpush3.bf16.xpose.msra.mxu1 %v1893_v20 }
0x1233   :  { %4039 = vmatprep.subr.msk.bf16.mxu1 %vm309_vm3, %v2183_v27 }
0x1239   :  { %3861 = vmatmul.mubr.msk.bf16.vlgmr.msra.gmra.mrb[32].mxu1 %vm309_vm3, %v1878_v60 }
0x123a   :  { %3885 = vmatpush3.bf16.xpose.msra.mxu1 %v2193_v61  ;;  %3888 = vmatprep.mubr.msk.bf16.mxu1 %vm309_vm3, %v2179_v62 }
0x123b   :  { %4040 = vmatprep.subr.msk.bf16.mxu1 %vm309_vm3, %v2185_v63 }
0x1242   :  { %3887 = vmatpush3.bf16.xpose.msra.mxu1 %v2196_v21 }
0x1249   :  { %3889 = vmatmul.mubr.msk.bf16.vlgmr.msra.gmra.mrb[36].mxu1 %vm309_vm3, %v2181_v24 }
0x12fc   :  { %v4843_v2 = vpop.f32.mrb[28].mxu1 }
0x12fd   :  { %v4845_v5 = vpop.f32.mrb[29].mxu1 }
0x12fe   :  { %v4847_v6 = vpop.f32.mrb[30].mxu1 }
0x12ff   :  { %v1873_v4 = vpack.c.bf16 %v4847_v6, %v4843_v2  ;;  %v4851_v3 = vpop.f32.mrb[31].mxu1  ;;  %v3500_v2 = vld [vmem:[%s5251_s9 + $0x30] sm:$0xff] }
0x1300   :  { %v1872_v7 = vpack.c.bf16 %v4851_v3, %v4845_v5  ;;  %v2364_v6 = vpack.c.bf16 %v3500_v2, %v3500_v2 }
0x130c   :  { %v3862_v40 = vpop.f32.mrb[32].mxu1 }
0x130d   :  { %v1929_v9 = vpop.f32.mrb[33].mxu1  ;;  %v1946_v39 = vmul.f32 0.35355338, %v3862_v40 }
0x130e   :  { %v1944_v1 = vmul.f32 0.35355338, %v1929_v9  ;;  %v3863_v10 = vpop.f32.mrb[34].mxu1 }
0x130f   :  { %v1932_v13 = vpop.f32.mrb[35].mxu1  ;;  %v1947_v19 = vmul.f32 0.35355338, %v3863_v10  ;;  %v1950_v32 = vsel %vm4455_vm4, %v1946_v39, -1e+30 }
0x1310   :  { %v1945_v16 = vmul.f32 0.35355338, %v1932_v13  ;;  %v1948_v17 = vsel %vm4459_vm5, %v1944_v1, -1e+30  ;;  %v1958_v33 = vsel %vm245_vm2, %v1950_v32, -inf }
0x1311   :  { %v1952_v11 = vsel %vm245_vm2, %v1948_v17, -inf  ;;  %v1951_v35 = vsel %vm4475_vm7, %v1947_v19, -1e+30 }
0x1312   :  { %v1949_v28 = vsel %vm4465_vm6, %v1945_v16, -1e+30  ;;  %1953 = vmax.xlane.f32.xlu0 %v1952_v11  ;;  %v1961_v36 = vsel %vm245_vm2, %v1951_v35, -inf }
0x1313   :  { %v1955_v30 = vsel %vm245_vm2, %v1949_v28, -inf }
0x1314   :  { %1956 = vmax.xlane.f32.xlu1 %v1955_v30 }
0x1316   :  { %1959 = vmax.xlane.f32.xlu0 %v1958_v33 }
0x131a   :  { %1962 = vmax.xlane.f32.xlu0 %v1961_v36 }
0x131c   :  { %v3890_v34 = vpop.f32.mrb[36].mxu1 }
0x131d   :  { %v2232_v37 = vpop.f32.mrb[37].mxu1  ;;  %v2249_v61 = vmul.f32 0.35355338, %v3890_v34 }
0x131e   :  { %v3891_v15 = vpop.f32.mrb[38].mxu1  ;;  %v2247_v60 = vmul.f32 0.35355338, %v2232_v37 }
0x131f   :  { %v2235_v22 = vpop.f32.mrb[39].mxu1  ;;  %v2253_v24 = vsel %vm4455_vm4, %v2249_v61, -1e+30  ;;  %v2250_v40 = vmul.f32 0.35355338, %v3891_v15 }
0x1320   :  { %v2248_v62 = vmul.f32 0.35355338, %v2235_v22  ;;  %v2251_v63 = vsel %vm4459_vm5, %v2247_v60, -1e+30  ;;  %v2261_v1 = vsel %vm245_vm2, %v2253_v24, -inf }
0x1321   :  { %v2255_v21 = vsel %vm245_vm2, %v2251_v63, -inf  ;;  %v2254_v10 = vsel %vm4475_vm7, %v2250_v40, -1e+30 }
0x1322   :  { %v2252_v9 = vsel %vm4465_vm6, %v2248_v62, -1e+30  ;;  %v2264_v13 = vsel %vm245_vm2, %v2254_v10, -inf }
0x1323   :  { %v2258_v39 = vsel %vm245_vm2, %v2252_v9, -inf }
0x139f   :  { %v1954_v41 = vpop.xlane.xlu0 %1953 }
0x13a0   :  { %v1964_v42 = vsub.f32 %v1948_v17, %v1954_v41 }
0x13a1   :  { %v1957_v29 = vpop.xlane.xlu1 %1956 }
0x13a2   :  { %v1968_v45 = vmul.f32 1.442695, %v1964_v42  ;;  %v1965_v47 = vsub.f32 %v1949_v28, %v1957_v29 }
0x13a3   :  { %v1960_v43 = vpop.xlane.xlu0 %1959 }
0x13a4   :  { %v1966_v44 = vsub.f32 %v1950_v32, %v1960_v43  ;;  %v1970_v54 = vmul.f32 1.442695, %v1965_v47 }
0x13a6   :  { %v1972_v49 = vmul.f32 1.442695, %v1966_v44 }
0x13a7   :  { %v1963_v50 = vpop.xlane.xlu0 %1962 }
0x13a8   :  { %4156 = vpow2.f32 %v1972_v49  ;;  %v1967_v51 = vsub.f32 %v1951_v35, %v1963_v50 }
0x13a9   :  { %4158 = vpow2.f32 %v1968_v45 }
0x13aa   :  { %v1974_v55 = vmul.f32 1.442695, %v1967_v51 }
0x13ac   :  { %4160 = vpow2.f32 %v1974_v55 }
0x13ad   :  { %4162 = vpow2.f32 %v1970_v54 }
0x13b2   :  { %v4867_v18 = vpop.eup %4156 }
0x13b3   :  { %v1982_v25 = vsel %vm245_vm2, %v4867_v18, 0.0  ;;  %v4159_v57 = vpop.eup %4158 }
0x13b4   :  { %1983 = vadd.xlane.f32.xlu1 %v1982_v25  ;;  %v1976_v26 = vsel %vm245_vm2, %v4159_v57, 0.0 }
0x13b6   :  { %v4161_v23 = vpop.eup %4160 }
0x13b7   :  { %v1985_v58 = vsel %vm245_vm2, %v4161_v23, 0.0  ;;  %v4163_v20 = vpop.eup %4162 }
0x13b8   :  { %1977 = vadd.xlane.f32.xlu1 %v1976_v26  ;;  %1986 = vadd.xlane.f32.xlu0 %v1985_v58  ;;  %v1979_v27 = vsel %vm245_vm2, %v4163_v20, 0.0 }
0x13bc   :  { %1980 = vadd.xlane.f32.xlu0 %v1979_v27 }
0x13c9   :  { %1998 = vrot.lane.b32.xlu1 %v4779_v53, %s5258_s2 }
0x13cd   :  { %2431 = vrot.lane.b32.xlu1 %v4779_v53, %s5259_s25 }
0x13d1   :  { %2433 = vrot.lane.b32.xlu1 %v4777_v52, %s5259_s25 }
0x13d2   :  { %2000 = vrot.lane.b32.xlu0 %v4777_v52, %s5258_s2 }
0x13d5   :  { %2429 = vrot.lane.b32.xlu1 %v4777_v52, %s5260_s1 }
0x13d6   :  { %2427 = vrot.lane.b32.xlu0 %v4779_v53, %s5260_s1 }
0x13f5   :  { %2256 = vmax.xlane.f32.xlu0 %v2255_v21 }
0x13f9   :  { %2259 = vmax.xlane.f32.xlu1 %v2258_v39  ;;  %2262 = vmax.xlane.f32.xlu0 %v2261_v1  ;;  %v3499_v39 = vld [vmem:[%s5251_s9 + $0x28] sm:$0xff] }
0x13fa   :  { %v2061_v1 = vpack.c.bf16 %v3499_v39, %v3499_v39 }
0x13fd   :  { %2265 = vmax.xlane.f32.xlu0 %v2264_v13  ;;  %v3498_v13 = vld [vmem:[%s5251_s9 + $0x20] sm:$0xff] }
0x1441   :  { %v1984_v16 = vpop.xlane.xlu1 %1983 }
0x1445   :  { %v1978_v17 = vpop.xlane.xlu1 %1977  ;;  %v1987_v11 = vpop.xlane.xlu0 %1986 }
0x1446   :  { %4164 = vrcp.f32 %v1987_v11 }
0x1447   :  { %4166 = vrcp.f32 %v1978_v17 }
0x1448   :  { %4168 = vrcp.f32 %v1984_v16  ;;  %v1874_v16 = vpack.c.bf16 %v3498_v13, %v3498_v13 }
0x1449   :  { %v1999_v19 = vpop.permute.xlu1 %1998  ;;  %v1981_v28 = vpop.xlane.xlu0 %1980 }
0x144a   :  { %4170 = vrcp.f32 %v1981_v28  ;;  %3864 = vmatprep.subr.bf16.mxu0 %v1999_v19 }
0x144b   :  { %3865 = vmatpush3.bf16.msra.mxu0 %v1999_v19 }
0x144d   :  { %v2432_v32 = vpop.permute.xlu1 %2431  ;;  %v2001_v30 = vpop.permute.xlu0 %2000 }
0x144e   :  { %v2442_v33 = vsel %vm309_vm3, %v2432_v32, 0  ;;  %3866 = vmatprep.subr.bf16.mxu0 %v2001_v30  ;;  %4042 = vmatprep.subr.msk.bf16.mxu1 %vm309_vm3, %v2432_v32 }
0x144f   :  { %3867 = vmatpush3.bf16.msra.mxu0 %v2001_v30  ;;  %3907 = vmatpush3.bf16.xpose.msra.mxu1 %v2442_v33 }
0x1450   :  { %v4165_v35 = vpop.eup %4164  ;;  %4037 = vmatprep.subr.msk.bf16.mxu0 %vm682_vm8, %v2061_v1 }
0x1451   :  { %v2434_v36 = vpop.permute.xlu1 %2433  ;;  %v2428_v34 = vpop.permute.xlu0 %2427  ;;  %v1995_v41 = vmul.f32 %v4165_v35, %v4161_v23 }
0x1452   :  { %v4167_v37 = vpop.eup %4166  ;;  %4043 = vmatprep.subr.msk.bf16.mxu1 %vm309_vm3, %v2434_v36  ;;  %3910 = vmatprep.mubr.msk.bf16.mxu1 %vm309_vm3, %v2428_v34  ;;  %v2445_v44 = vsel %vm309_vm3, %v2434_v36, 0 }
0x1453   :  { %v4169_v15 = vpop.eup %4168  ;;  %v1989_v42 = vmul.f32 %v4167_v37, %v4159_v57 }
0x1454   :  { %v4171_v22 = vpop.eup %4170  ;;  %v1993_v43 = vmul.f32 %v4169_v15, %v4867_v18 }
0x1455   :  { %v1991_v29 = vmul.f32 %v4171_v22, %v4163_v20  ;;  %v2430_v49 = vpop.permute.xlu1 %2429  ;;  %v2127_v22 = vsel %vm682_vm8, %v1874_v16, 0 }
0x1456   :  { %v1997_v47 = vpack.c.bf16 %v1995_v41, %v1993_v43 }
0x1457   :  { %3909 = vmatpush3.bf16.xpose.msra.mxu1 %v2445_v44  ;;  %v1996_v45 = vpack.c.bf16 %v1991_v29, %v1989_v42 }
0x1459   :  { %3868 = vmatprep.mubr.msk.bf16.mxu0 %vm245_vm2, %v1996_v45 }
0x145a   :  { %3869 = vmatmul.mubr.msk.bf16.vlgmr.msra.gmra.mrb[32].mxu0 %vm245_vm2, %v1997_v47 }
0x145e   :  { %3911 = vmatmul.mubr.msk.bf16.vlgmr.msra.gmra.mrb[40].mxu1 %vm309_vm3, %v2430_v49 }
0x1482   :  { %v2257_v50 = vpop.xlane.xlu0 %2256 }
0x1483   :  { %v2267_v51 = vsub.f32 %v2251_v63, %v2257_v50 }
0x1485   :  { %v2271_v18 = vmul.f32 1.442695, %v2267_v51 }
0x1486   :  { %v2260_v54 = vpop.xlane.xlu1 %2259  ;;  %v2263_v55 = vpop.xlane.xlu0 %2262 }
0x1487   :  { %v2269_v25 = vsub.f32 %v2253_v24, %v2263_v55  ;;  %v2268_v57 = vsub.f32 %v2252_v9, %v2260_v54 }
0x1489   :  { %v2275_v23 = vmul.f32 1.442695, %v2269_v25  ;;  %v2273_v20 = vmul.f32 1.442695, %v2268_v57 }
0x148a   :  { %v2266_v26 = vpop.xlane.xlu0 %2265 }
0x148b   :  { %v2270_v58 = vsub.f32 %v2254_v10, %v2266_v26  ;;  %4172 = vpow2.f32 %v2275_v23  ;;  %v2069_v10 = vsel %vm682_vm8, %v2061_v1, 0 }
0x148c   :  { %4174 = vpow2.f32 %v2271_v18  ;;  %3873 = vmatpush3.bf16.msra.mxu0 %v2069_v10 }
0x148d   :  { %v2277_v27 = vmul.f32 1.442695, %v2270_v58  ;;  %4038 = vmatprep.subr.msk.bf16.mxu0 %vm682_vm8, %v1874_v16 }
0x148f   :  { %4176 = vpow2.f32 %v2277_v27 }
0x1490   :  { %4178 = vpow2.f32 %v2273_v20 }
0x1495   :  { %v4907_v60 = vpop.eup %4172 }
0x1496   :  { %v2285_v61 = vsel %vm245_vm2, %v4907_v60, 0.0  ;;  %v4911_v62 = vpop.eup %4174 }
0x1497   :  { %2286 = vadd.xlane.f32.xlu1 %v2285_v61  ;;  %v2279_v40 = vsel %vm245_vm2, %v4911_v62, 0.0 }
0x1499   :  { %v4913_v63 = vpop.eup %4176 }
0x149a   :  { %v2288_v21 = vsel %vm245_vm2, %v4913_v63, 0.0  ;;  %v4179_v24 = vpop.eup %4178 }
0x149b   :  { %2289 = vadd.xlane.f32.xlu0 %v2288_v21  ;;  %2280 = vadd.xlane.f32.xlu1 %v2279_v40  ;;  %v2282_v9 = vsel %vm245_vm2, %v4179_v24, 0.0 }
0x149f   :  { %2283 = vadd.xlane.f32.xlu0 %v2282_v9 }
0x14ac   :  { %2301 = vrot.lane.b32.xlu1 %v4779_v53, %s5261_s26 }
0x14b5   :  { %2303 = vrot.lane.b32.xlu0 %v4777_v52, %s5261_s26 }
0x1524   :  { %v2287_v17 = vpop.xlane.xlu1 %2286 }
0x1528   :  { %v2290_v11 = vpop.xlane.xlu0 %2289  ;;  %v2281_v28 = vpop.xlane.xlu1 %2280 }
0x152c   :  { %v2284_v19 = vpop.xlane.xlu0 %2283  ;;  %v2302_v44 = vpop.permute.xlu1 %2301 }
0x152d   :  { %v3870_v32 = vpop.f32.mrb[32].mxu0  ;;  %4180 = vrcp.f32 %v2284_v19 }
0x152e   :  { %v2044_v30 = vpop.f32.mrb[33].mxu0  ;;  %4182 = vrcp.f32 %v2281_v28 }
0x152f   :  { %v3871_v33 = vpop.f32.mrb[34].mxu0  ;;  %4184 = vrcp.f32 %v2290_v11 }
0x1530   :  { %v2060_v35 = vpack.c.bf16 %v3871_v33, %v3870_v32  ;;  %v2047_v36 = vpop.f32.mrb[35].mxu0  ;;  %4186 = vrcp.f32 %v2287_v17  ;;  %v2304_v18 = vpop.permute.xlu0 %2303 }
0x1531   :  { %v2059_v34 = vpack.c.bf16 %v2047_v36, %v2044_v30  ;;  %v3912_v37 = vpop.f32.mrb[40].mxu1 }
0x1532   :  { %v2481_v15 = vpop.f32.mrb[41].mxu1  ;;  %v2498_v41 = vmul.f32 0.35355338, %v3912_v37 }
0x1533   :  { %v2496_v42 = vmul.f32 0.35355338, %v2481_v15  ;;  %3874 = vmatprep.mubr.msk.bf16.mxu0 %vm309_vm3, %v2059_v34  ;;  %v3913_v29 = vpop.f32.mrb[42].mxu1 }
0x1534   :  { %3875 = vmatmul.mubr.msk.bf16.vlgmr.msra.gmra.mrb[36].mxu0 %vm309_vm3, %v2060_v35  ;;  %v2484_v43 = vpop.f32.mrb[43].mxu1  ;;  %v2499_v47 = vmul.f32 0.35355338, %v3913_v29  ;;  %v2502_v51 = vsel %vm4455_vm4, %v2498_v41, -1e+30 }
0x1535   :  { %v2500_v45 = vsel %vm4459_vm5, %v2496_v42, -1e+30  ;;  %3879 = vmatpush3.bf16.msra.mxu0 %v2127_v22  ;;  %v2497_v49 = vmul.f32 0.35355338, %v2484_v43  ;;  %3880 = vmatprep.mubr.msk.bf16.mxu0 %vm309_vm3, %v1872_v7  ;;  %v2510_v3 = vsel %vm245_vm2, %v2502_v51, -inf }
0x1536   :  { %3892 = vmatprep.subr.bf16.mxu0 %v2302_v44  ;;  %v2504_v50 = vsel %vm245_vm2, %v2500_v45, -inf  ;;  %v2503_v25 = vsel %vm4475_vm7, %v2499_v47, -1e+30 }
0x1537   :  { %v2501_v54 = vsel %vm4465_vm6, %v2497_v49, -1e+30  ;;  %2505 = vmax.xlane.f32.xlu1 %v2504_v50  ;;  %v4181_v59 = vpop.eup %4180  ;;  %v2513_v57 = vsel %vm245_vm2, %v2503_v25, -inf }
0x1538   :  { %v2507_v55 = vsel %vm245_vm2, %v2501_v54, -inf  ;;  %v4183_v5 = vpop.eup %4182  ;;  %v2294_v7 = vmul.f32 %v4181_v59, %v4179_v24 }
0x1539   :  { %2508 = vmax.xlane.f32.xlu0 %v2507_v55  ;;  %v2292_v56 = vmul.f32 %v4183_v5, %v4911_v62  ;;  %v4185_v0 = vpop.eup %4184 }
0x153a   :  { %v4187_v8 = vpop.eup %4186  ;;  %v2298_v26 = vmul.f32 %v4185_v0, %v4913_v63 }
0x153b   :  { %2511 = vmax.xlane.f32.xlu1 %v2510_v3  ;;  %v2299_v23 = vpack.c.bf16 %v2294_v7, %v2292_v56  ;;  %v2296_v58 = vmul.f32 %v4187_v8, %v4907_v60 }
0x153d   :  { %2514 = vmax.xlane.f32.xlu0 %v2513_v57  ;;  %v2300_v20 = vpack.c.bf16 %v2298_v26, %v2296_v58 }
0x1540   :  { %3881 = vmatmul.mubr.msk.bf16.vlgmr.msra.gmra.mrb[36].mxu0 %vm309_vm3, %v1873_v4  ;;  %v2372_v4 = vsel %vm682_vm8, %v2364_v6, 0 }
0x1541   :  { %3893 = vmatpush3.bf16.msra.mxu0 %v2302_v44  ;;  %3896 = vmatprep.mubr.msk.bf16.mxu0 %vm245_vm2, %v2299_v23 }
0x1542   :  { %3894 = vmatprep.subr.bf16.mxu0 %v2304_v18 }
0x1545   :  { %3895 = vmatpush3.bf16.msra.mxu0 %v2304_v18  ;;  %v3530_v18 = vld [vmem:[%s5252_s0 + $0x1] ss:$0 sm:$0xff] }
0x1546   :  { %4041 = vmatprep.subr.msk.bf16.mxu0 %vm682_vm8, %v2364_v6 }
0x1548   :  { %3897 = vmatmul.mubr.msk.bf16.vlgmr.msra.gmra.mrb[40].mxu0 %vm245_vm2, %v2300_v20 }
0x1549   :  { %3901 = vmatpush3.bf16.msra.mxu0 %v2372_v4 }
0x15c4   :  { %v2506_v27 = vpop.xlane.xlu1 %2505 }
0x15c5   :  { %v2516_v61 = vsub.f32 %v2500_v45, %v2506_v27 }
0x15c6   :  { %v2509_v62 = vpop.xlane.xlu0 %2508 }
0x15c7   :  { %v2517_v21 = vsub.f32 %v2501_v54, %v2509_v62  ;;  %v2520_v24 = vmul.f32 1.442695, %v2516_v61 }
0x15c8   :  { %v2512_v63 = vpop.xlane.xlu1 %2511 }
0x15c9   :  { %v2518_v60 = vsub.f32 %v2502_v51, %v2512_v63  ;;  %v2522_v1 = vmul.f32 1.442695, %v2517_v21 }
0x15ca   :  { %v2515_v40 = vpop.xlane.xlu0 %2514 }
0x15cb   :  { %v2524_v9 = vmul.f32 1.442695, %v2518_v60  ;;  %v2519_v39 = vsub.f32 %v2503_v25, %v2515_v40 }
0x15cd   :  { %4188 = vpow2.f32 %v2524_v9  ;;  %v2526_v10 = vmul.f32 1.442695, %v2519_v39 }
0x15ce   :  { %4190 = vpow2.f32 %v2520_v24 }
0x15cf   :  { %4192 = vpow2.f32 %v2526_v10 }
0x15d0   :  { %4194 = vpow2.f32 %v2522_v1 }
0x15d7   :  { %v4189_v13 = vpop.eup %4188 }
0x15d8   :  { %v4191_v16 = vpop.eup %4190  ;;  %v2534_v17 = vsel %vm245_vm2, %v4189_v13, 0.0 }
0x15d9   :  { %v4193_v11 = vpop.eup %4192  ;;  %2535 = vadd.xlane.f32.xlu1 %v2534_v17  ;;  %v2528_v32 = vsel %vm245_vm2, %v4191_v16, 0.0 }
0x15da   :  { %v2537_v19 = vsel %vm245_vm2, %v4193_v11, 0.0  ;;  %v4195_v28 = vpop.eup %4194 }
0x15db   :  { %2538 = vadd.xlane.f32.xlu0 %v2537_v19  ;;  %v2531_v30 = vsel %vm245_vm2, %v4195_v28, 0.0 }
0x15dd   :  { %2529 = vadd.xlane.f32.xlu1 %v2528_v32 }
0x15df   :  { %2532 = vadd.xlane.f32.xlu0 %v2531_v30 }
0x15ee   :  { %2550 = vrot.lane.b32.xlu1 %v4779_v53, %s5262_s30 }
0x15f5   :  { %2552 = vrot.lane.b32.xlu0 %v4777_v52, %s5262_s30  ;;  %v3501_v52 = vld [vmem:[%s5251_s9 + $0x38] sm:$0xff] }
0x15f6   :  { %v2613_v44 = vpack.c.bf16 %v3501_v52, %v3501_v52 }
0x15f8   :  { %v2621_v3 = vsel %vm682_vm8, %v2613_v44, 0 }
0x161b   :  { %v3898_v33 = vpop.f32.mrb[40].mxu0 }
0x161c   :  { %v2347_v35 = vpop.f32.mrb[41].mxu0 }
0x161d   :  { %v3899_v36 = vpop.f32.mrb[42].mxu0 }
0x161e   :  { %v2363_v34 = vpack.c.bf16 %v3899_v36, %v3898_v33  ;;  %v2350_v37 = vpop.f32.mrb[43].mxu0 }
0x161f   :  { %v2362_v15 = vpack.c.bf16 %v2350_v37, %v2347_v35 }
0x1621   :  { %3902 = vmatprep.mubr.msk.bf16.mxu0 %vm309_vm3, %v2362_v15 }
0x1622   :  { %3903 = vmatmul.mubr.msk.bf16.vlgmr.msra.gmra.mrb[36].mxu0 %vm309_vm3, %v2363_v34 }
0x1666   :  { %v2536_v22 = vpop.xlane.xlu1 %2535 }
0x1668   :  { %v2539_v41 = vpop.xlane.xlu0 %2538 }
0x1669   :  { %4196 = vrcp.f32 %v2539_v41  ;;  %v3536_v41 = vld [vmem:[%s5253_s6 + $0x28] sm:$0xff] }
0x166a   :  { %v2530_v42 = vpop.xlane.xlu1 %2529 }
0x166b   :  { %4198 = vrcp.f32 %v2530_v42 }
0x166c   :  { %4200 = vrcp.f32 %v2536_v22  ;;  %v2533_v53 = vpop.xlane.xlu0 %2532  ;;  %v3535_v22 = vld [vmem:[%s5253_s6 + $0x20] sm:$0xff] }
0x166d   :  { %4202 = vrcp.f32 %v2533_v53  ;;  %v2773_v42 = vpack.c.bf16 %v3536_v41, %v3535_v22  ;;  %v3537_v53 = vld [vmem:[%s5253_s6 + $0x30] sm:$0xff] }
0x166e   :  { %v2551_v29 = vpop.permute.xlu1 %2550 }
0x166f   :  { %3914 = vmatprep.subr.bf16.mxu0 %v2551_v29  ;;  %3928 = vmatprep.subr.bf16.mxu1 %v2773_v42 }
0x1670   :  { %3915 = vmatpush3.bf16.msra.mxu0 %v2551_v29  ;;  %v2553_v43 = vpop.permute.xlu0 %2552  ;;  %3929 = vmatpush3.bf16.msra.mxu1 %v2773_v42  ;;  %v3538_v29 = vld [vmem:[%s5253_s6 + $0x38] sm:$0xff] }
0x1671   :  { %3916 = vmatprep.subr.bf16.mxu0 %v2553_v43  ;;  %v2774_v52 = vpack.c.bf16 %v3538_v29, %v3537_v53  ;;  %v3552_v53 = vld [vmem:[%s5194_s12 + $0x1] ss:$0 sm:$0xff] }
0x1673   :  { %v4197_v45 = vpop.eup %4196  ;;  %3930 = vmatprep.subr.bf16.mxu1 %v2774_v52 }
0x1674   :  { %3917 = vmatpush3.bf16.msra.mxu0 %v2553_v43  ;;  %v2547_v51 = vmul.f32 %v4197_v45, %v4193_v11  ;;  %3931 = vmatpush3.bf16.msra.mxu1 %v2774_v52  ;;  %v3543_v43 = vld [vmem:[%s5190_s11 + $0x40] sm:$0xff] }
0x1675   :  { %v4199_v47 = vpop.eup %4198  ;;  %4044 = vmatprep.subr.msk.bf16.mxu0 %vm682_vm8, %v2613_v44  ;;  %v3544_v44 = vld [vmem:[%s5190_s11 + $0x48] sm:$0xff] }
0x1676   :  { %v4201_v49 = vpop.eup %4200  ;;  %v2541_v54 = vmul.f32 %v4199_v47, %v4191_v16  ;;  %v2853_v45 = vpack.c.bf16 %v3544_v44, %v3543_v43 }
0x1677   :  { %v4203_v50 = vpop.eup %4202  ;;  %v2545_v55 = vmul.f32 %v4201_v49, %v4189_v13 }
0x1678   :  { %v2543_v59 = vmul.f32 %v4203_v50, %v4195_v28  ;;  %3936 = vmatprep.subr.bf16.mxu1 %v2853_v45 }
0x1679   :  { %v2549_v5 = vpack.c.bf16 %v2547_v51, %v2545_v55 }
0x167a   :  { %v2548_v25 = vpack.c.bf16 %v2543_v59, %v2541_v54 }
0x167c   :  { %3918 = vmatprep.mubr.msk.bf16.mxu0 %vm245_vm2, %v2548_v25 }
0x167d   :  { %3919 = vmatmul.mubr.msk.bf16.vlgmr.msra.gmra.mrb[44].mxu0 %vm245_vm2, %v2549_v5 }
0x167e   :  { %3923 = vmatpush3.bf16.msra.mxu0 %v2621_v3 }
0x1750   :  { %v3920_v7 = vpop.f32.mrb[44].mxu0 }
0x1751   :  { %v2596_v57 = vpop.f32.mrb[45].mxu0 }
0x1752   :  { %v3921_v56 = vpop.f32.mrb[46].mxu0 }
0x1753   :  { %v2612_v0 = vpack.c.bf16 %v3921_v56, %v3920_v7  ;;  %v2599_v23 = vpop.f32.mrb[47].mxu0 }
0x1754   :  { %v2611_v8 = vpack.c.bf16 %v2599_v23, %v2596_v57 }
0x1756   :  { %3924 = vmatprep.mubr.msk.bf16.mxu0 %vm309_vm3, %v2611_v8 }
0x1757   :  { %3925 = vmatmul.mubr.msk.bf16.vlgmr.msra.gmra.mrb[36].mxu0 %vm309_vm3, %v2612_v0  ;;  %v3533_v0 = vld [vmem:[%s5191_s7 + $0x1] ss:$0 sm:$0xff] }
0x182a   :  { %v3926_v26 = vpop.f32.mrb[36].mxu0 }
0x182b   :  { %v2657_v58 = vpop.f32.mrb[37].mxu0  ;;  %v2684_v20 = vadd.f32 %v3926_v26, %v3530_v18 }
0x182c   :  { %v2682_v2 = vadd.f32 %v3530_v18, %v2657_v58  ;;  %v3927_v6 = vpop.f32.mrb[38].mxu0 }
0x182d   :  { %v2660_v4 = vpop.f32.mrb[39].mxu0  ;;  %v2685_v61 = vadd.f32 %v3927_v6, %v3530_v18  ;;  %v2688_v63 = vadd.f32 %v2684_v20, %v4767_v38  ;;  %v3534_v20 = vld [vmem:[%s5192_s8 + $0x1] ss:$0 sm:$0xff] }
0x182e   :  { %v2686_v27 = vadd.f32 %v2682_v2, %v4760_v12  ;;  %v2683_v62 = vadd.f32 %v3530_v18, %v2660_v4 }
0x182f   :  { %v2689_v24 = vadd.f32 %v2685_v61, %v4769_v31  ;;  %v2700_v9 = vsel %vm245_vm2, %v2688_v63, 0.0 }
0x1830   :  { %v2687_v21 = vadd.f32 %v2683_v62, %v4762_v14  ;;  %v2694_v60 = vsel %vm245_vm2, %v2686_v27, 0.0 }
0x1831   :  { %2695 = vadd.xlane.f32.xlu1 %v2694_v60  ;;  %v2703_v39 = vsel %vm245_vm2, %v2689_v24, 0.0 }
0x1832   :  { %v2697_v40 = vsel %vm245_vm2, %v2687_v21, 0.0 }
0x1833   :  { %2698 = vadd.xlane.f32.xlu0 %v2697_v40  ;;  %v3546_v40 = vld [vmem:[%s5190_s11 + $0x58] sm:$0xff] }
0x1835   :  { %2701 = vadd.xlane.f32.xlu1 %v2700_v9 }
0x1837   :  { %2704 = vadd.xlane.f32.xlu0 %v2703_v39 }
0x18be   :  { %v2696_v12 = vpop.xlane.xlu1 %2695 }
0x18bf   :  { %v2706_v1 = vmul.f32 0.03125, %v2696_v12 }
0x18c0   :  { %v2699_v10 = vpop.xlane.xlu0 %2698 }
0x18c1   :  { %v2710_v38 = vsub.f32 %v2686_v27, %v2706_v1  ;;  %v2707_v13 = vmul.f32 0.03125, %v2699_v10  ;;  %v3547_v10 = vld [vmem:[%s5190_s11 + $0x60] sm:$0xff] }
0x18c2   :  { %v2702_v14 = vpop.xlane.xlu1 %2701 }
0x18c3   :  { %v2711_v16 = vsub.f32 %v2687_v21, %v2707_v13  ;;  %v2708_v17 = vmul.f32 0.03125, %v2702_v14  ;;  %v2714_v11 = vmul.f32 %v2710_v38, %v2710_v38  ;;  %v3549_v14 = vld [vmem:[%s5190_s11 + $0x70] sm:$0xff] }
0x18c4   :  { %v2705_v19 = vpop.xlane.xlu0 %2704 }
0x18c5   :  { %v2712_v31 = vsub.f32 %v2688_v63, %v2708_v17  ;;  %v2709_v28 = vmul.f32 0.03125, %v2705_v19  ;;  %v2718_v32 = vsel %vm245_vm2, %v2714_v11, 0.0  ;;  %v2715_v30 = vmul.f32 %v2711_v16, %v2711_v16  ;;  %v3540_v11 = vld [vmem:[%s5193_s10 + $0x1] ss:$0 sm:$0xff] }
0x18c6   :  { %2719 = vadd.xlane.f32.xlu1 %v2718_v32 }
0x18c7   :  { %v2713_v33 = vsub.f32 %v2689_v24, %v2709_v28  ;;  %v2721_v35 = vsel %vm245_vm2, %v2715_v30, 0.0  ;;  %v2716_v36 = vmul.f32 %v2712_v31, %v2712_v31  ;;  %v3545_v24 = vld [vmem:[%s5190_s11 + $0x50] sm:$0xff] }
0x18c8   :  { %2722 = vadd.xlane.f32.xlu0 %v2721_v35  ;;  %v2854_v1 = vpack.c.bf16 %v3546_v40, %v3545_v24 }
0x18c9   :  { %v2724_v34 = vsel %vm245_vm2, %v2716_v36, 0.0  ;;  %v2717_v37 = vmul.f32 %v2713_v33, %v2713_v33 }
0x18ca   :  { %2725 = vadd.xlane.f32.xlu1 %v2724_v34 }
0x18cb   :  { %v2727_v15 = vsel %vm245_vm2, %v2717_v37, 0.0 }
0x18cc   :  { %2728 = vadd.xlane.f32.xlu0 %v2727_v15 }
0x1953   :  { %v2720_v47 = vpop.xlane.xlu1 %2719 }
0x1954   :  { %v2730_v49 = vmul.f32 0.03125, %v2720_v47 }
0x1955   :  { %v2723_v50 = vpop.xlane.xlu0 %2722 }
0x1956   :  { %v2734_v51 = vadd.f32 1e-05, %v2730_v49  ;;  %v2731_v54 = vmul.f32 0.03125, %v2723_v50 }
0x1957   :  { %v2726_v59 = vpop.xlane.xlu1 %2725 }
0x1958   :  { %4204 = vrsqrt.f32 %v2734_v51  ;;  %v2735_v55 = vadd.f32 1e-05, %v2731_v54  ;;  %v2732_v25 = vmul.f32 0.03125, %v2726_v59 }
0x1959   :  { %v2729_v5 = vpop.xlane.xlu0 %2728 }
0x195a   :  { %4206 = vrsqrt.f32 %v2735_v55  ;;  %v2736_v3 = vadd.f32 1e-05, %v2732_v25  ;;  %v2733_v7 = vmul.f32 0.03125, %v2729_v5 }
0x195c   :  { %4208 = vrsqrt.f32 %v2736_v3  ;;  %v2737_v57 = vadd.f32 1e-05, %v2733_v7 }
0x195e   :  { %4210 = vrsqrt.f32 %v2737_v57 }
0x1962   :  { %v4205_v56 = vpop.eup %4204 }
0x1963   :  { %v2742_v23 = vmul.f32 %v4205_v56, %v2710_v38  ;;  %v3548_v38 = vld [vmem:[%s5190_s11 + $0x68] sm:$0xff] }
0x1964   :  { %v4207_v8 = vpop.eup %4206  ;;  %v2855_v13 = vpack.c.bf16 %v3548_v38, %v3547_v10 }
0x1965   :  { %v2743_v18 = vmul.f32 %v4207_v8, %v2711_v16  ;;  %v2752_v26 = vmul.f32 %v3533_v0, %v2742_v23  ;;  %v3550_v16 = vld [vmem:[%s5190_s11 + $0x78] sm:$0xff] }
0x1966   :  { %v4209_v58 = vpop.eup %4208  ;;  %v2856_v17 = vpack.c.bf16 %v3550_v16, %v3549_v14 }
0x1967   :  { %v2744_v2 = vmul.f32 %v4209_v58, %v2712_v31  ;;  %v2753_v6 = vmul.f32 %v3533_v0, %v2743_v18  ;;  %v2762_v62 = vadd.f32 %v3534_v20, %v2752_v26 }
0x1968   :  { %v4211_v4 = vpop.eup %4210 }
0x1969   :  { %v2754_v27 = vmul.f32 %v3533_v0, %v2744_v2  ;;  %v2745_v61 = vmul.f32 %v4211_v4, %v2713_v33  ;;  %v2763_v63 = vadd.f32 %v3534_v20, %v2753_v6 }
0x196b   :  { %v2755_v21 = vmul.f32 %v3533_v0, %v2745_v61  ;;  %v2771_v60 = vpack.c.bf16 %v2763_v63, %v2762_v62  ;;  %v2764_v9 = vadd.f32 %v3534_v20, %v2754_v27 }
0x196d   :  { %3932 = vmatprep.mubr.msk.bf16.mxu1 %vm245_vm2, %v2771_v60  ;;  %v2765_v39 = vadd.f32 %v3534_v20, %v2755_v21 }
0x196f   :  { %v2772_v12 = vpack.c.bf16 %v2765_v39, %v2764_v9 }
0x1971   :  { %3933 = vmatmul.mubr.msk.bf16.vlgmr.msra.gmra.mrb[44].mxu1 %vm245_vm2, %v2772_v12 }
0x1972   :  { %3937 = vmatpush3.bf16.msra.mxu1 %v2853_v45 }
0x1973   :  { %3938 = vmatprep.subr.bf16.mxu1 %v2854_v1 }
0x1976   :  { %3939 = vmatpush3.bf16.msra.mxu1 %v2854_v1 }
0x1977   :  { %3940 = vmatprep.subr.bf16.mxu1 %v2855_v13 }
0x197a   :  { %3941 = vmatpush3.bf16.msra.mxu1 %v2855_v13 }
0x197b   :  { %3942 = vmatprep.subr.bf16.mxu1 %v2856_v17 }
0x197e   :  { %3943 = vmatpush3.bf16.msra.mxu1 %v2856_v17 }
0x1a44   :  { %v3934_v19 = vpop.f32.mrb[44].mxu1 }
0x1a45   :  { %v2832_v31 = vadd.f32 %v3934_v19, %v3540_v11  ;;  %v2823_v28 = vpop.f32.mrb[45].mxu1 }
0x1a46   :  { %v2824_v32 = vadd.f32 %v3540_v11, %v2823_v28  ;;  %v3935_v30 = vpop.f32.mrb[46].mxu1  ;;  %v3557_v28 = vld [vmem:[%s5195_s13 + $0x1] ss:$0 sm:$0xff] }
0x1a47   :  { %v2835_v33 = vadd.f32 %v3935_v30, %v3540_v11  ;;  %v2826_v35 = vpop.f32.mrb[47].mxu1  ;;  %v2840_v34 = vmax.f32 %v2832_v31, 0.0 }
0x1a48   :  { %v2827_v36 = vadd.f32 %v3540_v11, %v2826_v35  ;;  %v2838_v15 = vmax.f32 %v2824_v32, 0.0 }
0x1a49   :  { %v2841_v37 = vmax.f32 %v2835_v33, 0.0  ;;  %v3558_v33 = vld [vmem:[%s5196_s14 + $0x1] ss:$0 sm:$0xff] }
0x1a4a   :  { %v2839_v22 = vmax.f32 %v2827_v36, 0.0 }
0x1a4b   :  { %v2852_v41 = vpack.c.bf16 %v2841_v37, %v2840_v34 }
0x1a4c   :  { %v2851_v42 = vpack.c.bf16 %v2839_v22, %v2838_v15 }
0x1a4e   :  { %3944 = vmatprep.mubr.msk.bf16.mxu1 %vm1475_vm9, %v2851_v42 }
0x1a4f   :  { %3945 = vmatmul.mubr.msk.bf16.vlgmr.msra.gmra.mrb[48].mxu1 %vm1475_vm9, %v2852_v41 }
0x1b22   :  { %v3946_v29 = vpop.f32.mrb[48].mxu1 }
0x1b23   :  { %v2905_v52 = vpop.f32.mrb[49].mxu1  ;;  %v2914_v43 = vadd.f32 %v3946_v29, %v3552_v53 }
0x1b24   :  { %v2906_v44 = vadd.f32 %v3552_v53, %v2905_v52  ;;  %v3947_v45 = vpop.f32.mrb[50].mxu1 }
0x1b25   :  { %v2908_v47 = vpop.f32.mrb[51].mxu1  ;;  %v2917_v50 = vadd.f32 %v3947_v45, %v3552_v53  ;;  %v2922_v54 = vadd.f32 %v2914_v43, %v2764_v9 }
0x1b26   :  { %v2920_v49 = vadd.f32 %v2906_v44, %v2762_v62  ;;  %v2909_v51 = vadd.f32 %v3552_v53, %v2908_v47 }
0x1b27   :  { %v2923_v25 = vadd.f32 %v2917_v50, %v2765_v39  ;;  %v2934_v3 = vsel %vm245_vm2, %v2922_v54, 0.0 }
0x1b28   :  { %v2921_v59 = vadd.f32 %v2909_v51, %v2763_v63  ;;  %v2928_v55 = vsel %vm245_vm2, %v2920_v49, 0.0 }
0x1b29   :  { %2929 = vadd.xlane.f32.xlu1 %v2928_v55  ;;  %v2937_v7 = vsel %vm245_vm2, %v2923_v25, 0.0 }
0x1b2a   :  { %v2931_v5 = vsel %vm245_vm2, %v2921_v59, 0.0 }
0x1b2b   :  { %2932 = vadd.xlane.f32.xlu0 %v2931_v5 }
0x1b2d   :  { %2935 = vadd.xlane.f32.xlu1 %v2934_v3 }
0x1b2f   :  { %2938 = vadd.xlane.f32.xlu0 %v2937_v7 }
0x1bb6   :  { %v2930_v57 = vpop.xlane.xlu1 %2929 }
0x1bb7   :  { %v2940_v56 = vmul.f32 0.03125, %v2930_v57 }
0x1bb8   :  { %v2933_v0 = vpop.xlane.xlu0 %2932 }
0x1bb9   :  { %v2944_v23 = vsub.f32 %v2920_v49, %v2940_v56  ;;  %v2941_v8 = vmul.f32 0.03125, %v2933_v0 }
0x1bba   :  { %v2936_v18 = vpop.xlane.xlu1 %2935 }
0x1bbb   :  { %v2945_v26 = vsub.f32 %v2921_v59, %v2941_v8  ;;  %v2942_v58 = vmul.f32 0.03125, %v2936_v18  ;;  %v2948_v20 = vmul.f32 %v2944_v23, %v2944_v23 }
0x1bbc   :  { %v2939_v2 = vpop.xlane.xlu0 %2938 }
0x1bbd   :  { %v2946_v6 = vsub.f32 %v2922_v54, %v2942_v58  ;;  %v2943_v4 = vmul.f32 0.03125, %v2939_v2  ;;  %v2952_v27 = vsel %vm245_vm2, %v2948_v20, 0.0  ;;  %v2949_v61 = vmul.f32 %v2945_v26, %v2945_v26 }
0x1bbe   :  { %2953 = vadd.xlane.f32.xlu1 %v2952_v27  ;;  %v4251_v27 = vmov 0.0  }
0x1bbf   :  { %v2947_v62 = vsub.f32 %v2923_v25, %v2943_v4  ;;  %v2955_v63 = vsel %vm245_vm2, %v2949_v61, 0.0  ;;  %v2950_v21 = vmul.f32 %v2946_v6, %v2946_v6  ;;  %3948 = vmatprep.subr.bf16.mxu0 %v4251_v27  ;;  %3964 = vmatprep.subr.bf16.mxu1 %v4251_v27  ;;  %3395 = vst [vmem:[%s5205_s23] sm:$0xff] %v4251_v27 }
0x1bc0   :  { %2956 = vadd.xlane.f32.xlu0 %v2955_v63  ;;  %3952 = vmatprep.mubr.msk.bf16.mxu0 %vm4252_vm10, %v4251_v27 }
0x1bc1   :  { %v2958_v60 = vsel %vm245_vm2, %v2950_v21, 0.0  ;;  %v2951_v24 = vmul.f32 %v2947_v62, %v2947_v62  ;;  %3968 = vmatprep.mubr.msk.bf16.mxu1 %vm4252_vm10, %v4251_v27 }
0x1bc2   :  { %2959 = vadd.xlane.f32.xlu1 %v2958_v60 }
0x1bc3   :  { %v2961_v40 = vsel %vm245_vm2, %v2951_v24, 0.0 }
0x1bc4   :  { %2962 = vadd.xlane.f32.xlu0 %v2961_v40 }
0x1c4b   :  { %v2954_v9 = vpop.xlane.xlu1 %2953 }
0x1c4c   :  { %v2964_v39 = vmul.f32 0.03125, %v2954_v9 }
0x1c4d   :  { %v2957_v12 = vpop.xlane.xlu0 %2956 }
0x1c4e   :  { %v2968_v1 = vadd.f32 1e-05, %v2964_v39  ;;  %v2965_v10 = vmul.f32 0.03125, %v2957_v12 }
0x1c4f   :  { %v2960_v38 = vpop.xlane.xlu1 %2959 }
0x1c50   :  { %4212 = vrsqrt.f32 %v2968_v1  ;;  %v2969_v13 = vadd.f32 1e-05, %v2965_v10  ;;  %v2966_v14 = vmul.f32 0.03125, %v2960_v38 }
0x1c51   :  { %v2963_v16 = vpop.xlane.xlu0 %2962 }
0x1c52   :  { %4214 = vrsqrt.f32 %v2969_v13  ;;  %v2970_v17 = vadd.f32 1e-05, %v2966_v14  ;;  %v2967_v11 = vmul.f32 0.03125, %v2963_v16  ;;  %v3559_v13 = vld [vmem:[%s5197_s15] ss:$0 sm:$0xff] }
0x1c54   :  { %4216 = vrsqrt.f32 %v2970_v17  ;;  %v2971_v19 = vadd.f32 1e-05, %v2967_v11  ;;  %v3560_v17 = vld [vmem:[%s5198_s16] ss:$0 sm:$0xff] }
0x1c56   :  { %4218 = vrsqrt.f32 %v2971_v19 }
0x1c5a   :  { %v4213_v31 = vpop.eup %4212 }
0x1c5b   :  { %v2976_v32 = vmul.f32 %v4213_v31, %v2944_v23 }
0x1c5c   :  { %v4215_v30 = vpop.eup %4214 }
0x1c5d   :  { %v2986_v35 = vmul.f32 %v3557_v28, %v2976_v32  ;;  %v2977_v36 = vmul.f32 %v4215_v30, %v2945_v26 }
0x1c5e   :  { %v4217_v34 = vpop.eup %4216 }
0x1c5f   :  { %v2996_v37 = vadd.f32 %v3558_v33, %v2986_v35  ;;  %v2987_v15 = vmul.f32 %v3557_v28, %v2977_v36  ;;  %v2978_v22 = vmul.f32 %v4217_v34, %v2946_v6 }
0x1c60   :  { %v4219_v41 = vpop.eup %4218 }
0x1c61   :  { %v3002_v42 = vsel %vm245_vm2, %v2996_v37, 0.0  ;;  %v2997_v53 = vadd.f32 %v3558_v33, %v2987_v15  ;;  %v2988_v29 = vmul.f32 %v3557_v28, %v2978_v22  ;;  %v2979_v52 = vmul.f32 %v4219_v41, %v2947_v62 }
0x1c62   :  { %3003 = vadd.xlane.f32.xlu1 %v3002_v42 }
0x1c63   :  { %v3005_v43 = vsel %vm245_vm2, %v2997_v53, 0.0  ;;  %v2998_v44 = vadd.f32 %v3558_v33, %v2988_v29  ;;  %v2989_v45 = vmul.f32 %v3557_v28, %v2979_v52  ;;  %v3078_v28 = vmul.u32 4, %v4446_v46 }
0x1c64   :  { %3006 = vadd.xlane.f32.xlu0 %v3005_v43 }
0x1c65   :  { %v3008_v47 = vsel %vm245_vm2, %v2998_v44, 0.0  ;;  %v2999_v49 = vadd.f32 %v3558_v33, %v2989_v45  ;;  %v3176_v36 = vadd.s32 2, %v3078_v28  ;;  %vm3079_vm11 = vcmp.eq.s32.totalorder %v4449_v48, %v3078_v28 }
0x1c66   :  { %3009 = vadd.xlane.f32.xlu1 %v3008_v47  ;;  %v3128_v47 = vadd.s32 1, %v3078_v28 }
0x1c67   :  { %v3011_v50 = vsel %vm245_vm2, %v2999_v49, 0.0  ;;  %vm3177_vm12 = vcmp.eq.s32.totalorder %v4449_v48, %v3176_v36 }
0x1c68   :  { %3012 = vadd.xlane.f32.xlu0 %v3011_v50  ;;  %v3565_v45 = vsel %vm3177_vm12, 1.0, %v4251_v27  ;;  %vm3129_vm13 = vcmp.eq.s32.totalorder %v4449_v48, %v3128_v47  ;;  %v3225_v48 = vld [vmem:[%s5199_s19 + $0x8] sm:$0xff] }
0x1cef   :  { %v3004_v51 = vpop.xlane.xlu1 %3003 }
0x1cf0   :  { %v3014_v54 = vmul.f32 0.03125, %v3004_v51  ;;  %v3180_v51 = vpack.c.bf16 %v3565_v45, %v3565_v45 }
0x1cf1   :  { %v3007_v59 = vpop.xlane.xlu0 %3006 }
0x1cf2   :  { %v3018_v55 = vsub.f32 %v2996_v37, %v3014_v54  ;;  %v3015_v25 = vmul.f32 0.03125, %v3007_v59  ;;  %v3563_v54 = vsel %vm3129_vm13, 1.0, %v4251_v27  ;;  %v3224_v59 = vld [vmem:[%s5199_s19] sm:$0xff] }
0x1cf3   :  { %v3010_v5 = vpop.xlane.xlu1 %3009 }
0x1cf4   :  { %v3019_v3 = vsub.f32 %v2997_v53, %v3015_v25  ;;  %v3016_v7 = vmul.f32 0.03125, %v3010_v5  ;;  %v3022_v57 = vmul.f32 %v3018_v55, %v3018_v55  ;;  %v3229_v25 = vpack.c.bf16 %v3225_v48, %v3224_v59  ;;  %v3226_v5 = vld [vmem:[%s5199_s19 + $0x10] sm:$0xff] }
0x1cf5   :  { %v3013_v56 = vpop.xlane.xlu0 %3012 }
0x1cf6   :  { %v3020_v0 = vsub.f32 %v2998_v44, %v3016_v7  ;;  %v3017_v23 = vmul.f32 0.03125, %v3013_v56  ;;  %v3026_v8 = vsel %vm245_vm2, %v3022_v57, 0.0  ;;  %v3023_v18 = vmul.f32 %v3019_v3, %v3019_v3  ;;  %v3281_v57 = vld [vmem:[%s5200_s21] sm:$0xff]  ;;  %v3282_v56 = vld [vmem:[%s5200_s21 + $0x8] sm:$0xff] }
0x1cf7   :  { %3027 = vadd.xlane.f32.xlu1 %v3026_v8  ;;  %v3561_v44 = vsel %vm3079_vm11, 1.0, %v4251_v27  ;;  %v3284_v8 = vld [vmem:[%s5200_s21 + $0x18] sm:$0xff] }
0x1cf8   :  { %v3021_v26 = vsub.f32 %v2999_v49, %v3017_v23  ;;  %v3029_v58 = vsel %vm245_vm2, %v3023_v18, 0.0  ;;  %v3024_v20 = vmul.f32 %v3020_v0, %v3020_v0  ;;  %v3082_v50 = vpack.c.bf16 %v3561_v44, %v3561_v44  ;;  %v3283_v23 = vld [vmem:[%s5200_s21 + $0x10] sm:$0xff] }
0x1cf9   :  { %3030 = vadd.xlane.f32.xlu0 %v3029_v58  ;;  %v3287_v18 = vpack.c.bf16 %v3284_v8, %v3283_v23  ;;  %v3339_v58 = vld [vmem:[%s5201_s17 + $0x8] sm:$0xff] }
0x1cfa   :  { %v3032_v2 = vsel %vm245_vm2, %v3024_v20, 0.0  ;;  %v3025_v6 = vmul.f32 %v3021_v26, %v3021_v26 }
0x1cfb   :  { %3033 = vadd.xlane.f32.xlu1 %v3032_v2 }
0x1cfc   :  { %v3035_v4 = vsel %vm245_vm2, %v3025_v6, 0.0 }
0x1cfd   :  { %3036 = vadd.xlane.f32.xlu0 %v3035_v4 }
0x1d84   :  { %v3028_v61 = vpop.xlane.xlu1 %3027 }
0x1d85   :  { %v3038_v62 = vmul.f32 0.03125, %v3028_v61 }
0x1d86   :  { %v3031_v63 = vpop.xlane.xlu0 %3030 }
0x1d87   :  { %v3042_v21 = vadd.f32 1e-05, %v3038_v62  ;;  %v3039_v60 = vmul.f32 0.03125, %v3031_v63  ;;  %v3340_v62 = vld [vmem:[%s5201_s17 + $0x10] sm:$0xff]  ;;  %v3341_v63 = vld [vmem:[%s5201_s17 + $0x18] sm:$0xff] }
0x1d88   :  { %v3034_v24 = vpop.xlane.xlu1 %3033 }
0x1d89   :  { %4220 = vrsqrt.f32 %v3042_v21  ;;  %v3043_v40 = vadd.f32 1e-05, %v3039_v60  ;;  %v3040_v9 = vmul.f32 0.03125, %v3034_v24 }
0x1d8a   :  { %v3037_v39 = vpop.xlane.xlu0 %3036 }
0x1d8b   :  { %4222 = vrsqrt.f32 %v3043_v40  ;;  %v3044_v12 = vadd.f32 1e-05, %v3040_v9  ;;  %v3041_v1 = vmul.f32 0.03125, %v3037_v39  ;;  %v3344_v39 = vpack.c.bf16 %v3341_v63, %v3340_v62 }
0x1d8d   :  { %4224 = vrsqrt.f32 %v3044_v12  ;;  %v3045_v10 = vadd.f32 1e-05, %v3041_v1 }
0x1d8f   :  { %4226 = vrsqrt.f32 %v3045_v10 }
0x1d93   :  { %v4221_v38 = vpop.eup %4220 }
0x1d94   :  { %v3050_v14 = vmul.f32 %v4221_v38, %v3018_v55  ;;  %v3132_v55 = vpack.c.bf16 %v3563_v54, %v3563_v54 }
0x1d95   :  { %v4223_v16 = vpop.eup %4222 }
0x1d96   :  { %v3051_v11 = vmul.f32 %v4223_v16, %v3019_v3  ;;  %v3060_v19 = vmul.f32 %v3559_v13, %v3050_v14  ;;  %v3227_v3 = vld [vmem:[%s5199_s19 + $0x18] sm:$0xff]  ;;  %v3567_v16 = vld [vmem:[%s5202_s20] ss:$0 sm:$0xff] }
0x1d97   :  { %v4225_v31 = vpop.eup %4224  ;;  %v3230_v7 = vpack.c.bf16 %v3227_v3, %v3226_v5 }
0x1d98   :  { %v3052_v32 = vmul.f32 %v4225_v31, %v3020_v0  ;;  %v3061_v30 = vmul.f32 %v3559_v13, %v3051_v11  ;;  %v3070_v33 = vadd.f32 %v3560_v17, %v3060_v19  ;;  %v3286_v0 = vpack.c.bf16 %v3282_v56, %v3281_v57 }
0x1d99   :  { %v4227_v35 = vpop.eup %4226 }
0x1d9a   :  { %v3053_v34 = vmul.f32 %v4227_v35, %v3021_v26  ;;  %v3071_v37 = vadd.f32 %v3560_v17, %v3061_v30  ;;  %v3062_v15 = vmul.f32 %v3559_v13, %v3052_v32  ;;  %v3074_v22 = vmax.f32 %v3070_v33, 0.0  ;;  %v3338_v26 = vld [vmem:[%s5201_s17] sm:$0xff] }
0x1d9b   :  { %v3343_v2 = vpack.c.bf16 %v3339_v58, %v3338_v26  ;;  %v3569_v30 = vld [vmem:[%s5203_s22] ss:$0 sm:$0xff]  ;;  %s4253_s22 = smov 52  }
0x1d9c   :  { %v3075_v41 = vmax.f32 %v3071_v37, 0.0  ;;  %v3063_v42 = vmul.f32 %v3559_v13, %v3053_v34  ;;  %v3072_v53 = vadd.f32 %v3560_v17, %v3062_v15  ;;  %v3571_v33 = vld [vmem:[%s5204_s18] ss:$0 sm:$0xff] }
0x1d9e   :  { %v3083_v29 = vpack.c.bf16 %v3075_v41, %v3074_v22  ;;  %v3073_v52 = vadd.f32 %v3560_v17, %v3063_v42  ;;  %v3076_v46 = vmax.f32 %v3072_v53, 0.0 }
0x1da0   :  { %3949 = vmatpush3.bf16.msra.mxu0 %v3083_v29  ;;  %3965 = vmatpush3.bf16.msra.mxu1 %v3083_v29  ;;  %v3077_v43 = vmax.f32 %v3073_v52, 0.0 }
0x1da1   :  { %3950 = vmatprep.subr.bf16.mxu0 %v4251_v27  ;;  %3966 = vmatprep.subr.bf16.mxu1 %v4251_v27 }
0x1da2   :  { %v3084_v49 = vpack.c.bf16 %v3077_v43, %v3076_v46 }
0x1da4   :  { %3951 = vmatpush3.bf16.msra.mxu0 %v3084_v49  ;;  %3967 = vmatpush3.bf16.msra.mxu1 %v3084_v49 }
0x1da5   :  { %3956 = vmatprep.subr.bf16.mxu0 %v4251_v27  ;;  %3980 = vmatprep.subr.bf16.mxu1 %v4251_v27 }
0x1da7   :  { %3953 = vmatmul.mubr.msk.bf16.vlgmr.msra.gmra.mrb[48].mxu0 %vm245_vm2, %v3082_v50  ;;  %3969 = vmatmul.mubr.msk.bf16.vlgmr.msra.gmra.mrb[52].mxu1 %vm245_vm2, %v3180_v51 }
0x1da8   :  { %3957 = vmatpush3.bf16.msra.mxu0 %v3083_v29  ;;  %3960 = vmatprep.mubr.msk.bf16.mxu0 %vm4252_vm10, %v4251_v27 }
0x1da9   :  { %3958 = vmatprep.subr.bf16.mxu0 %v4251_v27  ;;  %3984 = vmatprep.mubr.msk.bf16.mxu1 %vm4252_vm10, %v4251_v27 }
0x1daa   :  { %3981 = vmatpush3.bf16.msra.mxu1 %v3286_v0 }
0x1dab   :  { %3982 = vmatprep.subr.bf16.mxu1 %v4251_v27 }
0x1dac   :  { %3959 = vmatpush3.bf16.msra.mxu0 %v3084_v49 }
0x1dad   :  { %3972 = vmatprep.subr.bf16.mxu0 %v4251_v27 }
0x1dae   :  { %3983 = vmatpush3.bf16.msra.mxu1 %v3287_v18 }
0x1daf   :  { %3961 = vmatmul.mubr.msk.bf16.vlgmr.msra.gmra.mrb[52].mxu0 %vm245_vm2, %v3132_v55 }
0x1db0   :  { %3973 = vmatpush3.bf16.msra.mxu0 %v3229_v25  ;;  %3976 = vmatprep.mubr.msk.bf16.mxu0 %vm4252_vm10, %v4251_v27 }
0x1db1   :  { %3974 = vmatprep.subr.bf16.mxu0 %v4251_v27 }
0x1db4   :  { %3975 = vmatpush3.bf16.msra.mxu0 %v3230_v7 }
0x1db5   :  { %3988 = vmatprep.subr.bf16.mxu0 %v4251_v27 }
0x1e7a   :  { %v3122_v20 = vpop.f32.mrb[48].mxu0  ;;  %v3218_v6 = vpop.f32.mrb[52].mxu1 }
0x1e7b   :  { %v3228_v4 = vpack.c.bf16 %v3122_v20, %v3122_v20  ;;  %v3954_v61 = vpop.f32.mrb[49].mxu0  ;;  %v3970_v21 = vpop.f32.mrb[53].mxu1  ;;  %v3342_v12 = vpack.c.bf16 %v3218_v6, %v3218_v6 }
0x1e7c   :  { %v3125_v60 = vpop.f32.mrb[50].mxu0  ;;  %v3221_v24 = vpop.f32.mrb[54].mxu1 }
0x1e7d   :  { %v3955_v40 = vpop.f32.mrb[51].mxu0  ;;  %3977 = vmatmul.mubr.msk.bf16.vlgmr.msra.gmra.mrb[56].mxu0 %vm245_vm2, %v3228_v4  ;;  %v3971_v9 = vpop.f32.mrb[55].mxu1 }
0x1e7e   :  { %3989 = vmatpush3.bf16.msra.mxu0 %v3343_v2  ;;  %3992 = vmatprep.mubr.msk.bf16.mxu0 %vm4252_vm10, %v4251_v27 }
0x1e7f   :  { %3990 = vmatprep.subr.bf16.mxu0 %v4251_v27 }
0x1e82   :  { %v3170_v1 = vpop.f32.mrb[52].mxu0  ;;  %3991 = vmatpush3.bf16.msra.mxu0 %v3344_v39 }
0x1e83   :  { %v3285_v10 = vpack.c.bf16 %v3170_v1, %v3170_v1  ;;  %v3962_v38 = vpop.f32.mrb[53].mxu0 }
0x1e84   :  { %v3173_v13 = vpop.f32.mrb[54].mxu0 }
0x1e85   :  { %v3963_v14 = vpop.f32.mrb[55].mxu0  ;;  %3985 = vmatmul.mubr.msk.bf16.vlgmr.msra.gmra.mrb[56].mxu1 %vm245_vm2, %v3285_v10  ;;  %3993 = vmatmul.mubr.msk.bf16.vlgmr.msra.gmra.mrb[60].mxu0 %vm245_vm2, %v3342_v12  ;;  %vm3446_vm2 = vcmask 638416  }
0x1f50   :  { %v3275_v17 = vpop.f32.mrb[56].mxu0 }
0x1f51   :  { %v3276_v11 = vadd.f32 %v3567_v16, %v3275_v17  ;;  %v3978_v19 = vpop.f32.mrb[57].mxu0 }
0x1f52   :  { %v3278_v31 = vpop.f32.mrb[58].mxu0 }
0x1f53   :  { %v3979_v28 = vpop.f32.mrb[59].mxu0  ;;  %v3411_v32 = vsel %vm3410_vm14, %v3276_v11, -inf }
0x1f54   :  { %3412 = vmax.xlane.f32.xlu1 %v3411_v32 }
0x1f58   :  { %v3332_v35 = vpop.f32.mrb[56].mxu1  ;;  %v3389_v36 = vpop.f32.mrb[60].mxu0 }
0x1f59   :  { %v3333_v34 = vadd.f32 %v3569_v30, %v3332_v35  ;;  %v3390_v37 = vadd.f32 %v3571_v33, %v3389_v36  ;;  %v3986_v15 = vpop.f32.mrb[57].mxu1  ;;  %v3994_v22 = vpop.f32.mrb[61].mxu0 }
0x1f5a   :  { %v3335_v41 = vpop.f32.mrb[58].mxu1  ;;  %v3392_v42 = vpop.f32.mrb[62].mxu0 }
0x1f5b   :  { %v3987_v53 = vpop.f32.mrb[59].mxu1  ;;  %v3430_v29 = vsel %vm3429_vm15, %v3333_v34, -inf  ;;  %v3397_v52 = vsel %vm3396_vm0, %v3390_v37, -inf  ;;  %v3995_v46 = vpop.f32.mrb[63].mxu0 }
0x1f5c   :  { %3431 = vmax.xlane.f32.xlu0 %v3430_v29  ;;  %3398 = vmax.xlane.f32.xlu1 %v3397_v52 }
0x1fe1   :  { %v3413_v43 = vpop.xlane.xlu1 %3412 }
0x1fe2   :  { %v3414_v44 = vsub.f32 %v3276_v11, %v3413_v43 }
0x1fe4   :  { %v3415_v45 = vmul.f32 1.442695, %v3414_v44 }
0x1fe6   :  { %4228 = vpow2.f32 %v3415_v45 }
0x1fe9   :  { %v3432_v47 = vpop.xlane.xlu0 %3431  ;;  %v3399_v49 = vpop.xlane.xlu1 %3398 }
0x1fea   :  { %v3433_v50 = vsub.f32 %v3333_v34, %v3432_v47  ;;  %v3400_v51 = vsub.f32 %v3390_v37, %v3399_v49 }
0x1fec   :  { %v3434_v54 = vmul.f32 1.442695, %v3433_v50  ;;  %v3401_v59 = vmul.f32 1.442695, %v3400_v51 }
0x1fee   :  { %4230 = vpow2.f32 %v3434_v54 }
0x1fef   :  { %4232 = vpow2.f32 %v3401_v59 }
0x1ff0   :  { %v4229_v48 = vpop.eup %4228 }
0x1ff1   :  { %v3417_v55 = vsel %vm3410_vm14, %v4229_v48, 0.0 }
0x1ff2   :  { %3418 = vadd.xlane.f32.xlu0 %v3417_v55 }
0x1ff8   :  { %v4231_v25 = vpop.eup %4230 }
0x1ff9   :  { %v4233_v5 = vpop.eup %4232  ;;  %v3436_v3 = vsel %vm3429_vm15, %v4231_v25, 0.0 }
0x1ffa   :  { %3437 = vadd.xlane.f32.xlu1 %v3436_v3  ;;  %v3403_v7 = vsel %vm3396_vm0, %v4233_v5, 0.0 }
0x1ffb   :  { %3404 = vadd.xlane.f32.xlu0 %v3403_v7 }
0x207f   :  { %v3419_v57 = vpop.xlane.xlu0 %3418 }
0x2080   :  { %4234 = vlog2.f32 %v3419_v57 }
0x2087   :  { %v3438_v56 = vpop.xlane.xlu1 %3437 }
0x2088   :  { %v3405_v0 = vpop.xlane.xlu0 %3404  ;;  %4236 = vlog2.f32 %v3438_v56 }
0x2089   :  { %4238 = vlog2.f32 %v3405_v0 }
0x208a   :  { %v4235_v23 = vpop.eup %4234 }
0x208b   :  { %v3421_v8 = vmul.f32 0.6931472, %v4235_v23 }
0x208d   :  { %v3422_v18 = vsub.f32 %v3414_v44, %v3421_v8 }
0x208f   :  { %3424 = vrot.lane.b32.xlu1 %v3422_v18, %s4253_s22 }
0x2092   :  { %v4237_v26 = vpop.eup %4236 }
0x2093   :  { %v4239_v58 = vpop.eup %4238  ;;  %v3440_v20 = vmul.f32 0.6931472, %v4237_v26 }
0x2094   :  { %v3407_v2 = vmul.f32 0.6931472, %v4239_v58 }
0x2095   :  { %v3441_v6 = vsub.f32 %v3433_v50, %v3440_v20 }
0x2096   :  { %v3408_v4 = vsub.f32 %v3400_v51, %v3407_v2 }
0x2097   :  { %3443 = vrot.lane.b32.xlu0 %v3441_v6, %s4254_s27 }
0x2098   :  { %3409 = vst.msk [vmem:[%s5205_s23] sm:$0xff] %vm3396_vm0, %v3408_v4 }
0x2101   :  { %v3425_v27 = vpop.permute.xlu1 %3424 }
0x2102   :  { %3428 = vst.msk [vmem:[%s5205_s23] sm:$0xff] %vm3427_vm1, %v3425_v27 }
0x2109   :  { %v3444_v61 = vpop.permute.xlu0 %3443 }
0x210a   :  { %3447 = vst.msk [vmem:[%s5205_s23] sm:$0xff] %vm3446_vm2, %v3444_v61 }

</bundles_post_ra>
